<compile_context>
chip_gen: v7x
topology: tpu7x:2x2x1
jax: 0.10.0
libtpu: 0.0.40
codegen_flags: <defaults>
</compile_context>

<pallas_src>
import functools
import math

import jax
import jax.numpy as jnp
from jax import lax
from jax.experimental import pallas as pl
from jax.experimental.pallas import tpu as pltpu

# Scaled-down copies of the module constants (original 2048 / 24 / 16 / 3072),
# keeping the ratios (MLP = 1.5 * hidden, head_dim = hidden / heads).
HIDDEN_SIZE = 128
NUM_LAYERS = 2
NUM_HEADS = 4
MLP_HIDDEN_SIZE = 192
HEAD_DIM = HIDDEN_SIZE // NUM_HEADS
LN_EPS = 1e-5
ATTN_SCALE = 1.0 / math.sqrt(HEAD_DIM)     # flash_attn default softmax scale
DTYPE = jnp.bfloat16  # torch module uses float16; bf16 is the TPU-native 16-bit type


# ---------------------------- kernel helpers ----------------------------

def _layernorm_f32(xf, g_ref, b_ref, eps):
    # xf: f32 [rows, H]; gamma/beta refs: [1, H]
    mean = jnp.mean(xf, axis=-1, keepdims=True)
    xc = xf - mean
    var = jnp.mean(xc * xc, axis=-1, keepdims=True)
    y = xc * lax.rsqrt(var + eps)
    return y * g_ref[...].astype(jnp.float32) + b_ref[...].astype(jnp.float32)


# ---------------------------- fused layer kernel ----------------------------

def _layer_kernel(x_ref, ln1g_ref, ln1b_ref, wqkv_ref, bqkv_ref,
                  wdense_ref, bdense_ref, ln2g_ref, ln2b_ref,
                  w1_ref, b1_ref, w2_ref, b2_ref, fg_ref, fb_ref, o_ref,
                  *, num_heads, head_dim, eps, apply_final_ln):
    # One batch element per grid step.  x_ref: [S, H] bf16 (also residual #1).
    x = x_ref[...]
    S, H = x.shape
    xf = x.astype(jnp.float32)

    # ---- input_layernorm + _QKVLinear (weights pre-transposed -> plain dot) ----
    ln1 = _layernorm_f32(xf, ln1g_ref, ln1b_ref, eps).astype(jnp.bfloat16)
    qkv = jnp.dot(ln1, wqkv_ref[...], preferred_element_type=jnp.float32)
    # bias add in f32, then cast immediately (largest intermediate stays bf16).
    qkv = (qkv + bqkv_ref[...].astype(jnp.float32)).astype(jnp.bfloat16)   # [S, 3H]

    # ---- causal multi-head attention (softmax scale already folded into Q) ----
    def heads(x2d):
        # [S, H] -> [heads, S, head_dim] using only minor-most transposes
        # (2D transpose + free leading-dim reshape + batched last-two-dim swap).
        return jnp.transpose(x2d.T.reshape(num_heads, head_dim, S), (0, 2, 1))

    q = heads(qkv[:, :H])                 # lane-dense 128-wide, 128-aligned slices
    k = heads(qkv[:, H:2 * H])
    v = heads(qkv[:, 2 * H:3 * H])

    s = jnp.einsum('hqd,hkd->hqk', q, k,
                   preferred_element_type=jnp.float32)          # [heads, S, S]
    row = lax.broadcasted_iota(jnp.int32, s.shape, 1)
    col = lax.broadcasted_iota(jnp.int32, s.shape, 2)
    s = jnp.where(col <= row, s, -1e30)                          # causal mask
    m = jnp.max(s, axis=-1, keepdims=True)
    p = jnp.exp(s - m)
    l = jnp.sum(p, axis=-1, keepdims=True)
    ctx = jnp.einsum('hqk,hkd->hqd', p.astype(jnp.bfloat16), v,
                     preferred_element_type=jnp.float32)         # [heads, S, d]
    ctx = (ctx / l).astype(jnp.bfloat16)   # exact normalization (see review note)
    # TODO(synk): flash-attn dropout_p=0.1 has no deterministic Pallas equivalent for
    # the inference comparison; omitted (matches training=False no-op semantics).

    # ---- _PostAttnLinear: fold the head merge into the dense GEMM (no concat) ----
    wd3 = wdense_ref[...].reshape(num_heads, head_dim, H)        # [heads, d, H]
    dense_h = jnp.einsum('hqd,hde->hqe', ctx, wd3,
                         preferred_element_type=jnp.float32)     # [heads, S, H]
    # bias_dropout_add_fused_inference: +bias, dropout no-op, +residual.
    attn_out = jnp.sum(dense_h, axis=0) + bdense_ref[...].astype(jnp.float32) + xf

    # ---- post_attention_layernorm + MLP (Megatron fused bias-gelu, tanh approx) ----
    ln2 = _layernorm_f32(attn_out, ln2g_ref, ln2b_ref, eps).astype(jnp.bfloat16)
    h1 = jnp.dot(ln2, w1_ref[...], preferred_element_type=jnp.float32)
    h1 = h1 + b1_ref[...].astype(jnp.float32)
    h1 = (0.5 * h1 * (1.0 + jnp.tanh(
        0.7978845608028654 * h1 * (1.0 + 0.044715 * h1 * h1)))).astype(jnp.bfloat16)
    out = jnp.dot(h1, w2_ref[...], preferred_element_type=jnp.float32)
    out = out + b2_ref[...].astype(jnp.float32) + attn_out       # residual #2

    if apply_final_ln:   # static flag: final_layernorm fused into the last layer
        out = _layernorm_f32(out, fg_ref, fb_ref, eps)

    o_ref[...] = out.astype(o_ref.dtype)


# ---------------------------- pallas_call wrapper ----------------------------

def transformer_layer(h_bsh, p, final_params, *, apply_final_ln):
    # h_bsh: [B, S, H] bf16
    B, S, H = h_bsh.shape
    kern = functools.partial(_layer_kernel, num_heads=NUM_HEADS, head_dim=HEAD_DIM,
                             eps=LN_EPS, apply_final_ln=apply_final_ln)
    const = lambda b: (0, 0)          # weights/biases: same block every grid step
    # NOTE (scaled 2048-hidden config): add pipeline_mode=pl.Buffered(1) on the weight
    # specs (constant index_map -> single-buffer, halves resident weight VMEM on v7x's
    # 64 MiB) and restructure attention as a flash-style (batch, head, q-tile) grid
    # streaming K tiles (skipping fully-masked causal tiles); the [S,3H] / [heads,S,S]
    # intermediates here only stay VMEM-resident because this is the toy config.
    return pl.pallas_call(
        kern,
        out_shape=jax.ShapeDtypeStruct((B, S, H), h_bsh.dtype),
        grid=(B,),
        in_specs=[
            pl.BlockSpec((None, S, H), lambda b: (b, 0, 0)),       # x / residual
            pl.BlockSpec((1, H), const),                           # ln1 gamma
            pl.BlockSpec((1, H), const),                           # ln1 beta
            pl.BlockSpec((H, 3 * H), const),                       # Wqkv^T  [in, Q|K|V]
            pl.BlockSpec((1, 3 * H), const),                       # bqkv
            pl.BlockSpec((H, H), const),                           # Wdense^T
            pl.BlockSpec((1, H), const),                           # bdense
            pl.BlockSpec((1, H), const),                           # ln2 gamma
            pl.BlockSpec((1, H), const),                           # ln2 beta
            pl.BlockSpec((H, MLP_HIDDEN_SIZE), const),             # W1^T
            pl.BlockSpec((1, MLP_HIDDEN_SIZE), const),             # b1
            pl.BlockSpec((MLP_HIDDEN_SIZE, H), const),             # W2^T
            pl.BlockSpec((1, H), const),                           # b2
            pl.BlockSpec((1, H), const),                           # final-LN gamma
            pl.BlockSpec((1, H), const),                           # final-LN beta
        ],
        out_specs=pl.BlockSpec((None, S, H), lambda b: (b, 0, 0)),
        compiler_params=pltpu.CompilerParams(
            dimension_semantics=("parallel",),
            # default scoped-VMEM limit is only 16/32 MiB (v5e / v6e,v7x); raise it.
            vmem_limit_bytes=64 * 1024 * 1024),
    )(h_bsh, p["ln1_g"], p["ln1_b"], p["wqkv_t"], p["bqkv"],
      p["wdense_t"], p["bdense"], p["ln2_g"], p["ln2_b"],
      p["w1_t"], p["b1"], p["w2_t"], p["b2"],
      final_params["g"], final_params["b"])


# ---------------------------- model (glue) ----------------------------

def init_params(key):
    std = 0.02
    layers = []
    for _ in range(NUM_LAYERS):
        key, *ks = jax.random.split(key, 13)
        wq = jax.random.normal(ks[0], (HIDDEN_SIZE, HIDDEN_SIZE)) * std
        wk = jax.random.normal(ks[1], (HIDDEN_SIZE, HIDDEN_SIZE)) * std
        wv = jax.random.normal(ks[2], (HIDDEN_SIZE, HIDDEN_SIZE)) * std
        bq = jax.random.normal(ks[3], (1, HIDDEN_SIZE)) * std
        bk = jax.random.normal(ks[4], (1, HIDDEN_SIZE)) * std
        bv = jax.random.normal(ks[5], (1, HIDDEN_SIZE)) * std
        layers.append(dict(
            ln1_g=jnp.ones((1, HIDDEN_SIZE), DTYPE),
            ln1_b=jnp.zeros((1, HIDDEN_SIZE), DTYPE),
            # Weights stored pre-transposed ([in, out] == torch Parameter[out, in].T).
            # QKV columns reordered to [all-Q | all-K | all-V] (head-major inside each)
            # with the 1/sqrt(head_dim) softmax scale folded into the Q block; real
            # torch _QKVLinear weights/bias (per-head [q|k|v] interleave) must be
            # permuted + scaled the same way when imported.
            wqkv_t=jnp.concatenate([wq * ATTN_SCALE, wk, wv], axis=1).astype(DTYPE),
            bqkv=jnp.concatenate([bq * ATTN_SCALE, bk, bv], axis=1).astype(DTYPE),
            wdense_t=(jax.random.normal(ks[6], (HIDDEN_SIZE, HIDDEN_SIZE)) * std).astype(DTYPE),
            bdense=(jax.random.normal(ks[7], (1, HIDDEN_SIZE)) * std).astype(DTYPE),
            ln2_g=jnp.ones((1, HIDDEN_SIZE), DTYPE),
            ln2_b=jnp.zeros((1, HIDDEN_SIZE), DTYPE),
            w1_t=(jax.random.normal(ks[8], (HIDDEN_SIZE, MLP_HIDDEN_SIZE)) * std).astype(DTYPE),
            b1=(jax.random.normal(ks[9], (1, MLP_HIDDEN_SIZE)) * std).astype(DTYPE),
            w2_t=(jax.random.normal(ks[10], (MLP_HIDDEN_SIZE, HIDDEN_SIZE)) * std).astype(DTYPE),
            b2=(jax.random.normal(ks[11], (1, HIDDEN_SIZE)) * std).astype(DTYPE),
        ))
    final = dict(g=jnp.ones((1, HIDDEN_SIZE), DTYPE),
                 b=jnp.zeros((1, HIDDEN_SIZE), DTYPE))
    return layers, final


def transformer_forward(x_sbh, layer_params, final_params):
    # x_sbh: [S, B, H] (module convention).  One transpose in / one out; everything in
    # between stays in [B, S, H] inside the fused per-layer kernels (per-layer HBM
    # round trips already minimized by the fusion).
    # TODO(synk): _DistributedAttention / _SeqAllToAll (int4-quantized all-to-all over
    # torch.distributed + exit()) is single-device identity comm here; omitted.
    h = jnp.transpose(x_sbh, (1, 0, 2))                        # [B, S, H]
    n = len(layer_params)
    for i, p in enumerate(layer_params):
        h = transformer_layer(h, p, final_params, apply_final_ln=(i == n - 1))
    return jnp.transpose(h, (1, 0, 2))                         # back to [S, B, H]


if __name__ == "__main__":
    key = jax.random.PRNGKey(0)
    kx, kp = jax.random.split(key)
    SEQ, BATCH = 8, 2
    x = (jax.random.normal(kx, (SEQ, BATCH, HIDDEN_SIZE)) * 0.1).astype(DTYPE)
    layer_params, final_params = init_params(kp)

    fwd = jax.jit(transformer_forward)
    out = jax.block_until_ready(fwd(x, layer_params, final_params))

    assert out.shape == (SEQ, BATCH, HIDDEN_SIZE), out.shape
    assert out.dtype == DTYPE, out.dtype
    assert bool(jnp.all(jnp.isfinite(out.astype(jnp.float32))))
    print("KERNEL_OK")
</pallas_src>

<mosaic_0001>
module attributes {stable_mosaic.version = 11 : i64} {
  func.func @_layer_kernel(%arg0: i32, %arg1: memref<1x8x128xbf16, #tpu.memory_space<vmem>>, %arg2: memref<1x128xbf16, #tpu.memory_space<vmem>>, %arg3: memref<1x128xbf16, #tpu.memory_space<vmem>>, %arg4: memref<128x384xbf16, #tpu.memory_space<vmem>>, %arg5: memref<1x384xbf16, #tpu.memory_space<vmem>>, %arg6: memref<128x128xbf16, #tpu.memory_space<vmem>>, %arg7: memref<1x128xbf16, #tpu.memory_space<vmem>>, %arg8: memref<1x128xbf16, #tpu.memory_space<vmem>>, %arg9: memref<1x128xbf16, #tpu.memory_space<vmem>>, %arg10: memref<128x192xbf16, #tpu.memory_space<vmem>>, %arg11: memref<1x192xbf16, #tpu.memory_space<vmem>>, %arg12: memref<192x128xbf16, #tpu.memory_space<vmem>>, %arg13: memref<1x128xbf16, #tpu.memory_space<vmem>>, %arg14: memref<1x128xbf16, #tpu.memory_space<vmem>>, %arg15: memref<1x128xbf16, #tpu.memory_space<vmem>>, %arg16: memref<1x8x128xbf16, #tpu.memory_space<vmem>>) attributes {dimension_semantics = [#tpu.dimension_semantics<parallel>], iteration_bounds = array<i64: 2>, scalar_prefetch = 0 : i64, scratch_operands = 0 : i64, tpu.core_type = #tpu.core_type<tc>, window_params = [{transform_indices = @transform_0, window_bounds = array<i64: 1, 8, 128>}, {pipeline_mode = #tpu.pipeline_mode<synchronous>, transform_indices = @transform_1, window_bounds = array<i64: 1, 128>}, {pipeline_mode = #tpu.pipeline_mode<synchronous>, transform_indices = @transform_2, window_bounds = array<i64: 1, 128>}, {pipeline_mode = #tpu.pipeline_mode<synchronous>, transform_indices = @transform_3, window_bounds = array<i64: 128, 384>}, {pipeline_mode = #tpu.pipeline_mode<synchronous>, transform_indices = @transform_4, window_bounds = array<i64: 1, 384>}, {pipeline_mode = #tpu.pipeline_mode<synchronous>, transform_indices = @transform_5, window_bounds = array<i64: 128, 128>}, {pipeline_mode = #tpu.pipeline_mode<synchronous>, transform_indices = @transform_6, window_bounds = array<i64: 1, 128>}, {pipeline_mode = #tpu.pipeline_mode<synchronous>, transform_indices = @transform_7, window_bounds = array<i64: 1, 128>}, {pipeline_mode = #tpu.pipeline_mode<synchronous>, transform_indices = @transform_8, window_bounds = array<i64: 1, 128>}, {pipeline_mode = #tpu.pipeline_mode<synchronous>, transform_indices = @transform_9, window_bounds = array<i64: 128, 192>}, {pipeline_mode = #tpu.pipeline_mode<synchronous>, transform_indices = @transform_10, window_bounds = array<i64: 1, 192>}, {pipeline_mode = #tpu.pipeline_mode<synchronous>, transform_indices = @transform_11, window_bounds = array<i64: 192, 128>}, {pipeline_mode = #tpu.pipeline_mode<synchronous>, transform_indices = @transform_12, window_bounds = array<i64: 1, 128>}, {pipeline_mode = #tpu.pipeline_mode<synchronous>, transform_indices = @transform_13, window_bounds = array<i64: 1, 128>}, {pipeline_mode = #tpu.pipeline_mode<synchronous>, transform_indices = @transform_14, window_bounds = array<i64: 1, 128>}, {transform_indices = @transform_15, window_bounds = array<i64: 1, 8, 128>}]} {
    %c0 = arith.constant 0 : index
    %c0_0 = arith.constant 0 : index
    %c0_1 = arith.constant 0 : index
    %0 = vector.load %arg1[%c0, %c0_0, %c0_1] : memref<1x8x128xbf16, #tpu.memory_space<vmem>>, vector<1x8x128xbf16>
    %1 = vector.shape_cast %0 : vector<1x8x128xbf16> to vector<8x128xbf16>
    %2 = arith.extf %1 : vector<8x128xbf16> to vector<8x128xf32>
    %cst = arith.constant dense<0.000000e+00> : vector<8xf32>
    %3 = vector.multi_reduction <add>, %2, %cst [1] : vector<8x128xf32> to vector<8xf32>
    %4 = vector.shape_cast %3 : vector<8xf32> to vector<8x1xf32>
    %cst_2 = arith.constant 1.280000e+02 : f32
    %5 = vector.broadcast %cst_2 : f32 to vector<8x1xf32>
    %6 = arith.divf %4, %5 : vector<8x1xf32>
    %7 = vector.broadcast %6 : vector<8x1xf32> to vector<8x128xf32>
    %8 = arith.subf %2, %7 : vector<8x128xf32>
    %9 = arith.mulf %8, %8 : vector<8x128xf32>
    %cst_3 = arith.constant dense<0.000000e+00> : vector<8xf32>
    %10 = vector.multi_reduction <add>, %9, %cst_3 [1] : vector<8x128xf32> to vector<8xf32>
    %11 = vector.shape_cast %10 : vector<8xf32> to vector<8x1xf32>
    %cst_4 = arith.constant 1.280000e+02 : f32
    %12 = vector.broadcast %cst_4 : f32 to vector<8x1xf32>
    %13 = arith.divf %11, %12 : vector<8x1xf32>
    %cst_5 = arith.constant 9.99999974E-6 : f32
    %14 = vector.broadcast %cst_5 : f32 to vector<8x1xf32>
    %15 = arith.addf %13, %14 : vector<8x1xf32>
    %16 = math.rsqrt %15 : vector<8x1xf32>
    %17 = vector.broadcast %16 : vector<8x1xf32> to vector<8x128xf32>
    %18 = arith.mulf %8, %17 : vector<8x128xf32>
    %c0_6 = arith.constant 0 : index
    %c0_7 = arith.constant 0 : index
    %19 = vector.load %arg2[%c0_6, %c0_7] : memref<1x128xbf16, #tpu.memory_space<vmem>>, vector<1x128xbf16>
    %20 = arith.extf %19 : vector<1x128xbf16> to vector<1x128xf32>
    %21 = vector.broadcast %20 : vector<1x128xf32> to vector<8x128xf32>
    %22 = arith.mulf %18, %21 : vector<8x128xf32>
    %c0_8 = arith.constant 0 : index
    %c0_9 = arith.constant 0 : index
    %23 = vector.load %arg3[%c0_8, %c0_9] : memref<1x128xbf16, #tpu.memory_space<vmem>>, vector<1x128xbf16>
    %24 = arith.extf %23 : vector<1x128xbf16> to vector<1x128xf32>
    %25 = vector.broadcast %24 : vector<1x128xf32> to vector<8x128xf32>
    %26 = arith.addf %22, %25 : vector<8x128xf32>
    %27 = arith.truncf %26 : vector<8x128xf32> to vector<8x128xbf16>
    %c0_10 = arith.constant 0 : index
    %c0_11 = arith.constant 0 : index
    %28 = vector.load %arg4[%c0_10, %c0_11] : memref<128x384xbf16, #tpu.memory_space<vmem>>, vector<128x384xbf16>
    %cst_12 = arith.constant dense<0.000000e+00> : vector<8x384xf32>
    %29 = tpu.matmul %27, %28, %cst_12 {dimension_numbers = #tpu.dot_dimension_numbers<[1], [0], [0], [1], [0, 0, 1, 1], [], []>} : vector<8x128xbf16>, vector<128x384xbf16>, vector<8x384xf32> -> vector<8x384xf32>
    %c0_13 = arith.constant 0 : index
    %c0_14 = arith.constant 0 : index
    %30 = vector.load %arg5[%c0_13, %c0_14] : memref<1x384xbf16, #tpu.memory_space<vmem>>, vector<1x384xbf16>
    %31 = arith.extf %30 : vector<1x384xbf16> to vector<1x384xf32>
    %32 = vector.broadcast %31 : vector<1x384xf32> to vector<8x384xf32>
    %33 = arith.addf %29, %32 : vector<8x384xf32>
    %34 = arith.truncf %33 : vector<8x384xf32> to vector<8x384xbf16>
    %35 = vector.extract_strided_slice %34 {offsets = [0, 0], sizes = [8, 128], strides = [1, 1]} : vector<8x384xbf16> to vector<8x128xbf16>
    %36 = tpu.transpose %35, [1, 0] : vector<8x128xbf16> -> vector<128x8xbf16>
    %37 = vector.shape_cast %36 : vector<128x8xbf16> to vector<4x32x8xbf16>
    %38 = tpu.transpose %37, [0, 2, 1] : vector<4x32x8xbf16> -> vector<4x8x32xbf16>
    %39 = vector.extract_strided_slice %34 {offsets = [0, 128], sizes = [8, 128], strides = [1, 1]} : vector<8x384xbf16> to vector<8x128xbf16>
    %40 = tpu.transpose %39, [1, 0] : vector<8x128xbf16> -> vector<128x8xbf16>
    %41 = vector.shape_cast %40 : vector<128x8xbf16> to vector<4x32x8xbf16>
    %42 = tpu.transpose %41, [0, 2, 1] : vector<4x32x8xbf16> -> vector<4x8x32xbf16>
    %43 = vector.extract_strided_slice %34 {offsets = [0, 256], sizes = [8, 128], strides = [1, 1]} : vector<8x384xbf16> to vector<8x128xbf16>
    %44 = tpu.transpose %43, [1, 0] : vector<8x128xbf16> -> vector<128x8xbf16>
    %45 = vector.shape_cast %44 : vector<128x8xbf16> to vector<4x32x8xbf16>
    %46 = tpu.transpose %45, [0, 2, 1] : vector<4x32x8xbf16> -> vector<4x8x32xbf16>
    "tpu.trace_start"() <{level = 10 : i32, message = "hqd,hkd->hqk"}> : () -> ()
    %cst_15 = arith.constant dense<0.000000e+00> : vector<4x8x8xf32>
    %47 = tpu.matmul %38, %42, %cst_15 {dimension_numbers = #tpu.dot_dimension_numbers<[2], [2], [1], [1], [0, 0, 0, 1, 1, 1], [0], [0]>} : vector<4x8x32xbf16>, vector<4x8x32xbf16>, vector<4x8x8xf32> -> vector<4x8x8xf32>
    "tpu.trace_stop"() : () -> ()
    %48 = tpu.iota {dimensions = array<i32: 1>} : vector<4x8x8xi32>
    %49 = tpu.iota {dimensions = array<i32: 2>} : vector<4x8x8xi32>
    %50 = arith.cmpi sle, %49, %48 : vector<4x8x8xi32>
    %cst_16 = arith.constant -1.000000e+30 : f32
    %51 = vector.broadcast %cst_16 : f32 to vector<4x8x8xf32>
    %52 = arith.select %50, %47, %51 : vector<4x8x8xi1>, vector<4x8x8xf32>
    %cst_17 = arith.constant dense<0xFF800000> : vector<4x8xf32>
    %53 = vector.multi_reduction <maximumf>, %52, %cst_17 [2] : vector<4x8x8xf32> to vector<4x8xf32>
    %54 = vector.shape_cast %53 : vector<4x8xf32> to vector<4x8x1xf32>
    %55 = vector.broadcast %54 : vector<4x8x1xf32> to vector<4x8x8xf32>
    %56 = arith.subf %52, %55 : vector<4x8x8xf32>
    %57 = math.exp %56 : vector<4x8x8xf32>
    %cst_18 = arith.constant dense<0.000000e+00> : vector<4x8xf32>
    %58 = vector.multi_reduction <add>, %57, %cst_18 [2] : vector<4x8x8xf32> to vector<4x8xf32>
    %59 = vector.shape_cast %58 : vector<4x8xf32> to vector<4x8x1xf32>
    %60 = arith.truncf %57 : vector<4x8x8xf32> to vector<4x8x8xbf16>
    "tpu.trace_start"() <{level = 10 : i32, message = "hqk,hkd->hqd"}> : () -> ()
    %cst_19 = arith.constant dense<0.000000e+00> : vector<4x8x32xf32>
    %61 = tpu.matmul %60, %46, %cst_19 {dimension_numbers = #tpu.dot_dimension_numbers<[2], [1], [1], [2], [0, 0, 0, 1, 1, 2], [0], [0]>} : vector<4x8x8xbf16>, vector<4x8x32xbf16>, vector<4x8x32xf32> -> vector<4x8x32xf32>
    "tpu.trace_stop"() : () -> ()
    %62 = vector.broadcast %59 : vector<4x8x1xf32> to vector<4x8x32xf32>
    %63 = arith.divf %61, %62 : vector<4x8x32xf32>
    %64 = arith.truncf %63 : vector<4x8x32xf32> to vector<4x8x32xbf16>
    %c0_20 = arith.constant 0 : index
    %c0_21 = arith.constant 0 : index
    %65 = vector.load %arg6[%c0_20, %c0_21] : memref<128x128xbf16, #tpu.memory_space<vmem>>, vector<128x128xbf16>
    %66 = vector.shape_cast %65 : vector<128x128xbf16> to vector<4x32x128xbf16>
    "tpu.trace_start"() <{level = 10 : i32, message = "hqd,hde->hqe"}> : () -> ()
    %cst_22 = arith.constant dense<0.000000e+00> : vector<4x8x128xf32>
    %67 = tpu.matmul %64, %66, %cst_22 {dimension_numbers = #tpu.dot_dimension_numbers<[2], [1], [1], [2], [0, 0, 0, 1, 1, 2], [0], [0]>} : vector<4x8x32xbf16>, vector<4x32x128xbf16>, vector<4x8x128xf32> -> vector<4x8x128xf32>
    "tpu.trace_stop"() : () -> ()
    %cst_23 = arith.constant dense<0.000000e+00> : vector<8x128xf32>
    %68 = vector.multi_reduction <add>, %67, %cst_23 [0] : vector<4x8x128xf32> to vector<8x128xf32>
    %c0_24 = arith.constant 0 : index
    %c0_25 = arith.constant 0 : index
    %69 = vector.load %arg7[%c0_24, %c0_25] : memref<1x128xbf16, #tpu.memory_space<vmem>>, vector<1x128xbf16>
    %70 = arith.extf %69 : vector<1x128xbf16> to vector<1x128xf32>
    %71 = vector.broadcast %70 : vector<1x128xf32> to vector<8x128xf32>
    %72 = arith.addf %68, %71 : vector<8x128xf32>
    %73 = arith.addf %72, %2 : vector<8x128xf32>
    %cst_26 = arith.constant dense<0.000000e+00> : vector<8xf32>
    %74 = vector.multi_reduction <add>, %73, %cst_26 [1] : vector<8x128xf32> to vector<8xf32>
    %75 = vector.shape_cast %74 : vector<8xf32> to vector<8x1xf32>
    %cst_27 = arith.constant 1.280000e+02 : f32
    %76 = vector.broadcast %cst_27 : f32 to vector<8x1xf32>
    %77 = arith.divf %75, %76 : vector<8x1xf32>
    %78 = vector.broadcast %77 : vector<8x1xf32> to vector<8x128xf32>
    %79 = arith.subf %73, %78 : vector<8x128xf32>
    %80 = arith.mulf %79, %79 : vector<8x128xf32>
    %cst_28 = arith.constant dense<0.000000e+00> : vector<8xf32>
    %81 = vector.multi_reduction <add>, %80, %cst_28 [1] : vector<8x128xf32> to vector<8xf32>
    %82 = vector.shape_cast %81 : vector<8xf32> to vector<8x1xf32>
    %cst_29 = arith.constant 1.280000e+02 : f32
    %83 = vector.broadcast %cst_29 : f32 to vector<8x1xf32>
    %84 = arith.divf %82, %83 : vector<8x1xf32>
    %cst_30 = arith.constant 9.99999974E-6 : f32
    %85 = vector.broadcast %cst_30 : f32 to vector<8x1xf32>
    %86 = arith.addf %84, %85 : vector<8x1xf32>
    %87 = math.rsqrt %86 : vector<8x1xf32>
    %88 = vector.broadcast %87 : vector<8x1xf32> to vector<8x128xf32>
    %89 = arith.mulf %79, %88 : vector<8x128xf32>
    %c0_31 = arith.constant 0 : index
    %c0_32 = arith.constant 0 : index
    %90 = vector.load %arg8[%c0_31, %c0_32] : memref<1x128xbf16, #tpu.memory_space<vmem>>, vector<1x128xbf16>
    %91 = arith.extf %90 : vector<1x128xbf16> to vector<1x128xf32>
    %92 = vector.broadcast %91 : vector<1x128xf32> to vector<8x128xf32>
    %93 = arith.mulf %89, %92 : vector<8x128xf32>
    %c0_33 = arith.constant 0 : index
    %c0_34 = arith.constant 0 : index
    %94 = vector.load %arg9[%c0_33, %c0_34] : memref<1x128xbf16, #tpu.memory_space<vmem>>, vector<1x128xbf16>
    %95 = arith.extf %94 : vector<1x128xbf16> to vector<1x128xf32>
    %96 = vector.broadcast %95 : vector<1x128xf32> to vector<8x128xf32>
    %97 = arith.addf %93, %96 : vector<8x128xf32>
    %98 = arith.truncf %97 : vector<8x128xf32> to vector<8x128xbf16>
    %c0_35 = arith.constant 0 : index
    %c0_36 = arith.constant 0 : index
    %99 = vector.load %arg10[%c0_35, %c0_36] : memref<128x192xbf16, #tpu.memory_space<vmem>>, vector<128x192xbf16>
    %cst_37 = arith.constant dense<0.000000e+00> : vector<8x192xf32>
    %100 = tpu.matmul %98, %99, %cst_37 {dimension_numbers = #tpu.dot_dimension_numbers<[1], [0], [0], [1], [0, 0, 1, 1], [], []>} : vector<8x128xbf16>, vector<128x192xbf16>, vector<8x192xf32> -> vector<8x192xf32>
    %c0_38 = arith.constant 0 : index
    %c0_39 = arith.constant 0 : index
    %101 = vector.load %arg11[%c0_38, %c0_39] : memref<1x192xbf16, #tpu.memory_space<vmem>>, vector<1x192xbf16>
    %102 = arith.extf %101 : vector<1x192xbf16> to vector<1x192xf32>
    %103 = vector.broadcast %102 : vector<1x192xf32> to vector<8x192xf32>
    %104 = arith.addf %100, %103 : vector<8x192xf32>
    %cst_40 = arith.constant 5.000000e-01 : f32
    %105 = vector.broadcast %cst_40 : f32 to vector<8x192xf32>
    %106 = arith.mulf %105, %104 : vector<8x192xf32>
    %cst_41 = arith.constant 0.797884583 : f32
    %107 = vector.broadcast %cst_41 : f32 to vector<8x192xf32>
    %108 = arith.mulf %107, %104 : vector<8x192xf32>
    %cst_42 = arith.constant 4.471500e-02 : f32
    %109 = vector.broadcast %cst_42 : f32 to vector<8x192xf32>
    %110 = arith.mulf %109, %104 : vector<8x192xf32>
    %111 = arith.mulf %110, %104 : vector<8x192xf32>
    %cst_43 = arith.constant 1.000000e+00 : f32
    %112 = vector.broadcast %cst_43 : f32 to vector<8x192xf32>
    %113 = arith.addf %112, %111 : vector<8x192xf32>
    %114 = arith.mulf %108, %113 : vector<8x192xf32>
    %115 = math.tanh %114 : vector<8x192xf32>
    %cst_44 = arith.constant 1.000000e+00 : f32
    %116 = vector.broadcast %cst_44 : f32 to vector<8x192xf32>
    %117 = arith.addf %116, %115 : vector<8x192xf32>
    %118 = arith.mulf %106, %117 : vector<8x192xf32>
    %119 = arith.truncf %118 : vector<8x192xf32> to vector<8x192xbf16>
    %c0_45 = arith.constant 0 : index
    %c0_46 = arith.constant 0 : index
    %120 = vector.load %arg12[%c0_45, %c0_46] : memref<192x128xbf16, #tpu.memory_space<vmem>>, vector<192x128xbf16>
    %cst_47 = arith.constant dense<0.000000e+00> : vector<8x128xf32>
    %121 = tpu.matmul %119, %120, %cst_47 {dimension_numbers = #tpu.dot_dimension_numbers<[1], [0], [0], [1], [0, 0, 1, 1], [], []>} : vector<8x192xbf16>, vector<192x128xbf16>, vector<8x128xf32> -> vector<8x128xf32>
    %c0_48 = arith.constant 0 : index
    %c0_49 = arith.constant 0 : index
    %122 = vector.load %arg13[%c0_48, %c0_49] : memref<1x128xbf16, #tpu.memory_space<vmem>>, vector<1x128xbf16>
    %123 = arith.extf %122 : vector<1x128xbf16> to vector<1x128xf32>
    %124 = vector.broadcast %123 : vector<1x128xf32> to vector<8x128xf32>
    %125 = arith.addf %121, %124 : vector<8x128xf32>
    %126 = arith.addf %125, %73 : vector<8x128xf32>
    %127 = arith.truncf %126 : vector<8x128xf32> to vector<8x128xbf16>
    %c0_50 = arith.constant 0 : index
    %c0_51 = arith.constant 0 : index
    %c0_52 = arith.constant 0 : index
    %128 = vector.load %arg16[%c0_50, %c0_51, %c0_52] : memref<1x8x128xbf16, #tpu.memory_space<vmem>>, vector<1x8x128xbf16>
    %129 = vector.shape_cast %128 : vector<1x8x128xbf16> to vector<8x128xbf16>
    %130 = vector.shape_cast %127 : vector<8x128xbf16> to vector<1x8x128xbf16>
    tpu.vector_store %arg16[%c0_50, %c0_51, %c0_52], %130 {strides = array<i32>} : memref<1x8x128xbf16, #tpu.memory_space<vmem>>, vector<1x8x128xbf16>,
    return
  }
  func.func @transform_0(%arg0: i32) -> (i32, i32, i32) {
    %c0_i32 = arith.constant 0 : i32
    %c0_i32_0 = arith.constant 0 : i32
    %c0_i32_1 = arith.constant 0 : i32
    return %arg0, %c0_i32, %c0_i32_0 : i32, i32, i32
  }
  func.func @transform_1(%arg0: i32) -> (i32, i32) {
    %c0_i32 = arith.constant 0 : i32
    %c0_i32_0 = arith.constant 0 : i32
    %c0_i32_1 = arith.constant 0 : i32
    return %c0_i32, %c0_i32_0 : i32, i32
  }
  func.func @transform_2(%arg0: i32) -> (i32, i32) {
    %c0_i32 = arith.constant 0 : i32
    %c0_i32_0 = arith.constant 0 : i32
    %c0_i32_1 = arith.constant 0 : i32
    return %c0_i32, %c0_i32_0 : i32, i32
  }
  func.func @transform_3(%arg0: i32) -> (i32, i32) {
    %c0_i32 = arith.constant 0 : i32
    %c0_i32_0 = arith.constant 0 : i32
    %c0_i32_1 = arith.constant 0 : i32
    return %c0_i32, %c0_i32_0 : i32, i32
  }
  func.func @transform_4(%arg0: i32) -> (i32, i32) {
    %c0_i32 = arith.constant 0 : i32
    %c0_i32_0 = arith.constant 0 : i32
    %c0_i32_1 = arith.constant 0 : i32
    return %c0_i32, %c0_i32_0 : i32, i32
  }
  func.func @transform_5(%arg0: i32) -> (i32, i32) {
    %c0_i32 = arith.constant 0 : i32
    %c0_i32_0 = arith.constant 0 : i32
    %c0_i32_1 = arith.constant 0 : i32
    return %c0_i32, %c0_i32_0 : i32, i32
  }
  func.func @transform_6(%arg0: i32) -> (i32, i32) {
    %c0_i32 = arith.constant 0 : i32
    %c0_i32_0 = arith.constant 0 : i32
    %c0_i32_1 = arith.constant 0 : i32
    return %c0_i32, %c0_i32_0 : i32, i32
  }
  func.func @transform_7(%arg0: i32) -> (i32, i32) {
    %c0_i32 = arith.constant 0 : i32
    %c0_i32_0 = arith.constant 0 : i32
    %c0_i32_1 = arith.constant 0 : i32
    return %c0_i32, %c0_i32_0 : i32, i32
  }
  func.func @transform_8(%arg0: i32) -> (i32, i32) {
    %c0_i32 = arith.constant 0 : i32
    %c0_i32_0 = arith.constant 0 : i32
    %c0_i32_1 = arith.constant 0 : i32
    return %c0_i32, %c0_i32_0 : i32, i32
  }
  func.func @transform_9(%arg0: i32) -> (i32, i32) {
    %c0_i32 = arith.constant 0 : i32
    %c0_i32_0 = arith.constant 0 : i32
    %c0_i32_1 = arith.constant 0 : i32
    return %c0_i32, %c0_i32_0 : i32, i32
  }
  func.func @transform_10(%arg0: i32) -> (i32, i32) {
    %c0_i32 = arith.constant 0 : i32
    %c0_i32_0 = arith.constant 0 : i32
    %c0_i32_1 = arith.constant 0 : i32
    return %c0_i32, %c0_i32_0 : i32, i32
  }
  func.func @transform_11(%arg0: i32) -> (i32, i32) {
    %c0_i32 = arith.constant 0 : i32
    %c0_i32_0 = arith.constant 0 : i32
    %c0_i32_1 = arith.constant 0 : i32
    return %c0_i32, %c0_i32_0 : i32, i32
  }
  func.func @transform_12(%arg0: i32) -> (i32, i32) {
    %c0_i32 = arith.constant 0 : i32
    %c0_i32_0 = arith.constant 0 : i32
    %c0_i32_1 = arith.constant 0 : i32
    return %c0_i32, %c0_i32_0 : i32, i32
  }
  func.func @transform_13(%arg0: i32) -> (i32, i32) {
    %c0_i32 = arith.constant 0 : i32
    %c0_i32_0 = arith.constant 0 : i32
    %c0_i32_1 = arith.constant 0 : i32
    return %c0_i32, %c0_i32_0 : i32, i32
  }
  func.func @transform_14(%arg0: i32) -> (i32, i32) {
    %c0_i32 = arith.constant 0 : i32
    %c0_i32_0 = arith.constant 0 : i32
    %c0_i32_1 = arith.constant 0 : i32
    return %c0_i32, %c0_i32_0 : i32, i32
  }
  func.func @transform_15(%arg0: i32) -> (i32, i32, i32) {
    %c0_i32 = arith.constant 0 : i32
    %c0_i32_0 = arith.constant 0 : i32
    %c0_i32_1 = arith.constant 0 : i32
    return %arg0, %c0_i32, %c0_i32_0 : i32, i32, i32
  }
}

module attributes {stable_mosaic.version = 11 : i64} {
  func.func @_layer_kernel(%arg0: i32, %arg1: memref<1x8x128xbf16, #tpu.memory_space<vmem>>, %arg2: memref<1x128xbf16, #tpu.memory_space<vmem>>, %arg3: memref<1x128xbf16, #tpu.memory_space<vmem>>, %arg4: memref<128x384xbf16, #tpu.memory_space<vmem>>, %arg5: memref<1x384xbf16, #tpu.memory_space<vmem>>, %arg6: memref<128x128xbf16, #tpu.memory_space<vmem>>, %arg7: memref<1x128xbf16, #tpu.memory_space<vmem>>, %arg8: memref<1x128xbf16, #tpu.memory_space<vmem>>, %arg9: memref<1x128xbf16, #tpu.memory_space<vmem>>, %arg10: memref<128x192xbf16, #tpu.memory_space<vmem>>, %arg11: memref<1x192xbf16, #tpu.memory_space<vmem>>, %arg12: memref<192x128xbf16, #tpu.memory_space<vmem>>, %arg13: memref<1x128xbf16, #tpu.memory_space<vmem>>, %arg14: memref<1x128xbf16, #tpu.memory_space<vmem>>, %arg15: memref<1x128xbf16, #tpu.memory_space<vmem>>, %arg16: memref<1x8x128xbf16, #tpu.memory_space<vmem>>) attributes {dimension_semantics = [#tpu.dimension_semantics<parallel>], iteration_bounds = array<i64: 2>, scalar_prefetch = 0 : i64, scratch_operands = 0 : i64, tpu.core_type = #tpu.core_type<tc>, window_params = [{transform_indices = @transform_0, window_bounds = array<i64: 1, 8, 128>}, {pipeline_mode = #tpu.pipeline_mode<synchronous>, transform_indices = @transform_1, window_bounds = array<i64: 1, 128>}, {pipeline_mode = #tpu.pipeline_mode<synchronous>, transform_indices = @transform_2, window_bounds = array<i64: 1, 128>}, {pipeline_mode = #tpu.pipeline_mode<synchronous>, transform_indices = @transform_3, window_bounds = array<i64: 128, 384>}, {pipeline_mode = #tpu.pipeline_mode<synchronous>, transform_indices = @transform_4, window_bounds = array<i64: 1, 384>}, {pipeline_mode = #tpu.pipeline_mode<synchronous>, transform_indices = @transform_5, window_bounds = array<i64: 128, 128>}, {pipeline_mode = #tpu.pipeline_mode<synchronous>, transform_indices = @transform_6, window_bounds = array<i64: 1, 128>}, {pipeline_mode = #tpu.pipeline_mode<synchronous>, transform_indices = @transform_7, window_bounds = array<i64: 1, 128>}, {pipeline_mode = #tpu.pipeline_mode<synchronous>, transform_indices = @transform_8, window_bounds = array<i64: 1, 128>}, {pipeline_mode = #tpu.pipeline_mode<synchronous>, transform_indices = @transform_9, window_bounds = array<i64: 128, 192>}, {pipeline_mode = #tpu.pipeline_mode<synchronous>, transform_indices = @transform_10, window_bounds = array<i64: 1, 192>}, {pipeline_mode = #tpu.pipeline_mode<synchronous>, transform_indices = @transform_11, window_bounds = array<i64: 192, 128>}, {pipeline_mode = #tpu.pipeline_mode<synchronous>, transform_indices = @transform_12, window_bounds = array<i64: 1, 128>}, {pipeline_mode = #tpu.pipeline_mode<synchronous>, transform_indices = @transform_13, window_bounds = array<i64: 1, 128>}, {pipeline_mode = #tpu.pipeline_mode<synchronous>, transform_indices = @transform_14, window_bounds = array<i64: 1, 128>}, {transform_indices = @transform_15, window_bounds = array<i64: 1, 8, 128>}]} {
    %c0 = arith.constant 0 : index
    %c0_0 = arith.constant 0 : index
    %c0_1 = arith.constant 0 : index
    %0 = vector.load %arg1[%c0, %c0_0, %c0_1] : memref<1x8x128xbf16, #tpu.memory_space<vmem>>, vector<1x8x128xbf16>
    %1 = vector.shape_cast %0 : vector<1x8x128xbf16> to vector<8x128xbf16>
    %2 = arith.extf %1 : vector<8x128xbf16> to vector<8x128xf32>
    %cst = arith.constant dense<0.000000e+00> : vector<8xf32>
    %3 = vector.multi_reduction <add>, %2, %cst [1] : vector<8x128xf32> to vector<8xf32>
    %4 = vector.shape_cast %3 : vector<8xf32> to vector<8x1xf32>
    %cst_2 = arith.constant 1.280000e+02 : f32
    %5 = vector.broadcast %cst_2 : f32 to vector<8x1xf32>
    %6 = arith.divf %4, %5 : vector<8x1xf32>
    %7 = vector.broadcast %6 : vector<8x1xf32> to vector<8x128xf32>
    %8 = arith.subf %2, %7 : vector<8x128xf32>
    %9 = arith.mulf %8, %8 : vector<8x128xf32>
    %cst_3 = arith.constant dense<0.000000e+00> : vector<8xf32>
    %10 = vector.multi_reduction <add>, %9, %cst_3 [1] : vector<8x128xf32> to vector<8xf32>
    %11 = vector.shape_cast %10 : vector<8xf32> to vector<8x1xf32>
    %cst_4 = arith.constant 1.280000e+02 : f32
    %12 = vector.broadcast %cst_4 : f32 to vector<8x1xf32>
    %13 = arith.divf %11, %12 : vector<8x1xf32>
    %cst_5 = arith.constant 9.99999974E-6 : f32
    %14 = vector.broadcast %cst_5 : f32 to vector<8x1xf32>
    %15 = arith.addf %13, %14 : vector<8x1xf32>
    %16 = math.rsqrt %15 : vector<8x1xf32>
    %17 = vector.broadcast %16 : vector<8x1xf32> to vector<8x128xf32>
    %18 = arith.mulf %8, %17 : vector<8x128xf32>
    %c0_6 = arith.constant 0 : index
    %c0_7 = arith.constant 0 : index
    %19 = vector.load %arg2[%c0_6, %c0_7] : memref<1x128xbf16, #tpu.memory_space<vmem>>, vector<1x128xbf16>
    %20 = arith.extf %19 : vector<1x128xbf16> to vector<1x128xf32>
    %21 = vector.broadcast %20 : vector<1x128xf32> to vector<8x128xf32>
    %22 = arith.mulf %18, %21 : vector<8x128xf32>
    %c0_8 = arith.constant 0 : index
    %c0_9 = arith.constant 0 : index
    %23 = vector.load %arg3[%c0_8, %c0_9] : memref<1x128xbf16, #tpu.memory_space<vmem>>, vector<1x128xbf16>
    %24 = arith.extf %23 : vector<1x128xbf16> to vector<1x128xf32>
    %25 = vector.broadcast %24 : vector<1x128xf32> to vector<8x128xf32>
    %26 = arith.addf %22, %25 : vector<8x128xf32>
    %27 = arith.truncf %26 : vector<8x128xf32> to vector<8x128xbf16>
    %c0_10 = arith.constant 0 : index
    %c0_11 = arith.constant 0 : index
    %28 = vector.load %arg4[%c0_10, %c0_11] : memref<128x384xbf16, #tpu.memory_space<vmem>>, vector<128x384xbf16>
    %cst_12 = arith.constant dense<0.000000e+00> : vector<8x384xf32>
    %29 = tpu.matmul %27, %28, %cst_12 {dimension_numbers = #tpu.dot_dimension_numbers<[1], [0], [0], [1], [0, 0, 1, 1], [], []>} : vector<8x128xbf16>, vector<128x384xbf16>, vector<8x384xf32> -> vector<8x384xf32>
    %c0_13 = arith.constant 0 : index
    %c0_14 = arith.constant 0 : index
    %30 = vector.load %arg5[%c0_13, %c0_14] : memref<1x384xbf16, #tpu.memory_space<vmem>>, vector<1x384xbf16>
    %31 = arith.extf %30 : vector<1x384xbf16> to vector<1x384xf32>
    %32 = vector.broadcast %31 : vector<1x384xf32> to vector<8x384xf32>
    %33 = arith.addf %29, %32 : vector<8x384xf32>
    %34 = arith.truncf %33 : vector<8x384xf32> to vector<8x384xbf16>
    %35 = vector.extract_strided_slice %34 {offsets = [0, 0], sizes = [8, 128], strides = [1, 1]} : vector<8x384xbf16> to vector<8x128xbf16>
    %36 = tpu.transpose %35, [1, 0] : vector<8x128xbf16> -> vector<128x8xbf16>
    %37 = vector.shape_cast %36 : vector<128x8xbf16> to vector<4x32x8xbf16>
    %38 = tpu.transpose %37, [0, 2, 1] : vector<4x32x8xbf16> -> vector<4x8x32xbf16>
    %39 = vector.extract_strided_slice %34 {offsets = [0, 128], sizes = [8, 128], strides = [1, 1]} : vector<8x384xbf16> to vector<8x128xbf16>
    %40 = tpu.transpose %39, [1, 0] : vector<8x128xbf16> -> vector<128x8xbf16>
    %41 = vector.shape_cast %40 : vector<128x8xbf16> to vector<4x32x8xbf16>
    %42 = tpu.transpose %41, [0, 2, 1] : vector<4x32x8xbf16> -> vector<4x8x32xbf16>
    %43 = vector.extract_strided_slice %34 {offsets = [0, 256], sizes = [8, 128], strides = [1, 1]} : vector<8x384xbf16> to vector<8x128xbf16>
    %44 = tpu.transpose %43, [1, 0] : vector<8x128xbf16> -> vector<128x8xbf16>
    %45 = vector.shape_cast %44 : vector<128x8xbf16> to vector<4x32x8xbf16>
    %46 = tpu.transpose %45, [0, 2, 1] : vector<4x32x8xbf16> -> vector<4x8x32xbf16>
    "tpu.trace_start"() <{level = 10 : i32, message = "hqd,hkd->hqk"}> : () -> ()
    %cst_15 = arith.constant dense<0.000000e+00> : vector<4x8x8xf32>
    %47 = tpu.matmul %38, %42, %cst_15 {dimension_numbers = #tpu.dot_dimension_numbers<[2], [2], [1], [1], [0, 0, 0, 1, 1, 1], [0], [0]>} : vector<4x8x32xbf16>, vector<4x8x32xbf16>, vector<4x8x8xf32> -> vector<4x8x8xf32>
    "tpu.trace_stop"() : () -> ()
    %48 = tpu.iota {dimensions = array<i32: 1>} : vector<4x8x8xi32>
    %49 = tpu.iota {dimensions = array<i32: 2>} : vector<4x8x8xi32>
    %50 = arith.cmpi sle, %49, %48 : vector<4x8x8xi32>
    %cst_16 = arith.constant -1.000000e+30 : f32
    %51 = vector.broadcast %cst_16 : f32 to vector<4x8x8xf32>
    %52 = arith.select %50, %47, %51 : vector<4x8x8xi1>, vector<4x8x8xf32>
    %cst_17 = arith.constant dense<0xFF800000> : vector<4x8xf32>
    %53 = vector.multi_reduction <maximumf>, %52, %cst_17 [2] : vector<4x8x8xf32> to vector<4x8xf32>
    %54 = vector.shape_cast %53 : vector<4x8xf32> to vector<4x8x1xf32>
    %55 = vector.broadcast %54 : vector<4x8x1xf32> to vector<4x8x8xf32>
    %56 = arith.subf %52, %55 : vector<4x8x8xf32>
    %57 = math.exp %56 : vector<4x8x8xf32>
    %cst_18 = arith.constant dense<0.000000e+00> : vector<4x8xf32>
    %58 = vector.multi_reduction <add>, %57, %cst_18 [2] : vector<4x8x8xf32> to vector<4x8xf32>
    %59 = vector.shape_cast %58 : vector<4x8xf32> to vector<4x8x1xf32>
    %60 = arith.truncf %57 : vector<4x8x8xf32> to vector<4x8x8xbf16>
    "tpu.trace_start"() <{level = 10 : i32, message = "hqk,hkd->hqd"}> : () -> ()
    %cst_19 = arith.constant dense<0.000000e+00> : vector<4x8x32xf32>
    %61 = tpu.matmul %60, %46, %cst_19 {dimension_numbers = #tpu.dot_dimension_numbers<[2], [1], [1], [2], [0, 0, 0, 1, 1, 2], [0], [0]>} : vector<4x8x8xbf16>, vector<4x8x32xbf16>, vector<4x8x32xf32> -> vector<4x8x32xf32>
    "tpu.trace_stop"() : () -> ()
    %62 = vector.broadcast %59 : vector<4x8x1xf32> to vector<4x8x32xf32>
    %63 = arith.divf %61, %62 : vector<4x8x32xf32>
    %64 = arith.truncf %63 : vector<4x8x32xf32> to vector<4x8x32xbf16>
    %c0_20 = arith.constant 0 : index
    %c0_21 = arith.constant 0 : index
    %65 = vector.load %arg6[%c0_20, %c0_21] : memref<128x128xbf16, #tpu.memory_space<vmem>>, vector<128x128xbf16>
    %66 = vector.shape_cast %65 : vector<128x128xbf16> to vector<4x32x128xbf16>
    "tpu.trace_start"() <{level = 10 : i32, message = "hqd,hde->hqe"}> : () -> ()
    %cst_22 = arith.constant dense<0.000000e+00> : vector<4x8x128xf32>
    %67 = tpu.matmul %64, %66, %cst_22 {dimension_numbers = #tpu.dot_dimension_numbers<[2], [1], [1], [2], [0, 0, 0, 1, 1, 2], [0], [0]>} : vector<4x8x32xbf16>, vector<4x32x128xbf16>, vector<4x8x128xf32> -> vector<4x8x128xf32>
    "tpu.trace_stop"() : () -> ()
    %cst_23 = arith.constant dense<0.000000e+00> : vector<8x128xf32>
    %68 = vector.multi_reduction <add>, %67, %cst_23 [0] : vector<4x8x128xf32> to vector<8x128xf32>
    %c0_24 = arith.constant 0 : index
    %c0_25 = arith.constant 0 : index
    %69 = vector.load %arg7[%c0_24, %c0_25] : memref<1x128xbf16, #tpu.memory_space<vmem>>, vector<1x128xbf16>
    %70 = arith.extf %69 : vector<1x128xbf16> to vector<1x128xf32>
    %71 = vector.broadcast %70 : vector<1x128xf32> to vector<8x128xf32>
    %72 = arith.addf %68, %71 : vector<8x128xf32>
    %73 = arith.addf %72, %2 : vector<8x128xf32>
    %cst_26 = arith.constant dense<0.000000e+00> : vector<8xf32>
    %74 = vector.multi_reduction <add>, %73, %cst_26 [1] : vector<8x128xf32> to vector<8xf32>
    %75 = vector.shape_cast %74 : vector<8xf32> to vector<8x1xf32>
    %cst_27 = arith.constant 1.280000e+02 : f32
    %76 = vector.broadcast %cst_27 : f32 to vector<8x1xf32>
    %77 = arith.divf %75, %76 : vector<8x1xf32>
    %78 = vector.broadcast %77 : vector<8x1xf32> to vector<8x128xf32>
    %79 = arith.subf %73, %78 : vector<8x128xf32>
    %80 = arith.mulf %79, %79 : vector<8x128xf32>
    %cst_28 = arith.constant dense<0.000000e+00> : vector<8xf32>
    %81 = vector.multi_reduction <add>, %80, %cst_28 [1] : vector<8x128xf32> to vector<8xf32>
    %82 = vector.shape_cast %81 : vector<8xf32> to vector<8x1xf32>
    %cst_29 = arith.constant 1.280000e+02 : f32
    %83 = vector.broadcast %cst_29 : f32 to vector<8x1xf32>
    %84 = arith.divf %82, %83 : vector<8x1xf32>
    %cst_30 = arith.constant 9.99999974E-6 : f32
    %85 = vector.broadcast %cst_30 : f32 to vector<8x1xf32>
    %86 = arith.addf %84, %85 : vector<8x1xf32>
    %87 = math.rsqrt %86 : vector<8x1xf32>
    %88 = vector.broadcast %87 : vector<8x1xf32> to vector<8x128xf32>
    %89 = arith.mulf %79, %88 : vector<8x128xf32>
    %c0_31 = arith.constant 0 : index
    %c0_32 = arith.constant 0 : index
    %90 = vector.load %arg8[%c0_31, %c0_32] : memref<1x128xbf16, #tpu.memory_space<vmem>>, vector<1x128xbf16>
    %91 = arith.extf %90 : vector<1x128xbf16> to vector<1x128xf32>
    %92 = vector.broadcast %91 : vector<1x128xf32> to vector<8x128xf32>
    %93 = arith.mulf %89, %92 : vector<8x128xf32>
    %c0_33 = arith.constant 0 : index
    %c0_34 = arith.constant 0 : index
    %94 = vector.load %arg9[%c0_33, %c0_34] : memref<1x128xbf16, #tpu.memory_space<vmem>>, vector<1x128xbf16>
    %95 = arith.extf %94 : vector<1x128xbf16> to vector<1x128xf32>
    %96 = vector.broadcast %95 : vector<1x128xf32> to vector<8x128xf32>
    %97 = arith.addf %93, %96 : vector<8x128xf32>
    %98 = arith.truncf %97 : vector<8x128xf32> to vector<8x128xbf16>
    %c0_35 = arith.constant 0 : index
    %c0_36 = arith.constant 0 : index
    %99 = vector.load %arg10[%c0_35, %c0_36] : memref<128x192xbf16, #tpu.memory_space<vmem>>, vector<128x192xbf16>
    %cst_37 = arith.constant dense<0.000000e+00> : vector<8x192xf32>
    %100 = tpu.matmul %98, %99, %cst_37 {dimension_numbers = #tpu.dot_dimension_numbers<[1], [0], [0], [1], [0, 0, 1, 1], [], []>} : vector<8x128xbf16>, vector<128x192xbf16>, vector<8x192xf32> -> vector<8x192xf32>
    %c0_38 = arith.constant 0 : index
    %c0_39 = arith.constant 0 : index
    %101 = vector.load %arg11[%c0_38, %c0_39] : memref<1x192xbf16, #tpu.memory_space<vmem>>, vector<1x192xbf16>
    %102 = arith.extf %101 : vector<1x192xbf16> to vector<1x192xf32>
    %103 = vector.broadcast %102 : vector<1x192xf32> to vector<8x192xf32>
    %104 = arith.addf %100, %103 : vector<8x192xf32>
    %cst_40 = arith.constant 5.000000e-01 : f32
    %105 = vector.broadcast %cst_40 : f32 to vector<8x192xf32>
    %106 = arith.mulf %105, %104 : vector<8x192xf32>
    %cst_41 = arith.constant 0.797884583 : f32
    %107 = vector.broadcast %cst_41 : f32 to vector<8x192xf32>
    %108 = arith.mulf %107, %104 : vector<8x192xf32>
    %cst_42 = arith.constant 4.471500e-02 : f32
    %109 = vector.broadcast %cst_42 : f32 to vector<8x192xf32>
    %110 = arith.mulf %109, %104 : vector<8x192xf32>
    %111 = arith.mulf %110, %104 : vector<8x192xf32>
    %cst_43 = arith.constant 1.000000e+00 : f32
    %112 = vector.broadcast %cst_43 : f32 to vector<8x192xf32>
    %113 = arith.addf %112, %111 : vector<8x192xf32>
    %114 = arith.mulf %108, %113 : vector<8x192xf32>
    %115 = math.tanh %114 : vector<8x192xf32>
    %cst_44 = arith.constant 1.000000e+00 : f32
    %116 = vector.broadcast %cst_44 : f32 to vector<8x192xf32>
    %117 = arith.addf %116, %115 : vector<8x192xf32>
    %118 = arith.mulf %106, %117 : vector<8x192xf32>
    %119 = arith.truncf %118 : vector<8x192xf32> to vector<8x192xbf16>
    %c0_45 = arith.constant 0 : index
    %c0_46 = arith.constant 0 : index
    %120 = vector.load %arg12[%c0_45, %c0_46] : memref<192x128xbf16, #tpu.memory_space<vmem>>, vector<192x128xbf16>
    %cst_47 = arith.constant dense<0.000000e+00> : vector<8x128xf32>
    %121 = tpu.matmul %119, %120, %cst_47 {dimension_numbers = #tpu.dot_dimension_numbers<[1], [0], [0], [1], [0, 0, 1, 1], [], []>} : vector<8x192xbf16>, vector<192x128xbf16>, vector<8x128xf32> -> vector<8x128xf32>
    %c0_48 = arith.constant 0 : index
    %c0_49 = arith.constant 0 : index
    %122 = vector.load %arg13[%c0_48, %c0_49] : memref<1x128xbf16, #tpu.memory_space<vmem>>, vector<1x128xbf16>
    %123 = arith.extf %122 : vector<1x128xbf16> to vector<1x128xf32>
    %124 = vector.broadcast %123 : vector<1x128xf32> to vector<8x128xf32>
    %125 = arith.addf %121, %124 : vector<8x128xf32>
    %126 = arith.addf %125, %73 : vector<8x128xf32>
    %cst_50 = arith.constant dense<0.000000e+00> : vector<8xf32>
    %127 = vector.multi_reduction <add>, %126, %cst_50 [1] : vector<8x128xf32> to vector<8xf32>
    %128 = vector.shape_cast %127 : vector<8xf32> to vector<8x1xf32>
    %cst_51 = arith.constant 1.280000e+02 : f32
    %129 = vector.broadcast %cst_51 : f32 to vector<8x1xf32>
    %130 = arith.divf %128, %129 : vector<8x1xf32>
    %131 = vector.broadcast %130 : vector<8x1xf32> to vector<8x128xf32>
    %132 = arith.subf %126, %131 : vector<8x128xf32>
    %133 = arith.mulf %132, %132 : vector<8x128xf32>
    %cst_52 = arith.constant dense<0.000000e+00> : vector<8xf32>
    %134 = vector.multi_reduction <add>, %133, %cst_52 [1] : vector<8x128xf32> to vector<8xf32>
    %135 = vector.shape_cast %134 : vector<8xf32> to vector<8x1xf32>
    %cst_53 = arith.constant 1.280000e+02 : f32
    %136 = vector.broadcast %cst_53 : f32 to vector<8x1xf32>
    %137 = arith.divf %135, %136 : vector<8x1xf32>
    %cst_54 = arith.constant 9.99999974E-6 : f32
    %138 = vector.broadcast %cst_54 : f32 to vector<8x1xf32>
    %139 = arith.addf %137, %138 : vector<8x1xf32>
    %140 = math.rsqrt %139 : vector<8x1xf32>
    %141 = vector.broadcast %140 : vector<8x1xf32> to vector<8x128xf32>
    %142 = arith.mulf %132, %141 : vector<8x128xf32>
    %c0_55 = arith.constant 0 : index
    %c0_56 = arith.constant 0 : index
    %143 = vector.load %arg14[%c0_55, %c0_56] : memref<1x128xbf16, #tpu.memory_space<vmem>>, vector<1x128xbf16>
    %144 = arith.extf %143 : vector<1x128xbf16> to vector<1x128xf32>
    %145 = vector.broadcast %144 : vector<1x128xf32> to vector<8x128xf32>
    %146 = arith.mulf %142, %145 : vector<8x128xf32>
    %c0_57 = arith.constant 0 : index
    %c0_58 = arith.constant 0 : index
    %147 = vector.load %arg15[%c0_57, %c0_58] : memref<1x128xbf16, #tpu.memory_space<vmem>>, vector<1x128xbf16>
    %148 = arith.extf %147 : vector<1x128xbf16> to vector<1x128xf32>
    %149 = vector.broadcast %148 : vector<1x128xf32> to vector<8x128xf32>
    %150 = arith.addf %146, %149 : vector<8x128xf32>
    %151 = arith.truncf %150 : vector<8x128xf32> to vector<8x128xbf16>
    %c0_59 = arith.constant 0 : index
    %c0_60 = arith.constant 0 : index
    %c0_61 = arith.constant 0 : index
    %152 = vector.load %arg16[%c0_59, %c0_60, %c0_61] : memref<1x8x128xbf16, #tpu.memory_space<vmem>>, vector<1x8x128xbf16>
    %153 = vector.shape_cast %152 : vector<1x8x128xbf16> to vector<8x128xbf16>
    %154 = vector.shape_cast %151 : vector<8x128xbf16> to vector<1x8x128xbf16>
    tpu.vector_store %arg16[%c0_59, %c0_60, %c0_61], %154 {strides = array<i32>} : memref<1x8x128xbf16, #tpu.memory_space<vmem>>, vector<1x8x128xbf16>,
    return
  }
  func.func @transform_0(%arg0: i32) -> (i32, i32, i32) {
    %c0_i32 = arith.constant 0 : i32
    %c0_i32_0 = arith.constant 0 : i32
    %c0_i32_1 = arith.constant 0 : i32
    return %arg0, %c0_i32, %c0_i32_0 : i32, i32, i32
  }
  func.func @transform_1(%arg0: i32) -> (i32, i32) {
    %c0_i32 = arith.constant 0 : i32
    %c0_i32_0 = arith.constant 0 : i32
    %c0_i32_1 = arith.constant 0 : i32
    return %c0_i32, %c0_i32_0 : i32, i32
  }
  func.func @transform_2(%arg0: i32) -> (i32, i32) {
    %c0_i32 = arith.constant 0 : i32
    %c0_i32_0 = arith.constant 0 : i32
    %c0_i32_1 = arith.constant 0 : i32
    return %c0_i32, %c0_i32_0 : i32, i32
  }
  func.func @transform_3(%arg0: i32) -> (i32, i32) {
    %c0_i32 = arith.constant 0 : i32
    %c0_i32_0 = arith.constant 0 : i32
    %c0_i32_1 = arith.constant 0 : i32
    return %c0_i32, %c0_i32_0 : i32, i32
  }
  func.func @transform_4(%arg0: i32) -> (i32, i32) {
    %c0_i32 = arith.constant 0 : i32
    %c0_i32_0 = arith.constant 0 : i32
    %c0_i32_1 = arith.constant 0 : i32
    return %c0_i32, %c0_i32_0 : i32, i32
  }
  func.func @transform_5(%arg0: i32) -> (i32, i32) {
    %c0_i32 = arith.constant 0 : i32
    %c0_i32_0 = arith.constant 0 : i32
    %c0_i32_1 = arith.constant 0 : i32
    return %c0_i32, %c0_i32_0 : i32, i32
  }
  func.func @transform_6(%arg0: i32) -> (i32, i32) {
    %c0_i32 = arith.constant 0 : i32
    %c0_i32_0 = arith.constant 0 : i32
    %c0_i32_1 = arith.constant 0 : i32
    return %c0_i32, %c0_i32_0 : i32, i32
  }
  func.func @transform_7(%arg0: i32) -> (i32, i32) {
    %c0_i32 = arith.constant 0 : i32
    %c0_i32_0 = arith.constant 0 : i32
    %c0_i32_1 = arith.constant 0 : i32
    return %c0_i32, %c0_i32_0 : i32, i32
  }
  func.func @transform_8(%arg0: i32) -> (i32, i32) {
    %c0_i32 = arith.constant 0 : i32
    %c0_i32_0 = arith.constant 0 : i32
    %c0_i32_1 = arith.constant 0 : i32
    return %c0_i32, %c0_i32_0 : i32, i32
  }
  func.func @transform_9(%arg0: i32) -> (i32, i32) {
    %c0_i32 = arith.constant 0 : i32
    %c0_i32_0 = arith.constant 0 : i32
    %c0_i32_1 = arith.constant 0 : i32
    return %c0_i32, %c0_i32_0 : i32, i32
  }
  func.func @transform_10(%arg0: i32) -> (i32, i32) {
    %c0_i32 = arith.constant 0 : i32
    %c0_i32_0 = arith.constant 0 : i32
    %c0_i32_1 = arith.constant 0 : i32
    return %c0_i32, %c0_i32_0 : i32, i32
  }
  func.func @transform_11(%arg0: i32) -> (i32, i32) {
    %c0_i32 = arith.constant 0 : i32
    %c0_i32_0 = arith.constant 0 : i32
    %c0_i32_1 = arith.constant 0 : i32
    return %c0_i32, %c0_i32_0 : i32, i32
  }
  func.func @transform_12(%arg0: i32) -> (i32, i32) {
    %c0_i32 = arith.constant 0 : i32
    %c0_i32_0 = arith.constant 0 : i32
    %c0_i32_1 = arith.constant 0 : i32
    return %c0_i32, %c0_i32_0 : i32, i32
  }
  func.func @transform_13(%arg0: i32) -> (i32, i32) {
    %c0_i32 = arith.constant 0 : i32
    %c0_i32_0 = arith.constant 0 : i32
    %c0_i32_1 = arith.constant 0 : i32
    return %c0_i32, %c0_i32_0 : i32, i32
  }
  func.func @transform_14(%arg0: i32) -> (i32, i32) {
    %c0_i32 = arith.constant 0 : i32
    %c0_i32_0 = arith.constant 0 : i32
    %c0_i32_1 = arith.constant 0 : i32
    return %c0_i32, %c0_i32_0 : i32, i32
  }
  func.func @transform_15(%arg0: i32) -> (i32, i32, i32) {
    %c0_i32 = arith.constant 0 : i32
    %c0_i32_0 = arith.constant 0 : i32
    %c0_i32_1 = arith.constant 0 : i32
    return %arg0, %c0_i32, %c0_i32_0 : i32, i32, i32
  }
}

</mosaic_0001>

<bundles_post_ra>
// kernel: transformer_forward.3
= control target key start
LH: loop header
LB: loop body
LE: loop exit
PB: predicated region body
PF: predicated region fallthrough
CT: control target
= control target key end

     0   :  { %s4219_s0 = inlined_call_operand.hbm [shape: bf16[2,8,128], index: 0, kind: input, shape index: {}]   ;;  %s4220_s1 = inlined_call_operand.hbm [shape: bf16[1,128], index: 1, kind: input, shape index: {}]   ;;  %s4221_s2 = inlined_call_operand.hbm [shape: bf16[1,128], index: 2, kind: input, shape index: {}]   ;;  %s4222_s3 = inlined_call_operand.hbm [shape: bf16[128,384], index: 3, kind: input, shape index: {}]   ;;  %s4223_s4 = inlined_call_operand.hbm [shape: bf16[1,384], index: 4, kind: input, shape index: {}]   ;;  %s4224_s5 = inlined_call_operand.hbm [shape: bf16[128,128], index: 5, kind: input, shape index: {}]   ;;  %s4225_s6 = inlined_call_operand.hbm [shape: bf16[1,128], index: 6, kind: input, shape index: {}]   ;;  %s4226_s7 = inlined_call_operand.hbm [shape: bf16[1,128], index: 7, kind: input, shape index: {}]   ;;  %s4227_s8 = inlined_call_operand.hbm [shape: bf16[1,128], index: 8, kind: input, shape index: {}]   ;;  %s4228_s9 = inlined_call_operand.hbm [shape: bf16[128,192], index: 9, kind: input, shape index: {}]   ;;  %s4229_s10 = inlined_call_operand.hbm [shape: bf16[1,192], index: 10, kind: input, shape index: {}]   ;;  %s4230_s11 = inlined_call_operand.hbm [shape: bf16[192,128], index: 11, kind: input, shape index: {}]   ;;  %s4231_s12 = inlined_call_operand.hbm [shape: bf16[1,128], index: 12, kind: input, shape index: {}]   ;;  %s4232_s13 = inlined_call_operand.hbm [shape: bf16[1,128], index: 13, kind: input, shape index: {}]   ;;  %s4233_s14 = inlined_call_operand.hbm [shape: bf16[1,128], index: 14, kind: input, shape index: {}]   ;;  %s4234_s15 = inlined_call_operand.hbm [shape: bf16[2,8,128], index: 15, kind: output, shape index: {}]  }
   0x1   :  { %4248 = sst [smem:[#allocation41_spill]] %s4219_s0 }
   0x2   :  { %4249 = sst [smem:[#allocation42_spill]] %s4220_s1 }
   0x3   :  { %4250 = sst [smem:[#allocation43_spill]] %s4222_s3 }
   0x4   :  { %4251 = sst [smem:[#allocation44_spill]] %s4234_s15 }
   0x5   :  { %20 = vsyncpa [#allocation3], 0 }
   0x6   :  { %22 = vsyncpa [#allocation3 + $0x1], 0 }
   0x7   :  { %23 = vsyncpa [#allocation6], 0 }
   0x8   :  { %24 = vsyncpa [#allocation9], 0 }
   0x9   :  { %25 = vsyncpa [#allocation12], 0 }
   0xa   :  { %26 = vsyncpa [#allocation15], 0 }
   0xb   :  { %27 = vsyncpa [#allocation18], 0 }
   0xc   :  { %28 = vsyncpa [#allocation21], 0 }
   0xd   :  { %29 = vsyncpa [#allocation24], 0 }
   0xe   :  { %30 = vsyncpa [#allocation4], 0 }
   0xf   :  { %32 = vsyncpa [#allocation4 + $0x1], 0  ;;  %s3577_s18 = smov 0   ;;  %s3579_s19 = smov 0  }
  0x10   :  { %s3581_s20 = smov 0   ;;  %s3583_s21 = smov 0  }
  0x11 LB: > { %4252 = sst [smem:[#allocation36_spill]] %s3458_s18  ;;  %s3472_s22 = smov [#allocation5]   ;;  %s3470_s21 = sphi %s3583_s21, %s4301_s21   ;;  %s3466_s20 = sphi %s3581_s20, %s4300_s20   ;;  %s3462_s19 = sphi %s3579_s19, %s4299_s19   ;;  %s3458_s18 = sphi %s3577_s18, %s4298_s18  }
  0x12   : > { %4253 = sst [smem:[#allocation37_spill]] %s3462_s19  ;;  %s402_s23 = sshll.u32 %s3472_s22, 4  ;;  %s3603_s23 = int_to_ptr.vmem [resolvable:$true] %s402_s23 }
  0x13   : > { %4254 = sst [smem:[#allocation38_spill]] %s3466_s20  ;;  %s3598_s24 = sadd.s32 4294967295, %s3470_s21  }
  0x14   : > { %4255 = sst [smem:[#allocation39_spill]] %s3598_s24  ;;  %p2383_p0 = scmp.ge.s32.totalorder %s3470_s21, 1 }
  0x15   : > { %p4243_p1 = scmp.eq.s32.totalorder %s3598_s24, 0  ;;  %p389_p2 = scmp.lt.s32.totalorder %s3470_s21, 3 }
  0x16   : > { %s3473_s26 = smov [#allocation8]   ;;  %s3474_s29 = smov [#allocation11]  }
  0x17   : > { %p3605_p3 = pnand %p2383_p0, %p389_p2  ;;  %s423_s27 = sshll.u32 %s3473_s26, 4  ;;  %s3612_s27 = int_to_ptr.vmem [resolvable:$true] %s423_s27 }
  0x18   : > { %s447_s30 = sshll.u32 %s3474_s29, 4  ;;  %s4259_s1 = sld [smem:[#allocation42_spill]]  ;;  %s3620_s30 = int_to_ptr.vmem [resolvable:$true] %s447_s30 }
  0x19   : > { %s4256_s25 = scalar_select %p3605_p3, 1, 0 }
  0x1a   : > { %p2716_p5 = pneg %p3605_p3 }
  0x1b   : > { %4257 = sst [smem:[#allocation40_spill]] %s4256_s25 }
  0x1c   : > { %p3616_p6 = pnand %p2716_p5, %p4243_p1 }
  0x1e   : > { %s2954_s22 = scalar_lea.hbm %s4259_s1, 16  ;;  %p3630_p8 = pneg %p3616_p6 }
  0x1f   : > { %p2955_p7 = scmp.ne.s32.totalorder %s4259_s1, %s2954_s22  ;;  %p2961_p11 = scmp.lt.u32.totalorder %s2954_s22, %s4259_s1 }
  0x21   : > { %p2957_p9 = pnand %p3630_p8, %p2955_p7 }
  0x23   : > { %p2958_p10 = pneg %p2957_p9 }
  0x25   : > { %p2963_p12 = pnand %p2961_p11, %p2958_p10 }
  0x27   : > { %2966 = shalt.err (!%p2963_p12)
}
  0x28   : > { %s2967_s15 = scalar_lea.vmem %s3603_s23, 16  ;;  %s2974_s25 = scalar_lea.vmem %s3603_s23, 32 }
  0x29   : > { %p2968_p13 = scmp.ne.s32.totalorder %s3603_s23, %s2967_s15  ;;  %p2975_p5 = scmp.lt.s32.totalorder %s3603_s23, %s3603_s23 }
  0x2a   : > { %p2976_p7 = scmp.lt.s32.totalorder %s2974_s25, %s2967_s15 }
  0x2b   : > { %p2970_p0 = pnand %p2968_p13, %p3630_p8 }
  0x2c   : > { %p2977_p9 = por %p2976_p7, %p2975_p5 }
  0x2d   : > { %p2971_p2 = pneg %p2970_p0 }
  0x2f   : > { %p2978_p4 = pnand %p2977_p9, %p2971_p2 }
  0x31   : > { %2981 = shalt.err (!%p2978_p4)
}
  0x32   : > { %2719 = dma.hbm_to_vmem [thread:$0]  (!%p3616_p6), %s4259_s1, 16, %s3603_s23, [#allocation6]  }
  0x33   : > { %s4261_s3 = sld [smem:[#allocation43_spill]] }
  0x39   : > { %s2982_s29 = scalar_lea.hbm %s4261_s3, 3072 }
  0x3a   : > { %p2983_p10 = scmp.ne.s32.totalorder %s4261_s3, %s2982_s29  ;;  %p2989_p4 = scmp.lt.u32.totalorder %s2982_s29, %s4261_s3 }
  0x3c   : > { %p2985_p11 = pnand %p2983_p10, %p3630_p8 }
  0x3e   : > { %p2986_p12 = pneg %p2985_p11 }
  0x40   : > { %p2991_p13 = pnand %p2989_p4, %p2986_p12 }
  0x42   : > { %2994 = shalt.err (!%p2991_p13)
}
  0x43   : > { %s2995_s23 = scalar_lea.vmem %s3612_s27, 3072  ;;  %p3003_p7 = scmp.lt.s32.totalorder %s3612_s27, %s3612_s27 }
  0x44   : > { %p2996_p0 = scmp.ne.s32.totalorder %s3612_s27, %s2995_s23  ;;  %p3004_p9 = scmp.lt.s32.totalorder %s2995_s23, %s2995_s23 }
  0x46   : > { %p2998_p2 = pnand %p2996_p0, %p3630_p8  ;;  %p3005_p10 = por %p3004_p9, %p3003_p7 }
  0x48   : > { %p2999_p5 = pneg %p2998_p2 }
  0x4a   : > { %p3006_p11 = pnand %p3005_p10, %p2999_p5 }
  0x4c   : > { %3009 = shalt.err (!%p3006_p11)
}
  0x4d   : > { %s3475_s18 = smov 192   ;;  %s3476_s24 = smov 12  }
  0x4e   : > { %2725 = dma.hbm_to_vmem [thread:$0]  (!%p3616_p6), %s4261_s3, 3072, %s3612_s27, [#allocation9], %s3475_s18, %s3475_s18, %s3476_s24  }
  0x4f   : > { %s3010_s29 = scalar_lea.hbm %s4224_s5, 1024 }
  0x50   : > { %p3011_p12 = scmp.ne.s32.totalorder %s4224_s5, %s3010_s29  ;;  %p3017_p0 = scmp.lt.u32.totalorder %s3010_s29, %s4224_s5 }
  0x52   : > { %p3013_p4 = pnand %p3011_p12, %p3630_p8 }
  0x54   : > { %p3014_p13 = pneg %p3013_p4 }
  0x56   : > { %p3019_p2 = pnand %p3017_p0, %p3014_p13 }
  0x58   : > { %3022 = shalt.err (!%p3019_p2)
}
  0x59   : > { %s3023_s27 = scalar_lea.vmem %s3620_s30, 1024  ;;  %p3031_p10 = scmp.lt.s32.totalorder %s3620_s30, %s3620_s30 }
  0x5a   : > { %p3024_p5 = scmp.ne.s32.totalorder %s3620_s30, %s3023_s27  ;;  %p3032_p11 = scmp.lt.s32.totalorder %s3023_s27, %s3023_s27 }
  0x5c   : > { %p3026_p7 = pnand %p3024_p5, %p3630_p8  ;;  %p3033_p12 = por %p3032_p11, %p3031_p10 }
  0x5e   : > { %p3027_p9 = pneg %p3026_p7 }
  0x60   : > { %p3034_p4 = pnand %p3033_p12, %p3027_p9 }
  0x62   : > { %3037 = shalt.err (!%p3034_p4)
}
  0x63   : > { %s4245_s18 = smov 64   ;;  %s4246_s1 = smov 4  }
  0x64   : > { %2731 = dma.hbm_to_vmem [thread:$0]  (!%p3616_p6), %s4224_s5, 1024, %s3620_s30, [#allocation12], %s4245_s18, %s4245_s18, %s4246_s1  }
  0x65   : > { %s3479_s16 = smov [#allocation14]   ;;  %s3480_s22 = smov [#allocation17]  }
  0x66   : > { %s472_s17 = sshll.u32 %s3479_s16, 4  ;;  %s493_s29 = sshll.u32 %s3480_s22, 4  ;;  %s473_s17 = int_to_ptr.vmem [resolvable:$true] %s472_s17  ;;  %s494_s29 = int_to_ptr.vmem [resolvable:$true] %s493_s29 }
  0x67   : > { %s3038_s23 = scalar_lea.hbm %s4226_s7, 16 }
  0x68   : > { %p3039_p13 = scmp.ne.s32.totalorder %s4226_s7, %s3038_s23  ;;  %p3045_p5 = scmp.lt.u32.totalorder %s3038_s23, %s4226_s7 }
  0x6a   : > { %p3041_p0 = pnand %p3039_p13, %p3630_p8 }
  0x6c   : > { %p3042_p2 = pneg %p3041_p0 }
  0x6e   : > { %p3047_p7 = pnand %p3045_p5, %p3042_p2 }
  0x70   : > { %3050 = shalt.err (!%p3047_p7)
}
  0x71   : > { %s3051_s30 = scalar_lea.vmem %s473_s17, 16  ;;  %s3058_s24 = scalar_lea.vmem %s473_s17, 32 }
  0x72   : > { %p3052_p9 = scmp.ne.s32.totalorder %s473_s17, %s3051_s30  ;;  %p3059_p12 = scmp.lt.s32.totalorder %s473_s17, %s473_s17 }
  0x73   : > { %p3060_p4 = scmp.lt.s32.totalorder %s3058_s24, %s3051_s30 }
  0x74   : > { %p3054_p10 = pnand %p3052_p9, %p3630_p8 }
  0x75   : > { %p3061_p1 = por %p3060_p4, %p3059_p12 }
  0x76   : > { %p3055_p11 = pneg %p3054_p10 }
  0x78   : > { %p3062_p3 = pnand %p3061_p1, %p3055_p11 }
  0x7a   : > { %3065 = shalt.err (!%p3062_p3)
}
  0x7b   : > { %2737 = dma.hbm_to_vmem [thread:$0]  (!%p3616_p6), %s4226_s7, 16, %s473_s17, [#allocation15]  }
  0x7c   : > { %s3066_s16 = scalar_lea.hbm %s4228_s9, 2048 }
  0x7d   : > { %p3067_p13 = scmp.ne.s32.totalorder %s4228_s9, %s3066_s16  ;;  %p3073_p3 = scmp.lt.u32.totalorder %s3066_s16, %s4228_s9 }
  0x7f   : > { %p3069_p0 = pnand %p3067_p13, %p3630_p8 }
  0x81   : > { %p3070_p1 = pneg %p3069_p0 }
  0x83   : > { %p3075_p2 = pnand %p3073_p3, %p3070_p1 }
  0x85   : > { %3078 = shalt.err (!%p3075_p2)
}
  0x86   : > { %s3079_s27 = scalar_lea.vmem %s494_s29, 2048  ;;  %p3087_p10 = scmp.lt.s32.totalorder %s494_s29, %s494_s29 }
  0x87   : > { %p3080_p5 = scmp.ne.s32.totalorder %s494_s29, %s3079_s27  ;;  %p3088_p11 = scmp.lt.s32.totalorder %s3079_s27, %s3079_s27 }
  0x89   : > { %p3082_p7 = pnand %p3080_p5, %p3630_p8  ;;  %p3089_p12 = por %p3088_p11, %p3087_p10 }
  0x8b   : > { %p3083_p9 = pneg %p3082_p7 }
  0x8d   : > { %p3090_p4 = pnand %p3089_p12, %p3083_p9 }
  0x8f   : > { %3093 = shalt.err (!%p3090_p4)
}
  0x90   : > { %s3481_s17 = smov 128   ;;  %s3482_s30 = smov 8  }
  0x91   : > { %2743 = dma.hbm_to_vmem [thread:$0]  (!%p3616_p6), %s4228_s9, 2048, %s494_s29, [#allocation18], %s3481_s17, %s3481_s17, %s3482_s30  }
  0x92   : > { %s3483_s0 = smov [#allocation20]   ;;  %s3484_s20 = smov [#allocation23]  }
  0x93   : > { %s517_s19 = sshll.u32 %s3483_s0, 4  ;;  %s542_s16 = sshll.u32 %s3484_s20, 4  ;;  %s518_s19 = int_to_ptr.vmem [resolvable:$true] %s517_s19  ;;  %s543_s16 = int_to_ptr.vmem [resolvable:$true] %s542_s16 }
  0x94   : > { %s3094_s25 = scalar_lea.hbm %s4230_s11, 1536 }
  0x95   : > { %p3095_p13 = scmp.ne.s32.totalorder %s4230_s11, %s3094_s25  ;;  %p3101_p3 = scmp.lt.u32.totalorder %s3094_s25, %s4230_s11 }
  0x97   : > { %p3097_p0 = pnand %p3095_p13, %p3630_p8 }
  0x99   : > { %p3098_p1 = pneg %p3097_p0 }
  0x9b   : > { %p3103_p2 = pnand %p3101_p3, %p3098_p1 }
  0x9d   : > { %3106 = shalt.err (!%p3103_p2)
}
  0x9e   : > { %s3107_s29 = scalar_lea.vmem %s518_s19, 1536  ;;  %p3115_p10 = scmp.lt.s32.totalorder %s518_s19, %s518_s19 }
  0x9f   : > { %p3108_p5 = scmp.ne.s32.totalorder %s518_s19, %s3107_s29  ;;  %p3116_p11 = scmp.lt.s32.totalorder %s3107_s29, %s3107_s29 }
  0xa1   : > { %p3110_p7 = pnand %p3108_p5, %p3630_p8  ;;  %p3117_p12 = por %p3116_p11, %p3115_p10 }
  0xa3   : > { %p3111_p9 = pneg %p3110_p7 }
  0xa5   : > { %p3118_p4 = pnand %p3117_p12, %p3111_p9 }
  0xa7   : > { %3121 = shalt.err (!%p3118_p4)
}
  0xa8   : > { %s4262_s17 = smov 4   ;;  %s4263_s30 = smov 64  }
  0xa9   : > { %2749 = dma.hbm_to_vmem [thread:$0]  (!%p3616_p6), %s4230_s11, 1536, %s518_s19, [#allocation21], %s4263_s30, %s4263_s30, %s4262_s17  }
  0xaa   : > { %s3122_s0 = scalar_lea.hbm %s4232_s13, 16 }
  0xab   : > { %p3123_p13 = scmp.ne.s32.totalorder %s4232_s13, %s3122_s0  ;;  %p3129_p3 = scmp.lt.u32.totalorder %s3122_s0, %s4232_s13 }
  0xad   : > { %p3125_p0 = pnand %p3123_p13, %p3630_p8 }
  0xaf   : > { %p3126_p1 = pneg %p3125_p0 }
  0xb1   : > { %p3131_p2 = pnand %p3129_p3, %p3126_p1 }
  0xb3   : > { %3134 = shalt.err (!%p3131_p2)
}
  0xb4   : > { %s3135_s23 = scalar_lea.vmem %s543_s16, 16  ;;  %s3142_s19 = scalar_lea.vmem %s543_s16, 32 }
  0xb5   : > { %p3136_p5 = scmp.ne.s32.totalorder %s543_s16, %s3135_s23  ;;  %p3143_p10 = scmp.lt.s32.totalorder %s543_s16, %s543_s16 }
  0xb6   : > { %p3144_p11 = scmp.lt.s32.totalorder %s3142_s19, %s3135_s23 }
  0xb7   : > { %p3138_p7 = pnand %p3136_p5, %p3630_p8 }
  0xb8   : > { %p3145_p12 = por %p3144_p11, %p3143_p10 }
  0xb9   : > { %p3139_p9 = pneg %p3138_p7 }
  0xbb   : > { %p3146_p4 = pnand %p3145_p12, %p3139_p9 }
  0xbd   : > { %3149 = shalt.err (!%p3146_p4)
}
  0xbe   : > { %2755 = dma.hbm_to_vmem [thread:$0]  (!%p3616_p6), %s4232_s13, 16, %s543_s16, [#allocation24]  }
  0xbf   : > { %s3485_s17 = smov [#allocation7]   ;;  %s3486_s18 = smov [#allocation10]  }
  0xc0   : > { %s413_s30 = sshll.u32 %s3485_s17, 4  ;;  %s437_s1 = sshll.u32 %s3486_s18, 4  ;;  %s414_s30 = int_to_ptr.vmem [resolvable:$true] %s413_s30  ;;  %s438_s1 = int_to_ptr.vmem [resolvable:$true] %s437_s1 }
  0xc1   : > { %s3150_s0 = scalar_lea.hbm %s4221_s2, 16 }
  0xc2   : > { %p3151_p13 = scmp.ne.s32.totalorder %s4221_s2, %s3150_s0  ;;  %p3157_p3 = scmp.lt.u32.totalorder %s3150_s0, %s4221_s2 }
  0xc4   : > { %p3153_p0 = pnand %p3151_p13, %p3630_p8 }
  0xc6   : > { %p3154_p1 = pneg %p3153_p0 }
  0xc8   : > { %p3159_p2 = pnand %p3157_p3, %p3154_p1 }
  0xca   : > { %3162 = shalt.err (!%p3159_p2)
}
  0xcb   : > { %s3163_s16 = scalar_lea.vmem %s414_s30, 16  ;;  %s3170_s23 = scalar_lea.vmem %s414_s30, 32 }
  0xcc   : > { %p3164_p5 = scmp.ne.s32.totalorder %s414_s30, %s3163_s16  ;;  %p3171_p10 = scmp.lt.s32.totalorder %s414_s30, %s414_s30 }
  0xcd   : > { %p3172_p11 = scmp.lt.s32.totalorder %s3170_s23, %s3163_s16 }
  0xce   : > { %p3166_p7 = pnand %p3164_p5, %p3630_p8 }
  0xcf   : > { %p3173_p12 = por %p3172_p11, %p3171_p10 }
  0xd0   : > { %p3167_p9 = pneg %p3166_p7 }
  0xd2   : > { %p3174_p4 = pnand %p3173_p12, %p3167_p9 }
  0xd4   : > { %3177 = shalt.err (!%p3174_p4)
}
  0xd5   : > { %2722 = dma.hbm_to_vmem [thread:$0]  (!%p3616_p6), %s4221_s2, 16, %s414_s30, [#allocation6]  }
  0xd6   : > { %s3178_s18 = scalar_lea.hbm %s4223_s4, 48 }
  0xd7   : > { %p3179_p13 = scmp.ne.s32.totalorder %s4223_s4, %s3178_s18  ;;  %p3185_p3 = scmp.lt.u32.totalorder %s3178_s18, %s4223_s4 }
  0xd9   : > { %p3181_p0 = pnand %p3179_p13, %p3630_p8 }
  0xdb   : > { %p3182_p1 = pneg %p3181_p0 }
  0xdd   : > { %p3187_p2 = pnand %p3185_p3, %p3182_p1 }
  0xdf   : > { %3190 = shalt.err (!%p3187_p2)
}
  0xe0   : > { %s3191_s22 = scalar_lea.vmem %s438_s1, 48  ;;  %s3198_s30 = scalar_lea.vmem %s438_s1, 64 }
  0xe1   : > { %p3192_p5 = scmp.ne.s32.totalorder %s438_s1, %s3191_s22  ;;  %p3199_p10 = scmp.lt.s32.totalorder %s438_s1, %s438_s1 }
  0xe2   : > { %p3200_p11 = scmp.lt.s32.totalorder %s3198_s30, %s3191_s22 }
  0xe3   : > { %p3194_p7 = pnand %p3192_p5, %p3630_p8 }
  0xe4   : > { %p3201_p12 = por %p3200_p11, %p3199_p10 }
  0xe5   : > { %p3195_p9 = pneg %p3194_p7 }
  0xe7   : > { %p3202_p4 = pnand %p3201_p12, %p3195_p9 }
  0xe9   : > { %3205 = shalt.err (!%p3202_p4)
}
  0xea   : > { %2728 = dma.hbm_to_vmem [thread:$0]  (!%p3616_p6), %s4223_s4, 48, %s438_s1, [#allocation9]  }
  0xeb   : > { %s3487_s16 = smov [#allocation13]   ;;  %s3488_s19 = smov [#allocation16]  }
  0xec   : > { %s461_s23 = sshll.u32 %s3487_s16, 4  ;;  %s483_s27 = sshll.u32 %s3488_s19, 4  ;;  %s462_s23 = int_to_ptr.vmem [resolvable:$true] %s461_s23  ;;  %s484_s27 = int_to_ptr.vmem [resolvable:$true] %s483_s27 }
  0xed   : > { %s3206_s18 = scalar_lea.hbm %s4225_s6, 16 }
  0xee   : > { %p3207_p13 = scmp.ne.s32.totalorder %s4225_s6, %s3206_s18  ;;  %p3213_p3 = scmp.lt.u32.totalorder %s3206_s18, %s4225_s6 }
  0xf0   : > { %p3209_p0 = pnand %p3207_p13, %p3630_p8 }
  0xf2   : > { %p3210_p1 = pneg %p3209_p0 }
  0xf4   : > { %p3215_p2 = pnand %p3213_p3, %p3210_p1 }
  0xf6   : > { %3218 = shalt.err (!%p3215_p2)
}
  0xf7   : > { %s3219_s1 = scalar_lea.vmem %s462_s23, 16  ;;  %s3226_s22 = scalar_lea.vmem %s462_s23, 32 }
  0xf8   : > { %p3220_p5 = scmp.ne.s32.totalorder %s462_s23, %s3219_s1  ;;  %p3227_p10 = scmp.lt.s32.totalorder %s462_s23, %s462_s23 }
  0xf9   : > { %p3228_p11 = scmp.lt.s32.totalorder %s3226_s22, %s3219_s1 }
  0xfa   : > { %p3222_p7 = pnand %p3220_p5, %p3630_p8 }
  0xfb   : > { %p3229_p12 = por %p3228_p11, %p3227_p10 }
  0xfc   : > { %p3223_p9 = pneg %p3222_p7 }
  0xfe   : > { %p3230_p4 = pnand %p3229_p12, %p3223_p9 }
 0x100   : > { %3233 = shalt.err (!%p3230_p4)
}
 0x101   : > { %2734 = dma.hbm_to_vmem [thread:$0]  (!%p3616_p6), %s4225_s6, 16, %s462_s23, [#allocation12]  }
 0x102   : > { %s3234_s19 = scalar_lea.hbm %s4227_s8, 16 }
 0x103   : > { %p3235_p13 = scmp.ne.s32.totalorder %s4227_s8, %s3234_s19  ;;  %p3241_p3 = scmp.lt.u32.totalorder %s3234_s19, %s4227_s8 }
 0x105   : > { %p3237_p0 = pnand %p3235_p13, %p3630_p8 }
 0x107   : > { %p3238_p1 = pneg %p3237_p0 }
 0x109   : > { %p3243_p2 = pnand %p3241_p3, %p3238_p1 }
 0x10b   : > { %3246 = shalt.err (!%p3243_p2)
}
 0x10c   : > { %s3247_s3 = scalar_lea.vmem %s484_s27, 16  ;;  %s3254_s23 = scalar_lea.vmem %s484_s27, 32 }
 0x10d   : > { %p3248_p5 = scmp.ne.s32.totalorder %s484_s27, %s3247_s3  ;;  %p3255_p10 = scmp.lt.s32.totalorder %s484_s27, %s484_s27 }
 0x10e   : > { %p3256_p11 = scmp.lt.s32.totalorder %s3254_s23, %s3247_s3 }
 0x10f   : > { %p3250_p7 = pnand %p3248_p5, %p3630_p8 }
 0x110   : > { %p3257_p12 = por %p3256_p11, %p3255_p10 }
 0x111   : > { %p3251_p9 = pneg %p3250_p7 }
 0x113   : > { %p3258_p4 = pnand %p3257_p12, %p3251_p9 }
 0x115   : > { %3261 = shalt.err (!%p3258_p4)
}
 0x116   : > { %2740 = dma.hbm_to_vmem [thread:$0]  (!%p3616_p6), %s4227_s8, 16, %s484_s27, [#allocation15]  }
 0x117   : > { %s3489_s1 = smov [#allocation19]   ;;  %s3490_s30 = smov [#allocation22]  }
 0x118   : > { %s507_s22 = sshll.u32 %s3489_s1, 4  ;;  %s531_s15 = sshll.u32 %s3490_s30, 4  ;;  %s508_s22 = int_to_ptr.vmem [resolvable:$true] %s507_s22  ;;  %s532_s15 = int_to_ptr.vmem [resolvable:$true] %s531_s15 }
 0x119   : > { %s3262_s19 = scalar_lea.hbm %s4229_s10, 32 }
 0x11a   : > { %p3263_p13 = scmp.ne.s32.totalorder %s4229_s10, %s3262_s19  ;;  %p3269_p3 = scmp.lt.u32.totalorder %s3262_s19, %s4229_s10 }
 0x11c   : > { %p3265_p0 = pnand %p3263_p13, %p3630_p8 }
 0x11e   : > { %p3266_p1 = pneg %p3265_p0 }
 0x120   : > { %p3271_p2 = pnand %p3269_p3, %p3266_p1 }
 0x122   : > { %3274 = shalt.err (!%p3271_p2)
}
 0x123   : > { %s3275_s27 = scalar_lea.vmem %s508_s22, 32  ;;  %p3283_p10 = scmp.lt.s32.totalorder %s508_s22, %s508_s22 }
 0x124   : > { %p3276_p5 = scmp.ne.s32.totalorder %s508_s22, %s3275_s27  ;;  %p3284_p11 = scmp.lt.s32.totalorder %s3275_s27, %s3275_s27 }
 0x126   : > { %p3278_p7 = pnand %p3276_p5, %p3630_p8  ;;  %p3285_p12 = por %p3284_p11, %p3283_p10 }
 0x128   : > { %p3279_p9 = pneg %p3278_p7 }
 0x12a   : > { %p3286_p4 = pnand %p3285_p12, %p3279_p9 }
 0x12c   : > { %3289 = shalt.err (!%p3286_p4)
}
 0x12d   : > { %2746 = dma.hbm_to_vmem [thread:$0]  (!%p3616_p6), %s4229_s10, 32, %s508_s22, [#allocation18]  }
 0x12e   : > { %s3290_s1 = scalar_lea.hbm %s4231_s12, 16 }
 0x12f   : > { %p3291_p13 = scmp.ne.s32.totalorder %s4231_s12, %s3290_s1  ;;  %p3297_p3 = scmp.lt.u32.totalorder %s3290_s1, %s4231_s12 }
 0x131   : > { %p3293_p0 = pnand %p3291_p13, %p3630_p8 }
 0x133   : > { %p3294_p1 = pneg %p3293_p0 }
 0x135   : > { %p3299_p2 = pnand %p3297_p3, %p3294_p1 }
 0x137   : > { %3302 = shalt.err (!%p3299_p2)
}
 0x138   : > { %s3303_s29 = scalar_lea.vmem %s532_s15, 16  ;;  %s3310_s22 = scalar_lea.vmem %s532_s15, 32 }
 0x139   : > { %p3304_p5 = scmp.ne.s32.totalorder %s532_s15, %s3303_s29  ;;  %p3311_p10 = scmp.lt.s32.totalorder %s532_s15, %s532_s15 }
 0x13a   : > { %p3312_p11 = scmp.lt.s32.totalorder %s3310_s22, %s3303_s29 }
 0x13b   : > { %p3306_p7 = pnand %p3304_p5, %p3630_p8 }
 0x13c   : > { %p3313_p12 = por %p3312_p11, %p3311_p10 }
 0x13d   : > { %p3307_p9 = pneg %p3306_p7 }
 0x13f   : > { %p3314_p4 = pnand %p3313_p12, %p3307_p9 }
 0x141   : > { %3317 = shalt.err (!%p3314_p4)
}
 0x142   : > { %2752 = dma.hbm_to_vmem [thread:$0]  (!%p3616_p6), %s4231_s12, 16, %s532_s15, [#allocation21]  }
 0x143   : > { %s3491_s24 = smov [#allocation25]   ;;  %s3318_s0 = scalar_lea.hbm %s4233_s14, 16 }
 0x144   : > { %s553_s27 = sshll.u32 %s3491_s24, 4  ;;  %p3319_p13 = scmp.ne.s32.totalorder %s4233_s14, %s3318_s0  ;;  %s554_s27 = int_to_ptr.vmem [resolvable:$true] %s553_s27 }
 0x145   : > { %p3325_p3 = scmp.lt.u32.totalorder %s3318_s0, %s4233_s14 }
 0x146   : > { %p3321_p0 = pnand %p3319_p13, %p3630_p8 }
 0x148   : > { %p3322_p1 = pneg %p3321_p0 }
 0x14a   : > { %p3327_p2 = pnand %p3325_p3, %p3322_p1 }
 0x14c   : > { %3330 = shalt.err (!%p3327_p2)
}
 0x14d   : > { %s3331_s15 = scalar_lea.vmem %s554_s27, 16  ;;  %s3338_s16 = scalar_lea.vmem %s554_s27, 32 }
 0x14e   : > { %p3332_p5 = scmp.ne.s32.totalorder %s554_s27, %s3331_s15  ;;  %p3339_p10 = scmp.lt.s32.totalorder %s554_s27, %s554_s27 }
 0x14f   : > { %p3340_p11 = scmp.lt.s32.totalorder %s3338_s16, %s3331_s15 }
 0x150   : > { %p3334_p7 = pnand %p3332_p5, %p3630_p8 }
 0x151   : > { %p3341_p12 = por %p3340_p11, %p3339_p10 }
 0x152   : > { %p3335_p9 = pneg %p3334_p7 }
 0x154   : > { %p3342_p4 = pnand %p3341_p12, %p3335_p9 }
 0x156   : > { %3345 = shalt.err (!%p3342_p4)
}
 0x157   : > { %s4264_s22 = sld [smem:[#allocation38_spill]]  ;;  %s4265_s17 = sld [smem:[#allocation37_spill]] }
 0x158   : > { %s4266_s26 = sld [smem:[#allocation36_spill]]  ;;  %s4267_s18 = sld [smem:[#allocation39_spill]] }
 0x159   : > { %2758 = dma.hbm_to_vmem [thread:$0]  (!%p3616_p6), %s4233_s14, 16, %s554_s27, [#allocation24]  }
 0x15a   : > { %s2382_s24 = sadd.s32 4294967294, %s3470_s21   ;;  %s3904_s28 = sadd.s32 1, %s3470_s21  }
 0x15b   : > { %s42_s3 = ssub.s32 %s3470_s21, %s3904_s28  ;;  %p53_p0 = scmp.eq.s32.totalorder %s3470_s21, 0 }
 0x15c   : > { %p43_p8 = scmp.eq.s32.totalorder %s42_s3, 0  ;;  %p382_p7 = scmp.eq.s32.totalorder %s2382_s24, 1 }
 0x15d   : > { %s45_s23 = sadd.s32 1, %s4264_s22  ;;  %p52_p13 = scmp.ne.s32.totalorder %s4264_s22, %s4265_s17 }
 0x15e   : > { %p58_p1 = scmp.ne.s32.totalorder %s4265_s17, %s4266_s26  ;;  %p4269_p2 = scmp.eq.s32.totalorder %s4267_s18, 0 }
 0x15f   : > { %s3915_s0 = scalar_select %p43_p8, %s4264_s22, %s45_s23  }
 0x160   : > { %p3917_p3 = por %p53_p0, %p52_p13  ;;  %p3923_p6 = por %p4269_p2, %p58_p1 }
 0x161   : > { %p376_p5 = scmp.eq.s32.totalorder %s4267_s18, 1  ;;  %p2781_p9 = scmp.lt.s32.totalorder %s3470_s21, 2 }
 0x162   : > { %s564_s1 = sand.u32 1, %s4264_s22   ;;  %p3934_p11 = por %p382_p7, %p58_p1 }
 0x163   : > { %p3930_p10 = por %p376_p5, %p52_p13  ;;  %s2399_s15 = sshll.u32 %s564_s1, 2 }
 0x164   : > { %s4272_s25 = scalar_select %p3934_p11, 1, 0 }
 0x165   : > { %s4271_s30 = scalar_select %p3930_p10, 1, 0 }
 0x166   : > { %s2400_s16 = sshll.u32 %s3470_s21, 6  ;;  %s4273_s17 = sld [smem:[#allocation41_spill]] }
 0x167   : > { %s568_s22 = scalar_lea.vmem [#allocation2], %s2399_s15  ;;  %p3948_p12 = pnand %p2781_p9, %p3917_p3 }
 0x168   : > { %s575_s18 = sshll.u32 %s568_s22, 4  ;;  %s565_s3 = scalar_lea.sflag [#allocation3], %s564_s1  ;;  %s3944_s18 = int_to_ptr.vmem [resolvable:$true] %s575_s18 }
 0x169   : > { %p3348_p8 = pneg %p3948_p12 }
 0x16c   : > { %s3942_s26 = scalar_lea.hbm %s4273_s17, %s2400_s16  ;;  %s3351_s19 = scalar_lea.hbm %s4273_s17, 128 }
 0x16d   : > { %s3346_s23 = scalar_lea.hbm %s3942_s26, 64  ;;  %p3352_p1 = scmp.lt.u32.totalorder %s3942_s26, %s4273_s17 }
 0x16e   : > { %p3347_p4 = scmp.ne.s32.totalorder %s3942_s26, %s3346_s23  ;;  %p3353_p3 = scmp.lt.u32.totalorder %s3351_s19, %s3346_s23 }
 0x16f   : > { %p3355_p5 = scmp.lt.u32.totalorder %s3346_s23, %s3942_s26 }
 0x170   : > { %p3349_p13 = pnand %p3348_p8, %p3347_p4  ;;  %p3354_p2 = por %p3353_p3, %p3352_p1 }
 0x172   : > { %p3350_p0 = pneg %p3349_p13  ;;  %p3356_p7 = por %p3355_p5, %p3354_p2 }
 0x174   : > { %p3357_p9 = pnand %p3356_p7, %p3350_p0 }
 0x176   : > { %3360 = shalt.err (!%p3357_p9)
}
 0x177   : > { %s3361_s1 = scalar_lea.vmem %s3944_s18, 64  ;;  %s3492_s22 = smov [#allocation2]  }
 0x178   : > { %p3362_p4 = scmp.ne.s32.totalorder %s3944_s18, %s3361_s1  ;;  %s3366_s15 = sshll.u32 %s3492_s22, 4  ;;  %s3367_s15 = int_to_ptr.vmem [resolvable:$false] %s3366_s15 }
 0x179   : > { %s3368_s16 = scalar_lea.vmem %s3367_s15, 128  ;;  %p3369_p10 = scmp.lt.s32.totalorder %s3944_s18, %s3367_s15 }
 0x17a   : > { %p3364_p13 = pnand %p3362_p4, %p3348_p8  ;;  %p3370_p1 = scmp.lt.s32.totalorder %s3368_s16, %s3361_s1 }
 0x17c   : > { %p3365_p11 = pneg %p3364_p13  ;;  %p3371_p3 = por %p3370_p1, %p3369_p10 }
 0x17e   : > { %p3372_p2 = pnand %p3371_p3, %p3365_p11 }
 0x180   : > { %3375 = shalt.err (!%p3372_p2)
}
 0x181   : > { %2762 = dma.hbm_to_vmem [thread:$0]  (!%p3948_p12), %s3942_s26, 64, %s3944_s18, %s565_s3  }
 0x182   : > { %s4275_s23 = sld [smem:[#allocation40_spill]] }
 0x188   : > { %p4276_p0 = scmp.ne.s32.totalorder %s4275_s23, 0 }
 0x189   : > { %s4277_s19 = sld [smem:[#allocation37_spill]] (!%p4276_p0) }
 0x18a   : > { %584 = sbr.rel (%p4276_p0) target bundleno = 3110 (0xc26), region = 80 }
 0x18f   : > { %s3980_s20 = sand.u32 (!%p4276_p0), 1, %s4277_s19  }
 0x190   : > { %s2402_s29 = sshll.u32 (!%p4276_p0), %s3980_s20, 2  ;;  %s587_s1 = scalar_lea.sflag (!%p4276_p0), [#allocation3], %s3980_s20 }
 0x191   : > { %s590_s22 = scalar_lea.vmem [#allocation2], %s2402_s29 }
 0x192   : > { %3421 = dma.done.wait (%p3923_p6), %s587_s1, 64  }
 0x193   : > { %3423 = vsyncadd (%p3923_p6), %s587_s1, 4294967232  ;;  %s4278_s26 = sld [smem:[#allocation39_spill]] }
 0x199   : > { %p4279_p10 = scmp.eq.s32.totalorder %s4278_s26, 0 }
 0x19b   : > { %3425 = dma.done.wait (%p4279_p10), [#allocation6], 32   ;;  %p4280_p11 = pmov %p4279_p10 }
 0x19c   : > { %p4281_p12 = pmov %p4279_p10 }
 0x19d   : > { %3427 = vsyncadd (%p4280_p11), [#allocation6], 4294967264 }
 0x19e   : > { %3429 = dma.done.wait (%p4281_p12), [#allocation9], 3120   ;;  %p4282_p8 = pmov %p4279_p10 }
 0x1a0   : > { %3431 = vsyncadd (%p4282_p8), [#allocation9], 4294964176  ;;  %p4283_p5 = pmov %p4282_p8 }
 0x1a2   : > { %3433 = dma.done.wait (%p4283_p5), [#allocation12], 1040   ;;  %p4284_p7 = pmov %p4283_p5 }
 0x1a3   : > { %p4285_p6 = pmov %p4283_p5 }
 0x1a4   : > { %3435 = vsyncadd (%p4284_p7), [#allocation12], 4294966256 }
 0x1a5   : > { %3437 = dma.done.wait (%p4285_p6), [#allocation15], 32   ;;  %p4286_p9 = pmov %p4283_p5 }
 0x1a6   : > { %p4287_p4 = pmov %p4283_p5 }
 0x1a7   : > { %3439 = vsyncadd (%p4286_p9), [#allocation15], 4294967264 }
 0x1a8   : > { %3441 = dma.done.wait (%p4287_p4), [#allocation18], 2080   ;;  %p4288_p13 = pmov %p4287_p4 }
 0x1a9   : > { %p4289_p1 = pmov %p4287_p4 }
 0x1aa   : > { %3443 = vsyncadd (%p4288_p13), [#allocation18], 4294965216 }
 0x1ab   : > { %3445 = dma.done.wait (%p4289_p1), [#allocation21], 1552   ;;  %p4290_p3 = pmov %p4289_p1 }
 0x1ac   : > { %p4291_p2 = pmov %p4289_p1 }
 0x1ad   : > { %3447 = vsyncadd (%p4290_p3), [#allocation21], 4294965744 }
 0x1ae   : > { %3449 = dma.done.wait (%p4291_p2), [#allocation24], 32   ;;  %p4292_p0 = pmov %p4289_p1 }
 0x1af   : > { %v694_v0 = vld [vmem:[%s590_s22] sm:$0xf]  ;;  %v2852_v2 = vld [vmem:[#allocation8 + $0x4] ss:$12 sps:$4 sm:$0xff]   ;;  %v2854_v3 = vld [vmem:[#allocation8] ss:$12 sps:$4 sm:$0xff]   ;;  %v710_v34 = vlaneseq }
 0x1b0   : > { %3451 = vsyncadd (%p4292_p0), [#allocation24], 4294967264  ;;  %v4018_v1 = vunpack.c.l.bf16 %v694_v0  ;;  %v3493_v4 = vmov 0.0   ;;  %v2855_v5 = vld [vmem:[#allocation8 + $0x8] ss:$12 sps:$4 sm:$0xff]   ;;  %913 = vmatprep.subr.bf16.mxu0 %v2852_v2  ;;  %v3494_v26 = vmov 0  }
 0x1b1   : > { %2540 = vmatprep.subr.bf16.mxu1 %v3493_v4  ;;  %v2856_v6 = vld [vmem:[#allocation8 + $0x1c] ss:$12 sps:$4 sm:$0xff]   ;;  %v2858_v7 = vld [vmem:[#allocation8 + $0x18] ss:$12 sps:$4 sm:$0xff]   ;;  %v2859_v8 = vld [vmem:[#allocation8 + $0x20] ss:$12 sps:$4 sm:$0xff]   ;;  %914 = vmatpush1.bf16.msra.mxu0 %v2854_v3 }
 0x1b2   : > { %696 = vadd.xlane.f32.xlu0 %v4018_v1  ;;  %v2860_v9 = vld [vmem:[#allocation8 + $0x34] ss:$12 sps:$4 sm:$0xff]   ;;  %2541 = vmatpush3.bf16.msra.mxu1 %v2855_v5  ;;  %v2862_v14 = vld [vmem:[#allocation8 + $0x30] ss:$12 sps:$4 sm:$0xff]   ;;  %v2863_v15 = vld [vmem:[#allocation8 + $0x38] ss:$12 sps:$4 sm:$0xff]  }
 0x1b3   : > { %915 = vmatprep.subr.bf16.mxu0 %v2856_v6  ;;  %2542 = vmatprep.subr.bf16.mxu1 %v3493_v4  ;;  %v2864_v16 = vld [vmem:[#allocation8 + $0x4c] ss:$12 sps:$4 sm:$0xff]   ;;  %v2866_v17 = vld [vmem:[#allocation8 + $0x48] ss:$12 sps:$4 sm:$0xff]   ;;  %v2867_v18 = vld [vmem:[#allocation8 + $0x50] ss:$12 sps:$4 sm:$0xff]  }
 0x1b4   : > { %v2868_v19 = vld [vmem:[#allocation8 + $0x64] ss:$12 sps:$4 sm:$0xff]   ;;  %v2870_v20 = vld [vmem:[#allocation8 + $0x60] ss:$12 sps:$4 sm:$0xff]   ;;  %v2871_v21 = vld [vmem:[#allocation8 + $0x68] ss:$12 sps:$4 sm:$0xff]   ;;  %945 = vmatprep.mubr.bf16.mxu0 %v3494_v26 }
 0x1b5   : > { %916 = vmatpush1.bf16.msra.mxu0 %v2858_v7  ;;  %v2872_v22 = vld [vmem:[#allocation8 + $0x7c] ss:$12 sps:$4 sm:$0xff]   ;;  %v2874_v23 = vld [vmem:[#allocation8 + $0x78] ss:$12 sps:$4 sm:$0xff]   ;;  %v2875_v24 = vld [vmem:[#allocation8 + $0x80] ss:$12 sps:$4 sm:$0xff]  }
 0x1b6   : > { %2543 = vmatpush3.bf16.msra.mxu1 %v2859_v8  ;;  %917 = vmatprep.subr.bf16.mxu0 %v2860_v9  ;;  %v2876_v25 = vld [vmem:[#allocation8 + $0x94] ss:$12 sps:$4 sm:$0xff]   ;;  %vm3495_vm0 = vmmov 0   ;;  %v2878_v27 = vld [vmem:[#allocation8 + $0x90] ss:$12 sps:$4 sm:$0xff]   ;;  %v4036_v36 = vshrl.u32 %v710_v34, 7 }
 0x1b7   : > { %2544 = vmatprep.subr.bf16.mxu1 %v3493_v4  ;;  %2556 = vmatprep.mubr.msk.bf16.mxu1 %vm3495_vm0, %v3493_v4  ;;  %v2879_v28 = vld [vmem:[#allocation8 + $0x98] ss:$12 sps:$4 sm:$0xff]   ;;  %v2882_v30 = vld [vmem:[#allocation8 + $0xa8] ss:$12 sps:$4 sm:$0xff]   ;;  %v2883_v31 = vld [vmem:[#allocation8 + $0xb0] ss:$12 sps:$4 sm:$0xff]  }
 0x1b8   : > { %v2880_v29 = vld [vmem:[#allocation8 + $0xac] ss:$12 sps:$4 sm:$0xff]   ;;  %v708_v37 = vld [vmem:[#allocation5] sm:$0x1]  ;;  %v715_v38 = vld [vmem:[#allocation7] sm:$0x1] }
 0x1b9   : > { %918 = vmatpush1.bf16.msra.mxu0 %v2862_v14  ;;  %v709_v39 = vunpack.c.l.bf16 %v708_v37  ;;  %v4039_v40 = vsub.s32 0, %v4036_v36  ;;  %v716_v41 = vunpack.c.l.bf16 %v715_v38  ;;  %v755_v49 = vld [vmem:[#allocation10] sm:$0x7]  ;;  %v768_v51 = vsub.s32 4, %v4036_v36  ;;  %s2492_s27 = sshll.u32 %s4278_s26, 6  ;;  %s692_s18 = scalar_lea.vmem [#allocation26], %s2402_s29 }
 0x1ba   : > { %2545 = vmatpush3.bf16.msra.mxu1 %v2863_v15  ;;  %919 = vmatprep.subr.bf16.mxu0 %v2864_v16  ;;  %v756_v50 = vunpack.c.l.bf16 %v755_v49  ;;  %v764_v5 = vsub.s32 2, %v4036_v36  ;;  %vm1109_vm1 = vcmask 261120   ;;  %vm1291_vm3 = vcmask 64512   ;;  %s2179_s24 = sshll.u32 %s692_s18, 4  ;;  %s4293_s16 = sld [smem:[#allocation44_spill]]  ;;  %s4177_s24 = int_to_ptr.vmem [resolvable:$true] %s2179_s24 }
 0x1bb   : > { %2546 = vmatprep.subr.bf16.mxu1 %v3493_v4  ;;  %v713_v42 = vrot.slane %v709_v39, %v4039_v40  ;;  %v720_v45 = vrot.slane %v716_v41, %v4039_v40  ;;  %vm2093_vm4 = vcmask 523264   ;;  %s2166_s19 = scalar_lea.sflag [#allocation4], %s3980_s20  ;;  %s3376_s1 = scalar_lea.vmem %s4177_s24, 64 }
 0x1bc   : > { %v769_v52 = vrot.slane %v756_v50, %v768_v51  ;;  %v761_v53 = vrot.slane %v756_v50, %v4039_v40  ;;  %v765_v6 = vrot.slane %v756_v50, %v764_v5  ;;  %p3377_p10 = scmp.ne.s32.totalorder %s4177_s24, %s3376_s1  ;;  %p4294_p11 = scmp.ne.s32.totalorder %s4271_s30, 0 }
 0x1bd   : > { %920 = vmatpush1.bf16.msra.mxu0 %v2866_v17  ;;  %s3496_s29 = smov [#allocation26]  }
 0x1be   : > { %2547 = vmatpush3.bf16.msra.mxu1 %v2867_v18  ;;  %921 = vmatprep.subr.bf16.mxu0 %v2868_v19  ;;  %v784_v54 = vrot.slane %v769_v52, %v4039_v40  ;;  %v776_v55 = vrot.slane %v761_v53, %v4039_v40  ;;  %v780_v7 = vrot.slane %v765_v6, %v4039_v40  ;;  %p3378_p12 = pnand %p3377_p10, %p4294_p11  ;;  %s3380_s22 = sshll.u32 %s3496_s29, 4  ;;  %s3381_s22 = int_to_ptr.vmem [resolvable:$false] %s3380_s22 }
 0x1bf   : > { %2548 = vmatprep.subr.bf16.mxu1 %v3493_v4  ;;  %s3382_s26 = scalar_lea.vmem %s3381_s22, 128  ;;  %p3383_p5 = scmp.lt.s32.totalorder %s4177_s24, %s3381_s22 }
 0x1c0   : > { %s4175_s23 = scalar_lea.hbm %s4293_s16, %s2492_s27  ;;  %p3379_p8 = pneg %p3378_p12 }
 0x1c1   : > { %922 = vmatpush1.bf16.msra.mxu0 %v2870_v20  ;;  %p3384_p7 = scmp.lt.s32.totalorder %s3382_s26, %s3376_s1 }
 0x1c2   : > { %2549 = vmatpush3.bf16.msra.mxu1 %v2871_v21  ;;  %923 = vmatprep.subr.bf16.mxu0 %v2872_v22 }
 0x1c3   : > { %2550 = vmatprep.subr.bf16.mxu1 %v3493_v4  ;;  %p3385_p6 = por %p3384_p7, %p3383_p5 }
 0x1c5   : > { %924 = vmatpush1.bf16.msra.mxu0 %v2874_v23  ;;  %p3386_p9 = pnand %p3385_p6, %p3379_p8 }
 0x1c6   : > { %2551 = vmatpush3.bf16.msra.mxu1 %v2875_v24  ;;  %925 = vmatprep.subr.bf16.mxu0 %v2876_v25 }
 0x1c7   : > { %2552 = vmatprep.subr.bf16.mxu1 %v3493_v4 }
 0x1c9   : > { %926 = vmatpush1.bf16.msra.mxu0 %v2878_v27 }
 0x1ca   : > { %2553 = vmatpush3.bf16.msra.mxu1 %v2879_v28  ;;  %927 = vmatprep.subr.bf16.mxu0 %v2880_v29 }
 0x1cb   : > { %2554 = vmatprep.subr.bf16.mxu1 %v3493_v4 }
 0x1cd   : > { %928 = vmatpush1.bf16.msra.mxu0 %v2882_v30 }
 0x1ce   : > { %2555 = vmatpush3.bf16.msra.mxu1 %v2883_v31  ;;  %2560 = vmatprep.subr.bf16.mxu0 %v3493_v4  ;;  %v1285_v31 = vand.u32 127, %v710_v34 }
 0x1cf   : > { %2584 = vmatprep.subr.bf16.mxu1 %v3493_v4 }
 0x1d0   : > { %vm1286_vm2 = vcmp.le.s32.totalorder %v1285_v31, %v4036_v36 }
 0x23f   : > { %v697_v10 = vpop.xlane.xlu0 %696 }
 0x240   : > { %v699_v11 = vmul.f32 0.0078125, %v697_v10 }
 0x242   : > { %v700_v12 = vsub.f32 %v4018_v1, %v699_v11 }
 0x244   : > { %v701_v13 = vmul.f32 %v700_v12, %v700_v12 }
 0x246   : > { %702 = vadd.xlane.f32.xlu0 %v701_v13 }
 0x2d3   : > { %v703_v32 = vpop.xlane.xlu0 %702 }
 0x2d4   : > { %v704_v33 = vmul.f32 0.0078125, %v703_v32 }
 0x2d6   : > { %v705_v35 = vadd.f32 1e-05, %v704_v33 }
 0x2d8   : > { %2928 = vrsqrt.f32 %v705_v35 }
 0x2e2   : > { %v2929_v43 = vpop.eup %2928 }
 0x2e3   : > { %v707_v44 = vmul.f32 %v2929_v43, %v700_v12 }
 0x2e5   : > { %v714_v46 = vmul.f32 %v713_v42, %v707_v44 }
 0x2e7   : > { %v721_v47 = vadd.f32 %v720_v45, %v714_v46 }
 0x2e9   : > { %v722_v48 = vpack.c.bf16 %v721_v47, %v721_v47 }
 0x2eb   : > { %946 = vmatmul.mubr.bf16.vlgmr.msra.gmra.mrb[0].mxu0 %v722_v48  ;;  %2557 = vmatmul.mubr.bf16.vlgmr.msra.gmra.mrb[0].mxu1 %v722_v48 }
 0x2ec   : > { %2564 = vmatprep.mubr.msk.bf16.mxu0 %vm3495_vm0, %v3493_v4  ;;  %2588 = vmatprep.mubr.msk.bf16.mxu1 %vm3495_vm0, %v3493_v4 }
 0x3be   : > { %v947_v56 = vpop.f32.mrb[0].mxu0  ;;  %v988_v57 = vpop.f32.mrb[0].mxu1 }
 0x3bf   : > { %v4051_v58 = vadd.f32 %v988_v57, %v784_v54  ;;  %v949_v59 = vpop.f32.mrb[1].mxu0  ;;  %v2558_v60 = vpop.f32.mrb[1].mxu1  ;;  %v948_v61 = vadd.f32 %v947_v56, %v776_v55 }
 0x3c0   : > { %v951_v62 = vpop.f32.mrb[2].mxu0  ;;  %v991_v63 = vpop.f32.mrb[2].mxu1  ;;  %v950_v8 = vadd.f32 %v949_v59, %v780_v7 }
 0x3c1   : > { %v952_v0 = vpop.f32.mrb[3].mxu0  ;;  %v2559_v2 = vpop.f32.mrb[3].mxu1  ;;  %v994_v3 = vpack.c.bf16 %v948_v61, %v948_v61  ;;  %v996_v59 = vpack.c.bf16 %v4051_v58, %v4051_v58 }
 0x3c2   : > { %v995_v9 = vpack.c.bf16 %v950_v8, %v950_v8 }
 0x3c3   : > { %997 = vxpose.xlu1.c.b16.start.end [1/1] (short) %v994_v3, 128 }
 0x3e0   : > { %1077 = vxpose.xlu1.c.b16.start.end [1/1] (short) %v995_v9, 128 }
 0x429   : > { %v1005_v10 = vpop.trf.xlu1 }
 0x42a   : > { %1013 = vxpose.xlu0.c.b16.start [1/2] (short) (narrow) %v1005_v10, 16 }
 0x42d   : > { %v1006_v11 = vpop.trf.xlu1 }
 0x42e   : > { %1014 = vxpose.xlu0.c.b16.end [2/2] (short) (narrow) %v1006_v11, 16 }
 0x431   : > { %v1007_v12 = vpop.trf.xlu1 }
 0x432   : > { %1029 = vxpose.xlu1.c.b16.start [1/2] (short) (narrow) %v1007_v12, 16 }
 0x435   : > { %v1008_v13 = vpop.trf.xlu1 }
 0x436   : > { %1030 = vxpose.xlu1.c.b16.end [2/2] (short) (narrow) %v1008_v13, 16 }
 0x439   : > { %v1009_v14 = vpop.trf.xlu1 }
 0x43a   : > { %1045 = vxpose.xlu0.c.b16.start [1/2] (short) (narrow) %v1009_v14, 16 }
 0x43d   : > { %v1010_v15 = vpop.trf.xlu1 }
 0x43e   : > { %1046 = vxpose.xlu0.c.b16.end [2/2] (short) (narrow) %v1010_v15, 16 }
 0x441   : > { %v1011_v16 = vpop.trf.xlu1 }
 0x442   : > { %1061 = vxpose.xlu0.c.b16.start [1/2] (short) (narrow) %v1011_v16, 16 }
 0x445   : > { %v1012_v17 = vpop.trf.xlu1 }
 0x446   : > { %1062 = vxpose.xlu0.c.b16.end [2/2] (short) (narrow) %v1012_v17, 16 }
 0x449   : > { %v1085_v18 = vpop.trf.xlu1 }
 0x44a   : > { %2561 = vmatpush3.bf16.msra.mxu0 %v1085_v18 }
 0x44b   : > { %2562 = vmatprep.subr.bf16.mxu0 %v3493_v4 }
 0x44d   : > { %v1086_v19 = vpop.trf.xlu1 }
 0x44e   : > { %2563 = vmatpush3.bf16.msra.mxu0 %v1086_v19 }
 0x44f   : > { %2568 = vmatprep.subr.bf16.mxu0 %v3493_v4 }
 0x451   : > { %v1087_v20 = vpop.trf.xlu1 }
 0x455   : > { %v1088_v21 = vpop.trf.xlu1 }
 0x459   : > { %v1089_v22 = vpop.trf.xlu1 }
 0x45d   : > { %v1090_v23 = vpop.trf.xlu1 }
 0x461   : > { %v1091_v24 = vpop.trf.xlu1 }
 0x462   : > { %2585 = vmatpush3.bf16.msra.mxu1 %v1091_v24 }
 0x463   : > { %2586 = vmatprep.subr.bf16.mxu1 %v3493_v4 }
 0x465   : > { %v1092_v25 = vpop.trf.xlu1 }
 0x466   : > { %2587 = vmatpush3.bf16.msra.mxu1 %v1092_v25 }
 0x467   : > { %2600 = vmatprep.subr.bf16.mxu1 %v3493_v4 }
 0x490   : > { %v1021_v27 = vpop.trf.xlu0 }
 0x491   : > { %2565 = vmatmul.mubr.msk.bf16.vlgmr.msra.gmra.mrb[4].mxu0 %vm1109_vm1, %v1021_v27 }
 0x492   : > { %2569 = vmatpush3.bf16.msra.mxu0 %v1087_v20  ;;  %2572 = vmatprep.mubr.msk.bf16.mxu0 %vm3495_vm0, %v3493_v4 }
 0x493   : > { %2570 = vmatprep.subr.bf16.mxu0 %v3493_v4 }
 0x496   : > { %2571 = vmatpush3.bf16.msra.mxu0 %v1088_v21 }
 0x497   : > { %2576 = vmatprep.subr.bf16.mxu0 %v3493_v4 }
 0x498   : > { %v1037_v28 = vpop.trf.xlu1 }
 0x499   : > { %2573 = vmatmul.mubr.msk.bf16.vlgmr.msra.gmra.mrb[8].mxu0 %vm1109_vm1, %v1037_v28 }
 0x49a   : > { %2577 = vmatpush3.bf16.msra.mxu0 %v1089_v22  ;;  %2580 = vmatprep.mubr.msk.bf16.mxu0 %vm3495_vm0, %v3493_v4 }
 0x49b   : > { %2578 = vmatprep.subr.bf16.mxu0 %v3493_v4 }
 0x49e   : > { %2579 = vmatpush3.bf16.msra.mxu0 %v1090_v23 }
 0x49f   : > { %2592 = vmatprep.subr.bf16.mxu0 %v3493_v4 }
 0x4a0   : > { %v1053_v29 = vpop.trf.xlu0 }
 0x4a1   : > { %2581 = vmatmul.mubr.msk.bf16.vlgmr.msra.gmra.mrb[12].mxu0 %vm1109_vm1, %v1053_v29 }
 0x4a2   : > { %2596 = vmatprep.mubr.msk.bf16.mxu0 %vm3495_vm0, %v3493_v4 }
 0x4a8   : > { %v1069_v30 = vpop.trf.xlu0 }
 0x4a9   : > { %2589 = vmatmul.mubr.msk.bf16.vlgmr.msra.gmra.mrb[4].mxu1 %vm1109_vm1, %v1069_v30 }
 0x4aa   : > { %2604 = vmatprep.mubr.msk.bf16.mxu1 %vm3495_vm0, %v3493_v4 }
 0x564   : > { %v1147_v32 = vpop.f32.mrb[4].mxu0 }
 0x565   : > { %v1287_v33 = vsel %vm1286_vm2, %v1147_v32, -1e+30  ;;  %v2566_v35 = vpop.f32.mrb[5].mxu0 }
 0x566   : > { %v1150_v37 = vpop.f32.mrb[6].mxu0  ;;  %v1292_v38 = vsel %vm1291_vm3, %v1287_v33, -inf }
 0x567   : > { %1293 = vmax.xlane.f32.xlu1 %v1292_v38  ;;  %v2567_v39 = vpop.f32.mrb[7].mxu0 }
 0x56c   : > { %v1190_v41 = vpop.f32.mrb[8].mxu0 }
 0x56d   : > { %v1288_v42 = vsel %vm1286_vm2, %v1190_v41, -1e+30  ;;  %v2574_v43 = vpop.f32.mrb[9].mxu0 }
 0x56e   : > { %v1193_v44 = vpop.f32.mrb[10].mxu0  ;;  %v1295_v34 = vsel %vm1291_vm3, %v1288_v42, -inf  ;;  %v2885_v43 = vld [vmem:[#allocation11 + $0x8] sm:$0xff]  }
 0x56f   : > { %1296 = vmax.xlane.f32.xlu0 %v1295_v34  ;;  %v2575_v45 = vpop.f32.mrb[11].mxu0  ;;  %v2886_v44 = vld [vmem:[#allocation11 + $0x10] sm:$0xff]   ;;  %v2887_v34 = vld [vmem:[#allocation11 + $0x18] sm:$0xff]  }
 0x574   : > { %v1233_v46 = vpop.f32.mrb[12].mxu0 }
 0x575   : > { %v1289_v47 = vsel %vm1286_vm2, %v1233_v46, -1e+30  ;;  %v2582_v48 = vpop.f32.mrb[13].mxu0 }
 0x576   : > { %v1298_v49 = vsel %vm1291_vm3, %v1289_v47, -inf  ;;  %v1236_v50 = vpop.f32.mrb[14].mxu0 }
 0x577   : > { %1299 = vmax.xlane.f32.xlu1 %v1298_v49  ;;  %v2583_v51 = vpop.f32.mrb[15].mxu0 }
 0x57c   : > { %v1276_v52 = vpop.f32.mrb[4].mxu1 }
 0x57d   : > { %v1290_v53 = vsel %vm1286_vm2, %v1276_v52, -1e+30  ;;  %v2590_v54 = vpop.f32.mrb[5].mxu1  ;;  %v2888_v52 = vld [vmem:[#allocation11 + $0x20] sm:$0xff]  }
 0x57e   : > { %v1301_v55 = vsel %vm1291_vm3, %v1290_v53, -inf  ;;  %v1279_v56 = vpop.f32.mrb[6].mxu1 }
 0x57f   : > { %1302 = vmax.xlane.f32.xlu1 %v1301_v55  ;;  %v2591_v57 = vpop.f32.mrb[7].mxu1  ;;  %v2889_v56 = vld [vmem:[#allocation11 + $0x28] sm:$0xff]  }
 0x59c   : > { %1093 = vxpose.xlu0.c.b16.start.end [1/1] (short) %v996_v59, 128 }
 0x5f4   : > { %v1294_v60 = vpop.xlane.xlu1 %1293 }
 0x5f5   : > { %v1304_v61 = vsub.f32 %v1287_v33, %v1294_v60 }
 0x5f7   : > { %v1308_v62 = vmul.f32 1.442695, %v1304_v61 }
 0x5f9   : > { %2930 = vpow2.f32 %v1308_v62 }
 0x5fc   : > { %v1297_v63 = vpop.xlane.xlu0 %1296 }
 0x5fd   : > { %v1305_v0 = vsub.f32 %v1288_v42, %v1297_v63  ;;  %v2884_v42 = vld [vmem:[#allocation11] sm:$0xff]   ;;  %v2890_v63 = vld [vmem:[#allocation11 + $0x30] sm:$0xff]  }
 0x5ff   : > { %v1310_v2 = vmul.f32 1.442695, %v1305_v0 }
 0x601   : > { %2932 = vpow2.f32 %v1310_v2 }
 0x602   : > { %v1101_v3 = vpop.trf.xlu0 }
 0x603   : > { %v2931_v6 = vpop.eup %2930  ;;  %v1336_v7 = vsel %vm1291_vm3, %v1101_v3, 0 }
 0x604   : > { %2593 = vmatpush3.bf16.xpose.msra.mxu0 %v1336_v7  ;;  %v1300_v8 = vpop.xlane.xlu1 %1299  ;;  %v1316_v9 = vsel %vm1291_vm3, %v2931_v6, 0.0  ;;  %v1328_v21 = vpack.c.bf16 %v2931_v6, %v2931_v6  ;;  %v2891_v6 = vld [vmem:[#allocation11 + $0x38] sm:$0xff]  }
 0x605   : > { %v1306_v10 = vsub.f32 %v1289_v47, %v1300_v8  ;;  %1317 = vadd.xlane.f32.xlu1 %v1316_v9  ;;  %2594 = vmatprep.subr.bf16.mxu0 %v3493_v4 }
 0x606   : > { %v1102_v58 = vpop.trf.xlu0 }
 0x607   : > { %v1312_v11 = vmul.f32 1.442695, %v1306_v10  ;;  %v1339_v14 = vsel %vm1291_vm3, %v1102_v58, 0 }
 0x609   : > { %2934 = vpow2.f32 %v1312_v11 }
 0x60a   : > { %v1103_v12 = vpop.trf.xlu0 }
 0x60b   : > { %v2933_v13 = vpop.eup %2932  ;;  %v1385_v15 = vsel %vm1291_vm3, %v1103_v12, 0 }
 0x60c   : > { %2595 = vmatpush3.bf16.xpose.msra.mxu0 %v1339_v14  ;;  %2601 = vmatpush3.bf16.xpose.msra.mxu1 %v1385_v15  ;;  %v1303_v16 = vpop.xlane.xlu1 %1302  ;;  %v1319_v17 = vsel %vm1291_vm3, %v2933_v13, 0.0  ;;  %v1329_v29 = vpack.c.bf16 %v2933_v13, %v2933_v13 }
 0x60d   : > { %v1307_v18 = vsub.f32 %v1290_v53, %v1303_v16  ;;  %1320 = vadd.xlane.f32.xlu1 %v1319_v17  ;;  %2602 = vmatprep.subr.bf16.mxu1 %v3493_v4 }
 0x60e   : > { %v1104_v19 = vpop.trf.xlu0  ;;  %2608 = vmatprep.subr.bf16.mxu0 %v3493_v4 }
 0x60f   : > { %v1314_v20 = vmul.f32 1.442695, %v1307_v18  ;;  %v1388_v24 = vsel %vm1291_vm3, %v1104_v19, 0 }
 0x611   : > { %2936 = vpow2.f32 %v1314_v20 }
 0x612   : > { %v1105_v22 = vpop.trf.xlu0 }
 0x613   : > { %v2935_v23 = vpop.eup %2934  ;;  %v1434_v25 = vsel %vm1291_vm3, %v1105_v22, 0  ;;  %2597 = vmatmul.mubr.msk.bf16.vlgmr.msra.gmra.mrb[16].mxu0 %vm1291_vm3, %v1328_v21 }
 0x614   : > { %2603 = vmatpush3.bf16.xpose.msra.mxu1 %v1388_v24  ;;  %2609 = vmatpush3.bf16.xpose.msra.mxu0 %v1434_v25  ;;  %v1322_v27 = vsel %vm1291_vm3, %v2935_v23, 0.0  ;;  %v1330_v39 = vpack.c.bf16 %v2935_v23, %v2935_v23 }
 0x615   : > { %1323 = vadd.xlane.f32.xlu1 %v1322_v27  ;;  %2610 = vmatprep.subr.bf16.mxu0 %v3493_v4 }
 0x616   : > { %v1106_v28 = vpop.trf.xlu0  ;;  %2616 = vmatprep.subr.bf16.mxu1 %v3493_v4  ;;  %2612 = vmatprep.mubr.msk.bf16.mxu0 %vm3495_vm0, %v3493_v4 }
 0x617   : > { %v1437_v32 = vsel %vm1291_vm3, %v1106_v28, 0 }
 0x61a   : > { %v1107_v30 = vpop.trf.xlu0 }
 0x61b   : > { %v2937_v31 = vpop.eup %2936  ;;  %v1483_v33 = vsel %vm1291_vm3, %v1107_v30, 0  ;;  %2605 = vmatmul.mubr.msk.bf16.vlgmr.msra.gmra.mrb[8].mxu1 %vm1291_vm3, %v1329_v29  ;;  %v1779_v30 = vld [vmem:[#allocation13] sm:$0x1] }
 0x61c   : > { %2611 = vmatpush3.bf16.xpose.msra.mxu0 %v1437_v32  ;;  %2617 = vmatpush3.bf16.xpose.msra.mxu1 %v1483_v33  ;;  %v1325_v35 = vsel %vm1291_vm3, %v2937_v31, 0.0  ;;  %v1331_v41 = vpack.c.bf16 %v2937_v31, %v2937_v31 }
 0x61d   : > { %1326 = vadd.xlane.f32.xlu1 %v1325_v35  ;;  %2618 = vmatprep.subr.bf16.mxu1 %v3493_v4 }
 0x61e   : > { %v1108_v37 = vpop.trf.xlu0  ;;  %2620 = vmatprep.mubr.msk.bf16.mxu1 %vm3495_vm0, %v3493_v4  ;;  %2624 = vmatprep.subr.bf16.mxu0 %v3493_v4 }
 0x61f   : > { %v1486_v38 = vsel %vm1291_vm3, %v1108_v37, 0  ;;  %v1780_v37 = vunpack.c.l.bf16 %v1779_v30  ;;  %v1829_v30 = vld [vmem:[#allocation19] sm:$0x3] }
 0x623   : > { %2613 = vmatmul.mubr.msk.bf16.vlgmr.msra.gmra.mrb[20].mxu0 %vm1291_vm3, %v1330_v39 }
 0x624   : > { %2619 = vmatpush3.bf16.xpose.msra.mxu1 %v1486_v38  ;;  %2628 = vmatprep.mubr.msk.bf16.mxu0 %vm3495_vm0, %v3493_v4  ;;  %v1784_v38 = vrot.slane %v1780_v37, %v4039_v40 }
 0x625   : > { %2632 = vmatprep.subr.bf16.mxu1 %v3493_v4  ;;  %2625 = vmatpush3.bf16.msra.mxu0 %v2884_v42 }
 0x626   : > { %2626 = vmatprep.subr.bf16.mxu0 %v3493_v4 }
 0x629   : > { %2627 = vmatpush3.bf16.msra.mxu0 %v2885_v43 }
 0x62a   : > { %2640 = vmatprep.subr.bf16.mxu0 %v3493_v4 }
 0x62b   : > { %2621 = vmatmul.mubr.msk.bf16.vlgmr.msra.gmra.mrb[12].mxu1 %vm1291_vm3, %v1331_v41 }
 0x62c   : > { %2636 = vmatprep.mubr.msk.bf16.mxu1 %vm3495_vm0, %v3493_v4  ;;  %2633 = vmatpush3.bf16.msra.mxu1 %v2886_v44 }
 0x62d   : > { %2634 = vmatprep.subr.bf16.mxu1 %v3493_v4 }
 0x630   : > { %2635 = vmatpush3.bf16.msra.mxu1 %v2887_v34 }
 0x631   : > { %2648 = vmatprep.subr.bf16.mxu1 %v3493_v4 }
 0x692   : > { %v1318_v45 = vpop.xlane.xlu1 %1317 }
 0x693   : > { %2938 = vrcp.f32 %v1318_v45 }
 0x69a   : > { %v1321_v46 = vpop.xlane.xlu1 %1320 }
 0x69b   : > { %2940 = vrcp.f32 %v1321_v46  ;;  %v2892_v46 = vld [vmem:[#allocation17] ss:$8 sps:$4 sm:$0xff]  }
 0x69d   : > { %v2939_v47 = vpop.eup %2938 }
 0x6a2   : > { %v1324_v53 = vpop.xlane.xlu1 %1323 }
 0x6a3   : > { %2942 = vrcp.f32 %v1324_v53 }
 0x6a5   : > { %v2941_v57 = vpop.eup %2940 }
 0x6aa   : > { %v1327_v0 = vpop.xlane.xlu1 %1326 }
 0x6ab   : > { %2944 = vrcp.f32 %v1327_v0  ;;  %v2915_v0 = vld [vmem:[#allocation17 + $0x74] ss:$8 sps:$4 sm:$0xff]  }
 0x6ad   : > { %v2943_v7 = vpop.eup %2942 }
 0x6b5   : > { %v2945_v13 = vpop.eup %2944 }
 0x6e6   : > { %v1375_v48 = vpop.f32.mrb[16].mxu0 }
 0x6e7   : > { %v1529_v49 = vmul.f32 %v2939_v47, %v1375_v48  ;;  %v2598_v50 = vpop.f32.mrb[17].mxu0  ;;  %v2894_v47 = vld [vmem:[#allocation17 + $0x4] ss:$8 sps:$4 sm:$0xff]   ;;  %v2897_v48 = vld [vmem:[#allocation17 + $0x14] ss:$8 sps:$4 sm:$0xff]  }
 0x6e8   : > { %v1378_v51 = vpop.f32.mrb[18].mxu0  ;;  %v2900_v50 = vld [vmem:[#allocation17 + $0x24] ss:$8 sps:$4 sm:$0xff]  }
 0x6e9   : > { %v1536_v54 = vpack.c.bf16 %v1529_v49, %v1529_v49  ;;  %v2599_v55 = vpop.f32.mrb[19].mxu0  ;;  %v2895_v49 = vld [vmem:[#allocation17 + $0x10] ss:$8 sps:$4 sm:$0xff]   ;;  %v2898_v51 = vld [vmem:[#allocation17 + $0x20] ss:$8 sps:$4 sm:$0xff]  }
 0x6ea   : > { %v2903_v55 = vld [vmem:[#allocation17 + $0x34] ss:$8 sps:$4 sm:$0xff]  }
 0x6eb   : > { %2629 = vmatmul.mubr.msk.bf16.vlgmr.msra.gmra.mrb[24].mxu0 %vm1109_vm1, %v1536_v54 }
 0x6ec   : > { %2641 = vmatpush3.bf16.msra.mxu0 %v2888_v52  ;;  %2644 = vmatprep.mubr.msk.bf16.mxu0 %vm3495_vm0, %v3493_v4 }
 0x6ed   : > { %2642 = vmatprep.subr.bf16.mxu0 %v3493_v4 }
 0x6ee   : > { %v1424_v59 = vpop.f32.mrb[8].mxu1 }
 0x6ef   : > { %v1531_v60 = vmul.f32 %v2941_v57, %v1424_v59  ;;  %v2606_v61 = vpop.f32.mrb[9].mxu1  ;;  %v2906_v57 = vld [vmem:[#allocation17 + $0x44] ss:$8 sps:$4 sm:$0xff]   ;;  %v2904_v59 = vld [vmem:[#allocation17 + $0x40] ss:$8 sps:$4 sm:$0xff]  }
 0x6f0   : > { %v1427_v62 = vpop.f32.mrb[10].mxu1  ;;  %2643 = vmatpush3.bf16.msra.mxu0 %v2889_v56  ;;  %v2901_v56 = vld [vmem:[#allocation17 + $0x30] ss:$8 sps:$4 sm:$0xff]  }
 0x6f1   : > { %v1537_v2 = vpack.c.bf16 %v1531_v60, %v1531_v60  ;;  %v2607_v3 = vpop.f32.mrb[11].mxu1  ;;  %1930 = vmatprep.subr.bf16.mxu0 %v2894_v47  ;;  %v2909_v60 = vld [vmem:[#allocation17 + $0x54] ss:$8 sps:$4 sm:$0xff]   ;;  %v2907_v61 = vld [vmem:[#allocation17 + $0x50] ss:$8 sps:$4 sm:$0xff]  }
 0x6f2   : > { %v2912_v62 = vld [vmem:[#allocation17 + $0x64] ss:$8 sps:$4 sm:$0xff]  }
 0x6f3   : > { %2637 = vmatmul.mubr.msk.bf16.vlgmr.msra.gmra.mrb[16].mxu1 %vm1109_vm1, %v1537_v2  ;;  %v2913_v2 = vld [vmem:[#allocation17 + $0x70] ss:$8 sps:$4 sm:$0xff]   ;;  %v2916_v3 = vld [vmem:[#allocation20] sm:$0xff]  }
 0x6f4   : > { %2649 = vmatpush3.bf16.msra.mxu1 %v2890_v63  ;;  %2652 = vmatprep.mubr.msk.bf16.mxu1 %vm3495_vm0, %v3493_v4  ;;  %v2910_v63 = vld [vmem:[#allocation17 + $0x60] ss:$8 sps:$4 sm:$0xff]  }
 0x6f5   : > { %2650 = vmatprep.subr.bf16.mxu1 %v3493_v4 }
 0x6f6   : > { %v1473_v8 = vpop.f32.mrb[20].mxu0 }
 0x6f7   : > { %v1533_v9 = vmul.f32 %v2943_v7, %v1473_v8  ;;  %v2614_v10 = vpop.f32.mrb[21].mxu0  ;;  %v2918_v7 = vld [vmem:[#allocation20 + $0x10] sm:$0xff]   ;;  %v2919_v8 = vld [vmem:[#allocation20 + $0x18] sm:$0xff]  }
 0x6f8   : > { %v1476_v58 = vpop.f32.mrb[22].mxu0  ;;  %2651 = vmatpush3.bf16.msra.mxu1 %v2891_v6  ;;  %v2917_v6 = vld [vmem:[#allocation20 + $0x8] sm:$0xff]  }
 0x6f9   : > { %v1538_v11 = vpack.c.bf16 %v1533_v9, %v1533_v9  ;;  %v2615_v12 = vpop.f32.mrb[23].mxu0  ;;  %2097 = vmatprep.subr.bf16.mxu1 %v3494_v26  ;;  %v2920_v9 = vld [vmem:[#allocation20 + $0x20] sm:$0xff]  }
 0x6fa   : > { %v1798_v12 = vld [vmem:[#allocation14] sm:$0x1] }
 0x6fb   : > { %2645 = vmatmul.mubr.msk.bf16.vlgmr.msra.gmra.mrb[28].mxu0 %vm1109_vm1, %v1538_v11 }
 0x6fc   : > { %1962 = vmatprep.mubr.bf16.mxu0 %v3494_v26  ;;  %1931 = vmatpush1.bf16.msra.mxu0 %v2892_v46 }
 0x6fd   : > { %1932 = vmatprep.subr.bf16.mxu0 %v2897_v48 }
 0x6fe   : > { %v1522_v14 = vpop.f32.mrb[12].mxu1 }
 0x6ff   : > { %v1535_v15 = vmul.f32 %v2945_v13, %v1522_v14  ;;  %v2622_v16 = vpop.f32.mrb[13].mxu1  ;;  %v1805_v13 = vld [vmem:[#allocation16] sm:$0x1]  ;;  %v1799_v14 = vunpack.c.l.bf16 %v1798_v12 }
 0x700   : > { %v1525_v17 = vpop.f32.mrb[14].mxu1  ;;  %1933 = vmatpush1.bf16.msra.mxu0 %v2895_v49 }
 0x701   : > { %v1539_v4 = vpack.c.bf16 %v1535_v15, %v1535_v15  ;;  %v2623_v18 = vpop.f32.mrb[15].mxu1  ;;  %1934 = vmatprep.subr.bf16.mxu0 %v2900_v50  ;;  %v1806_v15 = vunpack.c.l.bf16 %v1805_v13  ;;  %v1803_v16 = vrot.slane %v1799_v14, %v4039_v40 }
 0x703   : > { %2653 = vmatmul.mubr.msk.bf16.vlgmr.msra.gmra.mrb[20].mxu1 %vm1109_vm1, %v1539_v4  ;;  %v1810_v18 = vrot.slane %v1806_v15, %v4039_v40 }
 0x704   : > { %1935 = vmatpush1.bf16.msra.mxu0 %v2898_v51  ;;  %2098 = vmatpush1.bf16.msra.mxu1 %v2916_v3 }
 0x705   : > { %1936 = vmatprep.subr.bf16.mxu0 %v2903_v55  ;;  %2099 = vmatprep.subr.bf16.mxu1 %v3494_v26 }
 0x708   : > { %1937 = vmatpush1.bf16.msra.mxu0 %v2901_v56  ;;  %2100 = vmatpush1.bf16.msra.mxu1 %v2917_v6 }
 0x709   : > { %1938 = vmatprep.subr.bf16.mxu0 %v2906_v57  ;;  %2101 = vmatprep.subr.bf16.mxu1 %v3494_v26 }
 0x70c   : > { %1939 = vmatpush1.bf16.msra.mxu0 %v2904_v59  ;;  %2102 = vmatpush1.bf16.msra.mxu1 %v2918_v7 }
 0x70d   : > { %1940 = vmatprep.subr.bf16.mxu0 %v2909_v60  ;;  %2103 = vmatprep.subr.bf16.mxu1 %v3494_v26 }
 0x710   : > { %1941 = vmatpush1.bf16.msra.mxu0 %v2907_v61  ;;  %2104 = vmatpush1.bf16.msra.mxu1 %v2919_v8 }
 0x711   : > { %1942 = vmatprep.subr.bf16.mxu0 %v2912_v62  ;;  %2105 = vmatprep.subr.bf16.mxu1 %v3494_v26  ;;  %v2015_v62 = vld [vmem:[#allocation22] sm:$0x1] }
 0x714   : > { %1943 = vmatpush1.bf16.msra.mxu0 %v2910_v63  ;;  %2106 = vmatpush1.bf16.msra.mxu1 %v2920_v9  ;;  %v2016_v63 = vunpack.c.l.bf16 %v2015_v62 }
 0x715   : > { %1944 = vmatprep.subr.bf16.mxu0 %v2915_v0  ;;  %2107 = vmatprep.subr.bf16.mxu1 %v3494_v26 }
 0x716   : > { %v2020_v0 = vrot.slane %v2016_v63, %v4039_v40 }
 0x718   : > { %1945 = vmatpush1.bf16.msra.mxu0 %v2913_v2 }
 0x7be   : > { %v1605_v19 = vpop.f32.mrb[24].mxu0 }
 0x7bf   : > { %v2630_v20 = vpop.f32.mrb[25].mxu0 }
 0x7c0   : > { %v1608_v21 = vpop.f32.mrb[26].mxu0 }
 0x7c1   : > { %v2631_v22 = vpop.f32.mrb[27].mxu0 }
 0x7c2   : > { %v2921_v22 = vld [vmem:[#allocation20 + $0x28] sm:$0xff]  }
 0x7c3   : > { %2108 = vmatpush1.bf16.msra.mxu1 %v2921_v22 }
 0x7c4   : > { %2109 = vmatprep.subr.bf16.mxu1 %v3494_v26 }
 0x7c6   : > { %v1660_v23 = vpop.f32.mrb[16].mxu1 }
 0x7c7   : > { %v1776_v24 = vadd.f32 %v1660_v23, %v1605_v19  ;;  %v2638_v25 = vpop.f32.mrb[17].mxu1  ;;  %v2922_v23 = vld [vmem:[#allocation20 + $0x30] sm:$0xff]  }
 0x7c8   : > { %v1663_v27 = vpop.f32.mrb[18].mxu1  ;;  %2110 = vmatpush1.bf16.msra.mxu1 %v2922_v23  ;;  %v2924_v25 = vld [vmem:[#allocation20 + $0x40] sm:$0xff]  }
 0x7c9   : > { %v2639_v28 = vpop.f32.mrb[19].mxu1  ;;  %2111 = vmatprep.subr.bf16.mxu1 %v3494_v26  ;;  %v2925_v27 = vld [vmem:[#allocation20 + $0x48] sm:$0xff]  }
 0x7ca   : > { %v2926_v28 = vld [vmem:[#allocation20 + $0x50] sm:$0xff]  }
 0x7ce   : > { %v1715_v29 = vpop.f32.mrb[28].mxu0 }
 0x7cf   : > { %v1777_v31 = vadd.f32 %v1776_v24, %v1715_v29  ;;  %v2646_v32 = vpop.f32.mrb[29].mxu0  ;;  %v2923_v24 = vld [vmem:[#allocation20 + $0x38] sm:$0xff]  }
 0x7d0   : > { %v1718_v33 = vpop.f32.mrb[30].mxu0  ;;  %2112 = vmatpush1.bf16.msra.mxu1 %v2923_v24  ;;  %v2927_v29 = vld [vmem:[#allocation20 + $0x58] sm:$0xff]  }
 0x7d1   : > { %v2647_v35 = vpop.f32.mrb[31].mxu0  ;;  %2113 = vmatprep.subr.bf16.mxu1 %v3494_v26 }
 0x7d4   : > { %2114 = vmatpush1.bf16.msra.mxu1 %v2924_v25 }
 0x7d5   : > { %2115 = vmatprep.subr.bf16.mxu1 %v3494_v26 }
 0x7d6   : > { %v1770_v39 = vpop.f32.mrb[20].mxu1 }
 0x7d7   : > { %v1778_v41 = vadd.f32 %v1777_v31, %v1770_v39  ;;  %v2654_v42 = vpop.f32.mrb[21].mxu1  ;;  %v1830_v31 = vunpack.c.l.bf16 %v1829_v30 }
 0x7d8   : > { %v1773_v43 = vpop.f32.mrb[22].mxu1  ;;  %2116 = vmatpush1.bf16.msra.mxu1 %v2925_v27 }
 0x7d9   : > { %v1785_v44 = vadd.f32 %v1784_v38, %v1778_v41  ;;  %v2655_v34 = vpop.f32.mrb[23].mxu1  ;;  %2117 = vmatprep.subr.bf16.mxu1 %v3494_v26  ;;  %v1835_v32 = vrot.slane %v1830_v31, %v4039_v40  ;;  %v1839_v33 = vrot.slane %v1830_v31, %v764_v5 }
 0x7db   : > { %v4143_v45 = vadd.f32 %v1785_v44, %v4018_v1  ;;  %v1845_v35 = vrot.slane %v1835_v32, %v4039_v40  ;;  %v1849_v37 = vrot.slane %v1839_v33, %v4039_v40 }
 0x7dc   : > { %2118 = vmatpush1.bf16.msra.mxu1 %v2926_v28 }
 0x7dd   : > { %1787 = vadd.xlane.f32.xlu1 %v4143_v45  ;;  %2119 = vmatprep.subr.bf16.mxu1 %v3494_v26 }
 0x7e0   : > { %2120 = vmatpush1.bf16.msra.mxu1 %v2927_v29 }
 0x86a   : > { %v1788_v52 = vpop.xlane.xlu1 %1787 }
 0x86b   : > { %v1789_v53 = vmul.f32 0.0078125, %v1788_v52 }
 0x86d   : > { %v1790_v54 = vsub.f32 %v4143_v45, %v1789_v53 }
 0x86f   : > { %v1791_v1 = vmul.f32 %v1790_v54, %v1790_v54 }
 0x871   : > { %1792 = vadd.xlane.f32.xlu1 %v1791_v1 }
 0x8fe   : > { %v1793_v10 = vpop.xlane.xlu1 %1792 }
 0x8ff   : > { %v1794_v58 = vmul.f32 0.0078125, %v1793_v10 }
 0x901   : > { %v1795_v11 = vadd.f32 1e-05, %v1794_v58 }
 0x903   : > { %2946 = vrsqrt.f32 %v1795_v11 }
 0x90d   : > { %v2947_v17 = vpop.eup %2946 }
 0x90e   : > { %v1797_v4 = vmul.f32 %v2947_v17, %v1790_v54  ;;  %v2156_v17 = vld [vmem:[#allocation25] sm:$0x1] }
 0x910   : > { %v1804_v19 = vmul.f32 %v1803_v16, %v1797_v4  ;;  %v2149_v16 = vld [vmem:[#allocation23] sm:$0x1] }
 0x911   : > { %v2150_v4 = vunpack.c.l.bf16 %v2149_v16 }
 0x912   : > { %v1811_v20 = vadd.f32 %v1810_v18, %v1804_v19  ;;  %v2157_v18 = vunpack.c.l.bf16 %v2156_v17 }
 0x913   : > { %v2154_v19 = vrot.slane %v2150_v4, %v4039_v40 }
 0x914   : > { %v1812_v21 = vpack.c.bf16 %v1811_v20, %v1811_v20 }
 0x916   : > { %1963 = vmatmul.mubr.bf16.vlgmr.msra.gmra.mrb[32].mxu0 %v1812_v21  ;;  %v2161_v21 = vrot.slane %v2157_v18, %v4039_v40 }
 0x9e9   : > { %v1964_v38 = vpop.f32.mrb[32].mxu0 }
 0x9ea   : > { %v1965_v39 = vadd.f32 %v1964_v38, %v1845_v35  ;;  %v1966_v41 = vpop.f32.mrb[33].mxu0 }
 0x9eb   : > { %v1967_v42 = vadd.f32 %v1966_v41, %v1849_v37  ;;  %v1968_v43 = vpop.f32.mrb[34].mxu0 }
 0x9ec   : > { %v1975_v44 = vmul.f32 0.044715, %v1965_v39  ;;  %v1969_v34 = vpop.f32.mrb[35].mxu0  ;;  %v1973_v48 = vmul.f32 0.7978846, %v1965_v39  ;;  %v1971_v54 = vmul.f32 0.5, %v1965_v39 }
 0x9ed   : > { %v1976_v26 = vmul.f32 0.044715, %v1967_v42  ;;  %v1974_v50 = vmul.f32 0.7978846, %v1967_v42  ;;  %v1972_v55 = vmul.f32 0.5, %v1967_v42 }
 0x9ee   : > { %v1977_v46 = vmul.f32 %v1975_v44, %v1965_v39 }
 0x9ef   : > { %v1978_v47 = vmul.f32 %v1976_v26, %v1967_v42 }
 0x9f0   : > { %v1979_v49 = vadd.f32 1.0, %v1977_v46 }
 0x9f1   : > { %v1980_v51 = vadd.f32 1.0, %v1978_v47 }
 0x9f2   : > { %v1981_v36 = vmul.f32 %v1979_v49, %v1973_v48 }
 0x9f3   : > { %v1982_v5 = vmul.f32 %v1980_v51, %v1974_v50 }
 0x9f4   : > { %2948 = vtanh.f32 %v1981_v36 }
 0x9f5   : > { %2950 = vtanh.f32 %v1982_v5 }
 0x9fe   : > { %v2949_v52 = vpop.eup %2948 }
 0x9ff   : > { %v2951_v53 = vpop.eup %2950  ;;  %v1985_v1 = vadd.f32 1.0, %v2949_v52 }
 0xa00   : > { %v1986_v56 = vadd.f32 1.0, %v2951_v53 }
 0xa01   : > { %v1987_v57 = vmul.f32 %v1985_v1, %v1971_v54 }
 0xa02   : > { %v1988_v59 = vmul.f32 %v1986_v56, %v1972_v55 }
 0xa03   : > { %v1989_v61 = vpack.c.bf16 %v1987_v57, %v1987_v57 }
 0xa04   : > { %v1990_v60 = vpack.c.bf16 %v1988_v59, %v1988_v59 }
 0xa06   : > { %2490 = vmatprep.mubr.msk.bf16.mxu1 %vm2093_vm4, %v1990_v60 }
 0xa07   : > { %2130 = vmatmul.mubr.bf16.vlgmr.msra.gmra.mrb[24].mxu1 %v1989_v61 }
 0xada   : > { %v2131_v2 = vpop.f32.mrb[24].mxu1 }
 0xadb   : > { %v2132_v3 = vadd.f32 %v2131_v2, %v2020_v0  ;;  %v2133_v6 = vpop.f32.mrb[25].mxu1 }
 0xadc   : > { %v2134_v7 = vpop.f32.mrb[26].mxu1 }
 0xadd   : > { %v2135_v8 = vpop.f32.mrb[27].mxu1  ;;  %v2137_v9 = vadd.f32 %v2132_v3, %v4143_v45 }
 0xadf   : > { %2138 = vadd.xlane.f32.xlu1 %v2137_v9 }
 0xb6c   : > { %v2139_v10 = vpop.xlane.xlu1 %2138 }
 0xb6d   : > { %v2140_v58 = vmul.f32 0.0078125, %v2139_v10 }
 0xb6f   : > { %v2141_v11 = vsub.f32 %v2137_v9, %v2140_v58 }
 0xb71   : > { %v2142_v12 = vmul.f32 %v2141_v11, %v2141_v11 }
 0xb73   : > { %2143 = vadd.xlane.f32.xlu1 %v2142_v12 }
 0xc00   : > { %v2144_v13 = vpop.xlane.xlu1 %2143 }
 0xc01   : > { %v2145_v14 = vmul.f32 0.0078125, %v2144_v13 }
 0xc03   : > { %v2146_v15 = vadd.f32 1e-05, %v2145_v14 }
 0xc05   : > { %2952 = vrsqrt.f32 %v2146_v15 }
 0xc0f   : > { %v2953_v45 = vpop.eup %2952 }
 0xc10   : > { %v2148_v20 = vmul.f32 %v2953_v45, %v2141_v11 }
 0xc12   : > { %v2155_v22 = vmul.f32 %v2154_v19, %v2148_v20 }
 0xc14   : > { %v2162_v23 = vadd.f32 %v2161_v21, %v2155_v22 }
 0xc16   : > { %v2163_v24 = vpack.c.bf16 %v2162_v23, %v2162_v23 }
 0xc18   : > { %2164 = vst [vmem:[%s692_s18] sm:$0xf] %v2163_v24 }
 0xc19   : > { %3389 = shalt.err (!%p3386_p9)
}
 0xc1a   : > { %s3390_s20 = scalar_lea.hbm %s4175_s23, 64  ;;  %s3394_s3 = scalar_lea.hbm %s4293_s16, 128 }
 0xc1b   : > { %p3391_p4 = scmp.ne.s32.totalorder %s4175_s23, %s3390_s20  ;;  %p3395_p3 = scmp.lt.u32.totalorder %s4175_s23, %s4293_s16 }
 0xc1c   : > { %p3396_p2 = scmp.lt.u32.totalorder %s3394_s3, %s3390_s20  ;;  %p3398_p10 = scmp.lt.u32.totalorder %s3390_s20, %s4175_s23 }
 0xc1d   : > { %p3392_p13 = pnand %p3391_p4, %p4294_p11 }
 0xc1e   : > { %p3397_p0 = por %p3396_p2, %p3395_p3 }
 0xc1f   : > { %p3393_p1 = pneg %p3392_p13 }
 0xc20   : > { %p3399_p12 = por %p3398_p10, %p3397_p0 }
 0xc22   : > { %p3400_p8 = pnand %p3399_p12, %p3393_p1 }
 0xc24   : > { %3403 = shalt.err (!%p3400_p8)
}
 0xc25   : > { %2714 = dma.vmem_to_hbm [thread:$0]  (%p4294_p11), %s4177_s24, 64, %s4175_s23, %s2166_s19  }
 0xc26 PF: > { %s4295_s1 = sld [smem:[#allocation36_spill]]  ;;  %p4296_p5 = scmp.ne.s32.totalorder %s4272_s25, 0 }
 0xc27   : > { %p4297_p7 = scmp.ge.s32.totalorder %s3470_s21, 2 }
 0xc29   : > { %p2764_p6 = pnand %p4297_p7, %p4296_p5 }
 0xc2c   : > { %s2191_s22 = sand.u32 1, %s4295_s1  }
 0xc2d   : > { %s2192_s26 = scalar_lea.sflag [#allocation4], %s2191_s22 }
 0xc2e   : > { %3453 = dma.done.wait (!%p2764_p6), %s2192_s26, 64  }
 0xc2f   : > { %3455 = vsyncadd (!%p2764_p6), %s2192_s26, 4294967232  ;;  %s4298_s18 = sld [smem:[#allocation37_spill]]  ;;  %s4299_s19 = sld [smem:[#allocation38_spill]] }
 0xc30   : > { %p35_p9 = scmp.ge.s32.totalorder %s3904_s28, 4   ;;  %s4300_s20 = smov %s3915_s0 }
 0xc31   : > { %s4301_s21 = smov %s3904_s28 }
 0xc32   :  { %37 = sbr.rel (!%p35_p9) target bundleno = 17 (0x11), region = 181 }
 0xc39   :  { %2197 = vsyncpa [#allocation3], 1 }
 0xc3a   :  { %2199 = vsyncpa [#allocation3 + $0x1], 1 }
 0xc3b   :  { %2200 = vsyncpa [#allocation6], 1 }
 0xc3c   :  { %2201 = vsyncpa [#allocation9], 1 }
 0xc3d   :  { %2202 = vsyncpa [#allocation12], 1 }
 0xc3e   :  { %2203 = vsyncpa [#allocation15], 1 }
 0xc3f   :  { %2204 = vsyncpa [#allocation18], 1 }
 0xc40   :  { %2205 = vsyncpa [#allocation21], 1 }
 0xc41   :  { %2206 = vsyncpa [#allocation24], 1 }
 0xc42   :  { %2207 = vsyncpa [#allocation4], 1 }
 0xc43   :  { %2209 = vsyncpa [#allocation4 + $0x1], 1 }

// kernel: transformer_forward.2
= control target key start
LH: loop header
LB: loop body
LE: loop exit
PB: predicated region body
PF: predicated region fallthrough
CT: control target
= control target key end

     0   :  { %s4190_s0 = inlined_call_operand.hbm [shape: bf16[2,8,128], index: 0, kind: input, shape index: {}]   ;;  %s4191_s1 = inlined_call_operand.hbm [shape: bf16[1,128], index: 1, kind: input, shape index: {}]   ;;  %s4192_s2 = inlined_call_operand.hbm [shape: bf16[1,128], index: 2, kind: input, shape index: {}]   ;;  %s4193_s3 = inlined_call_operand.hbm [shape: bf16[128,384], index: 3, kind: input, shape index: {}]   ;;  %s4194_s4 = inlined_call_operand.hbm [shape: bf16[1,384], index: 4, kind: input, shape index: {}]   ;;  %s4195_s5 = inlined_call_operand.hbm [shape: bf16[128,128], index: 5, kind: input, shape index: {}]   ;;  %s4196_s6 = inlined_call_operand.hbm [shape: bf16[1,128], index: 6, kind: input, shape index: {}]   ;;  %s4197_s7 = inlined_call_operand.hbm [shape: bf16[1,128], index: 7, kind: input, shape index: {}]   ;;  %s4198_s8 = inlined_call_operand.hbm [shape: bf16[1,128], index: 8, kind: input, shape index: {}]   ;;  %s4199_s9 = inlined_call_operand.hbm [shape: bf16[128,192], index: 9, kind: input, shape index: {}]   ;;  %s4200_s10 = inlined_call_operand.hbm [shape: bf16[1,192], index: 10, kind: input, shape index: {}]   ;;  %s4201_s11 = inlined_call_operand.hbm [shape: bf16[192,128], index: 11, kind: input, shape index: {}]   ;;  %s4202_s12 = inlined_call_operand.hbm [shape: bf16[1,128], index: 12, kind: input, shape index: {}]   ;;  %s4203_s13 = inlined_call_operand.hbm [shape: bf16[1,128], index: 13, kind: input, shape index: {}]   ;;  %s4204_s14 = inlined_call_operand.hbm [shape: bf16[1,128], index: 14, kind: input, shape index: {}]   ;;  %s4205_s15 = inlined_call_operand.hbm [shape: bf16[2,8,128], index: 15, kind: output, shape index: {}]  }
   0x1   :  { %4219 = sst [smem:[#allocation41_spill]] %s4190_s0 }
   0x2   :  { %4220 = sst [smem:[#allocation42_spill]] %s4191_s1 }
   0x3   :  { %4221 = sst [smem:[#allocation43_spill]] %s4193_s3 }
   0x4   :  { %4222 = sst [smem:[#allocation44_spill]] %s4205_s15 }
   0x5   :  { %20 = vsyncpa [#allocation3], 0 }
   0x6   :  { %22 = vsyncpa [#allocation3 + $0x1], 0 }
   0x7   :  { %23 = vsyncpa [#allocation6], 0 }
   0x8   :  { %24 = vsyncpa [#allocation9], 0 }
   0x9   :  { %25 = vsyncpa [#allocation12], 0 }
   0xa   :  { %26 = vsyncpa [#allocation15], 0 }
   0xb   :  { %27 = vsyncpa [#allocation18], 0 }
   0xc   :  { %28 = vsyncpa [#allocation21], 0 }
   0xd   :  { %29 = vsyncpa [#allocation24], 0 }
   0xe   :  { %30 = vsyncpa [#allocation4], 0 }
   0xf   :  { %32 = vsyncpa [#allocation4 + $0x1], 0  ;;  %s3550_s18 = smov 0   ;;  %s3552_s19 = smov 0  }
  0x10   :  { %s3554_s20 = smov 0   ;;  %s3556_s21 = smov 0  }
  0x11 LB: > { %4223 = sst [smem:[#allocation36_spill]] %s3431_s18  ;;  %s3445_s22 = smov [#allocation5]   ;;  %s3443_s21 = sphi %s3556_s21, %s4272_s21   ;;  %s3439_s20 = sphi %s3554_s20, %s4271_s20   ;;  %s3435_s19 = sphi %s3552_s19, %s4270_s19   ;;  %s3431_s18 = sphi %s3550_s18, %s4269_s18  }
  0x12   : > { %4224 = sst [smem:[#allocation37_spill]] %s3435_s19  ;;  %s402_s23 = sshll.u32 %s3445_s22, 4  ;;  %s3576_s23 = int_to_ptr.vmem [resolvable:$true] %s402_s23 }
  0x13   : > { %4225 = sst [smem:[#allocation38_spill]] %s3439_s20  ;;  %s3571_s24 = sadd.s32 4294967295, %s3443_s21  }
  0x14   : > { %4226 = sst [smem:[#allocation39_spill]] %s3571_s24  ;;  %p2358_p0 = scmp.ge.s32.totalorder %s3443_s21, 1 }
  0x15   : > { %p4214_p1 = scmp.eq.s32.totalorder %s3571_s24, 0  ;;  %p389_p2 = scmp.lt.s32.totalorder %s3443_s21, 3 }
  0x16   : > { %s3446_s26 = smov [#allocation8]   ;;  %s3447_s29 = smov [#allocation11]  }
  0x17   : > { %p3578_p3 = pnand %p2358_p0, %p389_p2  ;;  %s423_s27 = sshll.u32 %s3446_s26, 4  ;;  %s3585_s27 = int_to_ptr.vmem [resolvable:$true] %s423_s27 }
  0x18   : > { %s447_s30 = sshll.u32 %s3447_s29, 4  ;;  %s4230_s1 = sld [smem:[#allocation42_spill]]  ;;  %s3593_s30 = int_to_ptr.vmem [resolvable:$true] %s447_s30 }
  0x19   : > { %s4227_s25 = scalar_select %p3578_p3, 1, 0 }
  0x1a   : > { %p2691_p5 = pneg %p3578_p3 }
  0x1b   : > { %4228 = sst [smem:[#allocation40_spill]] %s4227_s25 }
  0x1c   : > { %p3589_p6 = pnand %p2691_p5, %p4214_p1 }
  0x1e   : > { %s2927_s22 = scalar_lea.hbm %s4230_s1, 16  ;;  %p3603_p8 = pneg %p3589_p6 }
  0x1f   : > { %p2928_p7 = scmp.ne.s32.totalorder %s4230_s1, %s2927_s22  ;;  %p2934_p11 = scmp.lt.u32.totalorder %s2927_s22, %s4230_s1 }
  0x21   : > { %p2930_p9 = pnand %p3603_p8, %p2928_p7 }
  0x23   : > { %p2931_p10 = pneg %p2930_p9 }
  0x25   : > { %p2936_p12 = pnand %p2934_p11, %p2931_p10 }
  0x27   : > { %2939 = shalt.err (!%p2936_p12)
}
  0x28   : > { %s2940_s15 = scalar_lea.vmem %s3576_s23, 16  ;;  %s2947_s25 = scalar_lea.vmem %s3576_s23, 32 }
  0x29   : > { %p2941_p13 = scmp.ne.s32.totalorder %s3576_s23, %s2940_s15  ;;  %p2948_p5 = scmp.lt.s32.totalorder %s3576_s23, %s3576_s23 }
  0x2a   : > { %p2949_p7 = scmp.lt.s32.totalorder %s2947_s25, %s2940_s15 }
  0x2b   : > { %p2943_p0 = pnand %p2941_p13, %p3603_p8 }
  0x2c   : > { %p2950_p9 = por %p2949_p7, %p2948_p5 }
  0x2d   : > { %p2944_p2 = pneg %p2943_p0 }
  0x2f   : > { %p2951_p4 = pnand %p2950_p9, %p2944_p2 }
  0x31   : > { %2954 = shalt.err (!%p2951_p4)
}
  0x32   : > { %2694 = dma.hbm_to_vmem [thread:$0]  (!%p3589_p6), %s4230_s1, 16, %s3576_s23, [#allocation6]  }
  0x33   : > { %s4232_s3 = sld [smem:[#allocation43_spill]] }
  0x39   : > { %s2955_s29 = scalar_lea.hbm %s4232_s3, 3072 }
  0x3a   : > { %p2956_p10 = scmp.ne.s32.totalorder %s4232_s3, %s2955_s29  ;;  %p2962_p4 = scmp.lt.u32.totalorder %s2955_s29, %s4232_s3 }
  0x3c   : > { %p2958_p11 = pnand %p2956_p10, %p3603_p8 }
  0x3e   : > { %p2959_p12 = pneg %p2958_p11 }
  0x40   : > { %p2964_p13 = pnand %p2962_p4, %p2959_p12 }
  0x42   : > { %2967 = shalt.err (!%p2964_p13)
}
  0x43   : > { %s2968_s23 = scalar_lea.vmem %s3585_s27, 3072  ;;  %p2976_p7 = scmp.lt.s32.totalorder %s3585_s27, %s3585_s27 }
  0x44   : > { %p2969_p0 = scmp.ne.s32.totalorder %s3585_s27, %s2968_s23  ;;  %p2977_p9 = scmp.lt.s32.totalorder %s2968_s23, %s2968_s23 }
  0x46   : > { %p2971_p2 = pnand %p2969_p0, %p3603_p8  ;;  %p2978_p10 = por %p2977_p9, %p2976_p7 }
  0x48   : > { %p2972_p5 = pneg %p2971_p2 }
  0x4a   : > { %p2979_p11 = pnand %p2978_p10, %p2972_p5 }
  0x4c   : > { %2982 = shalt.err (!%p2979_p11)
}
  0x4d   : > { %s3448_s18 = smov 192   ;;  %s3449_s24 = smov 12  }
  0x4e   : > { %2700 = dma.hbm_to_vmem [thread:$0]  (!%p3589_p6), %s4232_s3, 3072, %s3585_s27, [#allocation9], %s3448_s18, %s3448_s18, %s3449_s24  }
  0x4f   : > { %s2983_s29 = scalar_lea.hbm %s4195_s5, 1024 }
  0x50   : > { %p2984_p12 = scmp.ne.s32.totalorder %s4195_s5, %s2983_s29  ;;  %p2990_p0 = scmp.lt.u32.totalorder %s2983_s29, %s4195_s5 }
  0x52   : > { %p2986_p4 = pnand %p2984_p12, %p3603_p8 }
  0x54   : > { %p2987_p13 = pneg %p2986_p4 }
  0x56   : > { %p2992_p2 = pnand %p2990_p0, %p2987_p13 }
  0x58   : > { %2995 = shalt.err (!%p2992_p2)
}
  0x59   : > { %s2996_s27 = scalar_lea.vmem %s3593_s30, 1024  ;;  %p3004_p10 = scmp.lt.s32.totalorder %s3593_s30, %s3593_s30 }
  0x5a   : > { %p2997_p5 = scmp.ne.s32.totalorder %s3593_s30, %s2996_s27  ;;  %p3005_p11 = scmp.lt.s32.totalorder %s2996_s27, %s2996_s27 }
  0x5c   : > { %p2999_p7 = pnand %p2997_p5, %p3603_p8  ;;  %p3006_p12 = por %p3005_p11, %p3004_p10 }
  0x5e   : > { %p3000_p9 = pneg %p2999_p7 }
  0x60   : > { %p3007_p4 = pnand %p3006_p12, %p3000_p9 }
  0x62   : > { %3010 = shalt.err (!%p3007_p4)
}
  0x63   : > { %s4216_s18 = smov 64   ;;  %s4217_s1 = smov 4  }
  0x64   : > { %2706 = dma.hbm_to_vmem [thread:$0]  (!%p3589_p6), %s4195_s5, 1024, %s3593_s30, [#allocation12], %s4216_s18, %s4216_s18, %s4217_s1  }
  0x65   : > { %s3452_s16 = smov [#allocation14]   ;;  %s3453_s22 = smov [#allocation17]  }
  0x66   : > { %s472_s17 = sshll.u32 %s3452_s16, 4  ;;  %s493_s29 = sshll.u32 %s3453_s22, 4  ;;  %s473_s17 = int_to_ptr.vmem [resolvable:$true] %s472_s17  ;;  %s494_s29 = int_to_ptr.vmem [resolvable:$true] %s493_s29 }
  0x67   : > { %s3011_s23 = scalar_lea.hbm %s4197_s7, 16 }
  0x68   : > { %p3012_p13 = scmp.ne.s32.totalorder %s4197_s7, %s3011_s23  ;;  %p3018_p5 = scmp.lt.u32.totalorder %s3011_s23, %s4197_s7 }
  0x6a   : > { %p3014_p0 = pnand %p3012_p13, %p3603_p8 }
  0x6c   : > { %p3015_p2 = pneg %p3014_p0 }
  0x6e   : > { %p3020_p7 = pnand %p3018_p5, %p3015_p2 }
  0x70   : > { %3023 = shalt.err (!%p3020_p7)
}
  0x71   : > { %s3024_s30 = scalar_lea.vmem %s473_s17, 16  ;;  %s3031_s24 = scalar_lea.vmem %s473_s17, 32 }
  0x72   : > { %p3025_p9 = scmp.ne.s32.totalorder %s473_s17, %s3024_s30  ;;  %p3032_p12 = scmp.lt.s32.totalorder %s473_s17, %s473_s17 }
  0x73   : > { %p3033_p4 = scmp.lt.s32.totalorder %s3031_s24, %s3024_s30 }
  0x74   : > { %p3027_p10 = pnand %p3025_p9, %p3603_p8 }
  0x75   : > { %p3034_p1 = por %p3033_p4, %p3032_p12 }
  0x76   : > { %p3028_p11 = pneg %p3027_p10 }
  0x78   : > { %p3035_p3 = pnand %p3034_p1, %p3028_p11 }
  0x7a   : > { %3038 = shalt.err (!%p3035_p3)
}
  0x7b   : > { %2712 = dma.hbm_to_vmem [thread:$0]  (!%p3589_p6), %s4197_s7, 16, %s473_s17, [#allocation15]  }
  0x7c   : > { %s3039_s16 = scalar_lea.hbm %s4199_s9, 2048 }
  0x7d   : > { %p3040_p13 = scmp.ne.s32.totalorder %s4199_s9, %s3039_s16  ;;  %p3046_p3 = scmp.lt.u32.totalorder %s3039_s16, %s4199_s9 }
  0x7f   : > { %p3042_p0 = pnand %p3040_p13, %p3603_p8 }
  0x81   : > { %p3043_p1 = pneg %p3042_p0 }
  0x83   : > { %p3048_p2 = pnand %p3046_p3, %p3043_p1 }
  0x85   : > { %3051 = shalt.err (!%p3048_p2)
}
  0x86   : > { %s3052_s27 = scalar_lea.vmem %s494_s29, 2048  ;;  %p3060_p10 = scmp.lt.s32.totalorder %s494_s29, %s494_s29 }
  0x87   : > { %p3053_p5 = scmp.ne.s32.totalorder %s494_s29, %s3052_s27  ;;  %p3061_p11 = scmp.lt.s32.totalorder %s3052_s27, %s3052_s27 }
  0x89   : > { %p3055_p7 = pnand %p3053_p5, %p3603_p8  ;;  %p3062_p12 = por %p3061_p11, %p3060_p10 }
  0x8b   : > { %p3056_p9 = pneg %p3055_p7 }
  0x8d   : > { %p3063_p4 = pnand %p3062_p12, %p3056_p9 }
  0x8f   : > { %3066 = shalt.err (!%p3063_p4)
}
  0x90   : > { %s3454_s17 = smov 128   ;;  %s3455_s30 = smov 8  }
  0x91   : > { %2718 = dma.hbm_to_vmem [thread:$0]  (!%p3589_p6), %s4199_s9, 2048, %s494_s29, [#allocation18], %s3454_s17, %s3454_s17, %s3455_s30  }
  0x92   : > { %s3456_s0 = smov [#allocation20]   ;;  %s3457_s20 = smov [#allocation23]  }
  0x93   : > { %s517_s19 = sshll.u32 %s3456_s0, 4  ;;  %s542_s16 = sshll.u32 %s3457_s20, 4  ;;  %s518_s19 = int_to_ptr.vmem [resolvable:$true] %s517_s19  ;;  %s543_s16 = int_to_ptr.vmem [resolvable:$true] %s542_s16 }
  0x94   : > { %s3067_s25 = scalar_lea.hbm %s4201_s11, 1536 }
  0x95   : > { %p3068_p13 = scmp.ne.s32.totalorder %s4201_s11, %s3067_s25  ;;  %p3074_p3 = scmp.lt.u32.totalorder %s3067_s25, %s4201_s11 }
  0x97   : > { %p3070_p0 = pnand %p3068_p13, %p3603_p8 }
  0x99   : > { %p3071_p1 = pneg %p3070_p0 }
  0x9b   : > { %p3076_p2 = pnand %p3074_p3, %p3071_p1 }
  0x9d   : > { %3079 = shalt.err (!%p3076_p2)
}
  0x9e   : > { %s3080_s29 = scalar_lea.vmem %s518_s19, 1536  ;;  %p3088_p10 = scmp.lt.s32.totalorder %s518_s19, %s518_s19 }
  0x9f   : > { %p3081_p5 = scmp.ne.s32.totalorder %s518_s19, %s3080_s29  ;;  %p3089_p11 = scmp.lt.s32.totalorder %s3080_s29, %s3080_s29 }
  0xa1   : > { %p3083_p7 = pnand %p3081_p5, %p3603_p8  ;;  %p3090_p12 = por %p3089_p11, %p3088_p10 }
  0xa3   : > { %p3084_p9 = pneg %p3083_p7 }
  0xa5   : > { %p3091_p4 = pnand %p3090_p12, %p3084_p9 }
  0xa7   : > { %3094 = shalt.err (!%p3091_p4)
}
  0xa8   : > { %s4233_s17 = smov 4   ;;  %s4234_s30 = smov 64  }
  0xa9   : > { %2724 = dma.hbm_to_vmem [thread:$0]  (!%p3589_p6), %s4201_s11, 1536, %s518_s19, [#allocation21], %s4234_s30, %s4234_s30, %s4233_s17  }
  0xaa   : > { %s3095_s0 = scalar_lea.hbm %s4203_s13, 16 }
  0xab   : > { %p3096_p13 = scmp.ne.s32.totalorder %s4203_s13, %s3095_s0  ;;  %p3102_p3 = scmp.lt.u32.totalorder %s3095_s0, %s4203_s13 }
  0xad   : > { %p3098_p0 = pnand %p3096_p13, %p3603_p8 }
  0xaf   : > { %p3099_p1 = pneg %p3098_p0 }
  0xb1   : > { %p3104_p2 = pnand %p3102_p3, %p3099_p1 }
  0xb3   : > { %3107 = shalt.err (!%p3104_p2)
}
  0xb4   : > { %s3108_s23 = scalar_lea.vmem %s543_s16, 16  ;;  %s3115_s19 = scalar_lea.vmem %s543_s16, 32 }
  0xb5   : > { %p3109_p5 = scmp.ne.s32.totalorder %s543_s16, %s3108_s23  ;;  %p3116_p10 = scmp.lt.s32.totalorder %s543_s16, %s543_s16 }
  0xb6   : > { %p3117_p11 = scmp.lt.s32.totalorder %s3115_s19, %s3108_s23 }
  0xb7   : > { %p3111_p7 = pnand %p3109_p5, %p3603_p8 }
  0xb8   : > { %p3118_p12 = por %p3117_p11, %p3116_p10 }
  0xb9   : > { %p3112_p9 = pneg %p3111_p7 }
  0xbb   : > { %p3119_p4 = pnand %p3118_p12, %p3112_p9 }
  0xbd   : > { %3122 = shalt.err (!%p3119_p4)
}
  0xbe   : > { %2730 = dma.hbm_to_vmem [thread:$0]  (!%p3589_p6), %s4203_s13, 16, %s543_s16, [#allocation24]  }
  0xbf   : > { %s3458_s17 = smov [#allocation7]   ;;  %s3459_s18 = smov [#allocation10]  }
  0xc0   : > { %s413_s30 = sshll.u32 %s3458_s17, 4  ;;  %s437_s1 = sshll.u32 %s3459_s18, 4  ;;  %s414_s30 = int_to_ptr.vmem [resolvable:$true] %s413_s30  ;;  %s438_s1 = int_to_ptr.vmem [resolvable:$true] %s437_s1 }
  0xc1   : > { %s3123_s0 = scalar_lea.hbm %s4192_s2, 16 }
  0xc2   : > { %p3124_p13 = scmp.ne.s32.totalorder %s4192_s2, %s3123_s0  ;;  %p3130_p3 = scmp.lt.u32.totalorder %s3123_s0, %s4192_s2 }
  0xc4   : > { %p3126_p0 = pnand %p3124_p13, %p3603_p8 }
  0xc6   : > { %p3127_p1 = pneg %p3126_p0 }
  0xc8   : > { %p3132_p2 = pnand %p3130_p3, %p3127_p1 }
  0xca   : > { %3135 = shalt.err (!%p3132_p2)
}
  0xcb   : > { %s3136_s16 = scalar_lea.vmem %s414_s30, 16  ;;  %s3143_s23 = scalar_lea.vmem %s414_s30, 32 }
  0xcc   : > { %p3137_p5 = scmp.ne.s32.totalorder %s414_s30, %s3136_s16  ;;  %p3144_p10 = scmp.lt.s32.totalorder %s414_s30, %s414_s30 }
  0xcd   : > { %p3145_p11 = scmp.lt.s32.totalorder %s3143_s23, %s3136_s16 }
  0xce   : > { %p3139_p7 = pnand %p3137_p5, %p3603_p8 }
  0xcf   : > { %p3146_p12 = por %p3145_p11, %p3144_p10 }
  0xd0   : > { %p3140_p9 = pneg %p3139_p7 }
  0xd2   : > { %p3147_p4 = pnand %p3146_p12, %p3140_p9 }
  0xd4   : > { %3150 = shalt.err (!%p3147_p4)
}
  0xd5   : > { %2697 = dma.hbm_to_vmem [thread:$0]  (!%p3589_p6), %s4192_s2, 16, %s414_s30, [#allocation6]  }
  0xd6   : > { %s3151_s18 = scalar_lea.hbm %s4194_s4, 48 }
  0xd7   : > { %p3152_p13 = scmp.ne.s32.totalorder %s4194_s4, %s3151_s18  ;;  %p3158_p3 = scmp.lt.u32.totalorder %s3151_s18, %s4194_s4 }
  0xd9   : > { %p3154_p0 = pnand %p3152_p13, %p3603_p8 }
  0xdb   : > { %p3155_p1 = pneg %p3154_p0 }
  0xdd   : > { %p3160_p2 = pnand %p3158_p3, %p3155_p1 }
  0xdf   : > { %3163 = shalt.err (!%p3160_p2)
}
  0xe0   : > { %s3164_s22 = scalar_lea.vmem %s438_s1, 48  ;;  %s3171_s30 = scalar_lea.vmem %s438_s1, 64 }
  0xe1   : > { %p3165_p5 = scmp.ne.s32.totalorder %s438_s1, %s3164_s22  ;;  %p3172_p10 = scmp.lt.s32.totalorder %s438_s1, %s438_s1 }
  0xe2   : > { %p3173_p11 = scmp.lt.s32.totalorder %s3171_s30, %s3164_s22 }
  0xe3   : > { %p3167_p7 = pnand %p3165_p5, %p3603_p8 }
  0xe4   : > { %p3174_p12 = por %p3173_p11, %p3172_p10 }
  0xe5   : > { %p3168_p9 = pneg %p3167_p7 }
  0xe7   : > { %p3175_p4 = pnand %p3174_p12, %p3168_p9 }
  0xe9   : > { %3178 = shalt.err (!%p3175_p4)
}
  0xea   : > { %2703 = dma.hbm_to_vmem [thread:$0]  (!%p3589_p6), %s4194_s4, 48, %s438_s1, [#allocation9]  }
  0xeb   : > { %s3460_s16 = smov [#allocation13]   ;;  %s3461_s19 = smov [#allocation16]  }
  0xec   : > { %s461_s23 = sshll.u32 %s3460_s16, 4  ;;  %s483_s27 = sshll.u32 %s3461_s19, 4  ;;  %s462_s23 = int_to_ptr.vmem [resolvable:$true] %s461_s23  ;;  %s484_s27 = int_to_ptr.vmem [resolvable:$true] %s483_s27 }
  0xed   : > { %s3179_s18 = scalar_lea.hbm %s4196_s6, 16 }
  0xee   : > { %p3180_p13 = scmp.ne.s32.totalorder %s4196_s6, %s3179_s18  ;;  %p3186_p3 = scmp.lt.u32.totalorder %s3179_s18, %s4196_s6 }
  0xf0   : > { %p3182_p0 = pnand %p3180_p13, %p3603_p8 }
  0xf2   : > { %p3183_p1 = pneg %p3182_p0 }
  0xf4   : > { %p3188_p2 = pnand %p3186_p3, %p3183_p1 }
  0xf6   : > { %3191 = shalt.err (!%p3188_p2)
}
  0xf7   : > { %s3192_s1 = scalar_lea.vmem %s462_s23, 16  ;;  %s3199_s22 = scalar_lea.vmem %s462_s23, 32 }
  0xf8   : > { %p3193_p5 = scmp.ne.s32.totalorder %s462_s23, %s3192_s1  ;;  %p3200_p10 = scmp.lt.s32.totalorder %s462_s23, %s462_s23 }
  0xf9   : > { %p3201_p11 = scmp.lt.s32.totalorder %s3199_s22, %s3192_s1 }
  0xfa   : > { %p3195_p7 = pnand %p3193_p5, %p3603_p8 }
  0xfb   : > { %p3202_p12 = por %p3201_p11, %p3200_p10 }
  0xfc   : > { %p3196_p9 = pneg %p3195_p7 }
  0xfe   : > { %p3203_p4 = pnand %p3202_p12, %p3196_p9 }
 0x100   : > { %3206 = shalt.err (!%p3203_p4)
}
 0x101   : > { %2709 = dma.hbm_to_vmem [thread:$0]  (!%p3589_p6), %s4196_s6, 16, %s462_s23, [#allocation12]  }
 0x102   : > { %s3207_s19 = scalar_lea.hbm %s4198_s8, 16 }
 0x103   : > { %p3208_p13 = scmp.ne.s32.totalorder %s4198_s8, %s3207_s19  ;;  %p3214_p3 = scmp.lt.u32.totalorder %s3207_s19, %s4198_s8 }
 0x105   : > { %p3210_p0 = pnand %p3208_p13, %p3603_p8 }
 0x107   : > { %p3211_p1 = pneg %p3210_p0 }
 0x109   : > { %p3216_p2 = pnand %p3214_p3, %p3211_p1 }
 0x10b   : > { %3219 = shalt.err (!%p3216_p2)
}
 0x10c   : > { %s3220_s3 = scalar_lea.vmem %s484_s27, 16  ;;  %s3227_s23 = scalar_lea.vmem %s484_s27, 32 }
 0x10d   : > { %p3221_p5 = scmp.ne.s32.totalorder %s484_s27, %s3220_s3  ;;  %p3228_p10 = scmp.lt.s32.totalorder %s484_s27, %s484_s27 }
 0x10e   : > { %p3229_p11 = scmp.lt.s32.totalorder %s3227_s23, %s3220_s3 }
 0x10f   : > { %p3223_p7 = pnand %p3221_p5, %p3603_p8 }
 0x110   : > { %p3230_p12 = por %p3229_p11, %p3228_p10 }
 0x111   : > { %p3224_p9 = pneg %p3223_p7 }
 0x113   : > { %p3231_p4 = pnand %p3230_p12, %p3224_p9 }
 0x115   : > { %3234 = shalt.err (!%p3231_p4)
}
 0x116   : > { %2715 = dma.hbm_to_vmem [thread:$0]  (!%p3589_p6), %s4198_s8, 16, %s484_s27, [#allocation15]  }
 0x117   : > { %s3462_s1 = smov [#allocation19]   ;;  %s3463_s30 = smov [#allocation22]  }
 0x118   : > { %s507_s22 = sshll.u32 %s3462_s1, 4  ;;  %s531_s15 = sshll.u32 %s3463_s30, 4  ;;  %s508_s22 = int_to_ptr.vmem [resolvable:$true] %s507_s22  ;;  %s532_s15 = int_to_ptr.vmem [resolvable:$true] %s531_s15 }
 0x119   : > { %s3235_s19 = scalar_lea.hbm %s4200_s10, 32 }
 0x11a   : > { %p3236_p13 = scmp.ne.s32.totalorder %s4200_s10, %s3235_s19  ;;  %p3242_p3 = scmp.lt.u32.totalorder %s3235_s19, %s4200_s10 }
 0x11c   : > { %p3238_p0 = pnand %p3236_p13, %p3603_p8 }
 0x11e   : > { %p3239_p1 = pneg %p3238_p0 }
 0x120   : > { %p3244_p2 = pnand %p3242_p3, %p3239_p1 }
 0x122   : > { %3247 = shalt.err (!%p3244_p2)
}
 0x123   : > { %s3248_s27 = scalar_lea.vmem %s508_s22, 32  ;;  %p3256_p10 = scmp.lt.s32.totalorder %s508_s22, %s508_s22 }
 0x124   : > { %p3249_p5 = scmp.ne.s32.totalorder %s508_s22, %s3248_s27  ;;  %p3257_p11 = scmp.lt.s32.totalorder %s3248_s27, %s3248_s27 }
 0x126   : > { %p3251_p7 = pnand %p3249_p5, %p3603_p8  ;;  %p3258_p12 = por %p3257_p11, %p3256_p10 }
 0x128   : > { %p3252_p9 = pneg %p3251_p7 }
 0x12a   : > { %p3259_p4 = pnand %p3258_p12, %p3252_p9 }
 0x12c   : > { %3262 = shalt.err (!%p3259_p4)
}
 0x12d   : > { %2721 = dma.hbm_to_vmem [thread:$0]  (!%p3589_p6), %s4200_s10, 32, %s508_s22, [#allocation18]  }
 0x12e   : > { %s3263_s1 = scalar_lea.hbm %s4202_s12, 16 }
 0x12f   : > { %p3264_p13 = scmp.ne.s32.totalorder %s4202_s12, %s3263_s1  ;;  %p3270_p3 = scmp.lt.u32.totalorder %s3263_s1, %s4202_s12 }
 0x131   : > { %p3266_p0 = pnand %p3264_p13, %p3603_p8 }
 0x133   : > { %p3267_p1 = pneg %p3266_p0 }
 0x135   : > { %p3272_p2 = pnand %p3270_p3, %p3267_p1 }
 0x137   : > { %3275 = shalt.err (!%p3272_p2)
}
 0x138   : > { %s3276_s29 = scalar_lea.vmem %s532_s15, 16  ;;  %s3283_s22 = scalar_lea.vmem %s532_s15, 32 }
 0x139   : > { %p3277_p5 = scmp.ne.s32.totalorder %s532_s15, %s3276_s29  ;;  %p3284_p10 = scmp.lt.s32.totalorder %s532_s15, %s532_s15 }
 0x13a   : > { %p3285_p11 = scmp.lt.s32.totalorder %s3283_s22, %s3276_s29 }
 0x13b   : > { %p3279_p7 = pnand %p3277_p5, %p3603_p8 }
 0x13c   : > { %p3286_p12 = por %p3285_p11, %p3284_p10 }
 0x13d   : > { %p3280_p9 = pneg %p3279_p7 }
 0x13f   : > { %p3287_p4 = pnand %p3286_p12, %p3280_p9 }
 0x141   : > { %3290 = shalt.err (!%p3287_p4)
}
 0x142   : > { %2727 = dma.hbm_to_vmem [thread:$0]  (!%p3589_p6), %s4202_s12, 16, %s532_s15, [#allocation21]  }
 0x143   : > { %s3464_s24 = smov [#allocation25]   ;;  %s3291_s0 = scalar_lea.hbm %s4204_s14, 16 }
 0x144   : > { %s553_s27 = sshll.u32 %s3464_s24, 4  ;;  %p3292_p13 = scmp.ne.s32.totalorder %s4204_s14, %s3291_s0  ;;  %s554_s27 = int_to_ptr.vmem [resolvable:$true] %s553_s27 }
 0x145   : > { %p3298_p3 = scmp.lt.u32.totalorder %s3291_s0, %s4204_s14 }
 0x146   : > { %p3294_p0 = pnand %p3292_p13, %p3603_p8 }
 0x148   : > { %p3295_p1 = pneg %p3294_p0 }
 0x14a   : > { %p3300_p2 = pnand %p3298_p3, %p3295_p1 }
 0x14c   : > { %3303 = shalt.err (!%p3300_p2)
}
 0x14d   : > { %s3304_s15 = scalar_lea.vmem %s554_s27, 16  ;;  %s3311_s16 = scalar_lea.vmem %s554_s27, 32 }
 0x14e   : > { %p3305_p5 = scmp.ne.s32.totalorder %s554_s27, %s3304_s15  ;;  %p3312_p10 = scmp.lt.s32.totalorder %s554_s27, %s554_s27 }
 0x14f   : > { %p3313_p11 = scmp.lt.s32.totalorder %s3311_s16, %s3304_s15 }
 0x150   : > { %p3307_p7 = pnand %p3305_p5, %p3603_p8 }
 0x151   : > { %p3314_p12 = por %p3313_p11, %p3312_p10 }
 0x152   : > { %p3308_p9 = pneg %p3307_p7 }
 0x154   : > { %p3315_p4 = pnand %p3314_p12, %p3308_p9 }
 0x156   : > { %3318 = shalt.err (!%p3315_p4)
}
 0x157   : > { %s4235_s22 = sld [smem:[#allocation38_spill]]  ;;  %s4236_s17 = sld [smem:[#allocation37_spill]] }
 0x158   : > { %s4237_s26 = sld [smem:[#allocation36_spill]]  ;;  %s4238_s18 = sld [smem:[#allocation39_spill]] }
 0x159   : > { %2733 = dma.hbm_to_vmem [thread:$0]  (!%p3589_p6), %s4204_s14, 16, %s554_s27, [#allocation24]  }
 0x15a   : > { %s2357_s24 = sadd.s32 4294967294, %s3443_s21   ;;  %s3877_s28 = sadd.s32 1, %s3443_s21  }
 0x15b   : > { %s42_s3 = ssub.s32 %s3443_s21, %s3877_s28  ;;  %p53_p0 = scmp.eq.s32.totalorder %s3443_s21, 0 }
 0x15c   : > { %p43_p8 = scmp.eq.s32.totalorder %s42_s3, 0  ;;  %p382_p7 = scmp.eq.s32.totalorder %s2357_s24, 1 }
 0x15d   : > { %s45_s23 = sadd.s32 1, %s4235_s22  ;;  %p52_p13 = scmp.ne.s32.totalorder %s4235_s22, %s4236_s17 }
 0x15e   : > { %p58_p1 = scmp.ne.s32.totalorder %s4236_s17, %s4237_s26  ;;  %p4240_p2 = scmp.eq.s32.totalorder %s4238_s18, 0 }
 0x15f   : > { %s3888_s0 = scalar_select %p43_p8, %s4235_s22, %s45_s23  }
 0x160   : > { %p3890_p3 = por %p53_p0, %p52_p13  ;;  %p3896_p6 = por %p4240_p2, %p58_p1 }
 0x161   : > { %p376_p5 = scmp.eq.s32.totalorder %s4238_s18, 1  ;;  %p2756_p9 = scmp.lt.s32.totalorder %s3443_s21, 2 }
 0x162   : > { %s564_s1 = sand.u32 1, %s4235_s22   ;;  %p3907_p11 = por %p382_p7, %p58_p1 }
 0x163   : > { %p3903_p10 = por %p376_p5, %p52_p13  ;;  %s2374_s15 = sshll.u32 %s564_s1, 2 }
 0x164   : > { %s4243_s25 = scalar_select %p3907_p11, 1, 0 }
 0x165   : > { %s4242_s30 = scalar_select %p3903_p10, 1, 0 }
 0x166   : > { %s2375_s16 = sshll.u32 %s3443_s21, 6  ;;  %s4244_s17 = sld [smem:[#allocation41_spill]] }
 0x167   : > { %s568_s22 = scalar_lea.vmem [#allocation2], %s2374_s15  ;;  %p3921_p12 = pnand %p2756_p9, %p3890_p3 }
 0x168   : > { %s575_s18 = sshll.u32 %s568_s22, 4  ;;  %s565_s3 = scalar_lea.sflag [#allocation3], %s564_s1  ;;  %s3917_s18 = int_to_ptr.vmem [resolvable:$true] %s575_s18 }
 0x169   : > { %p3321_p8 = pneg %p3921_p12 }
 0x16c   : > { %s3915_s26 = scalar_lea.hbm %s4244_s17, %s2375_s16  ;;  %s3324_s19 = scalar_lea.hbm %s4244_s17, 128 }
 0x16d   : > { %s3319_s23 = scalar_lea.hbm %s3915_s26, 64  ;;  %p3325_p1 = scmp.lt.u32.totalorder %s3915_s26, %s4244_s17 }
 0x16e   : > { %p3320_p4 = scmp.ne.s32.totalorder %s3915_s26, %s3319_s23  ;;  %p3326_p3 = scmp.lt.u32.totalorder %s3324_s19, %s3319_s23 }
 0x16f   : > { %p3328_p5 = scmp.lt.u32.totalorder %s3319_s23, %s3915_s26 }
 0x170   : > { %p3322_p13 = pnand %p3321_p8, %p3320_p4  ;;  %p3327_p2 = por %p3326_p3, %p3325_p1 }
 0x172   : > { %p3323_p0 = pneg %p3322_p13  ;;  %p3329_p7 = por %p3328_p5, %p3327_p2 }
 0x174   : > { %p3330_p9 = pnand %p3329_p7, %p3323_p0 }
 0x176   : > { %3333 = shalt.err (!%p3330_p9)
}
 0x177   : > { %s3334_s1 = scalar_lea.vmem %s3917_s18, 64  ;;  %s3465_s22 = smov [#allocation2]  }
 0x178   : > { %p3335_p4 = scmp.ne.s32.totalorder %s3917_s18, %s3334_s1  ;;  %s3339_s15 = sshll.u32 %s3465_s22, 4  ;;  %s3340_s15 = int_to_ptr.vmem [resolvable:$false] %s3339_s15 }
 0x179   : > { %s3341_s16 = scalar_lea.vmem %s3340_s15, 128  ;;  %p3342_p10 = scmp.lt.s32.totalorder %s3917_s18, %s3340_s15 }
 0x17a   : > { %p3337_p13 = pnand %p3335_p4, %p3321_p8  ;;  %p3343_p1 = scmp.lt.s32.totalorder %s3341_s16, %s3334_s1 }
 0x17c   : > { %p3338_p11 = pneg %p3337_p13  ;;  %p3344_p3 = por %p3343_p1, %p3342_p10 }
 0x17e   : > { %p3345_p2 = pnand %p3344_p3, %p3338_p11 }
 0x180   : > { %3348 = shalt.err (!%p3345_p2)
}
 0x181   : > { %2737 = dma.hbm_to_vmem [thread:$0]  (!%p3921_p12), %s3915_s26, 64, %s3917_s18, %s565_s3  }
 0x182   : > { %s4246_s23 = sld [smem:[#allocation40_spill]] }
 0x188   : > { %p4247_p0 = scmp.ne.s32.totalorder %s4246_s23, 0 }
 0x189   : > { %s4248_s19 = sld [smem:[#allocation37_spill]] (!%p4247_p0) }
 0x18a   : > { %584 = sbr.rel (%p4247_p0) target bundleno = 2799 (0xaef), region = 80 }
 0x18f   : > { %s3953_s20 = sand.u32 (!%p4247_p0), 1, %s4248_s19  }
 0x190   : > { %s2377_s29 = sshll.u32 (!%p4247_p0), %s3953_s20, 2  ;;  %s587_s1 = scalar_lea.sflag (!%p4247_p0), [#allocation3], %s3953_s20 }
 0x191   : > { %s590_s22 = scalar_lea.vmem [#allocation2], %s2377_s29 }
 0x192   : > { %3394 = dma.done.wait (%p3896_p6), %s587_s1, 64  }
 0x193   : > { %3396 = vsyncadd (%p3896_p6), %s587_s1, 4294967232  ;;  %s4249_s26 = sld [smem:[#allocation39_spill]] }
 0x199   : > { %p4250_p10 = scmp.eq.s32.totalorder %s4249_s26, 0 }
 0x19b   : > { %3398 = dma.done.wait (%p4250_p10), [#allocation6], 32   ;;  %p4251_p11 = pmov %p4250_p10 }
 0x19c   : > { %p4252_p12 = pmov %p4250_p10 }
 0x19d   : > { %3400 = vsyncadd (%p4251_p11), [#allocation6], 4294967264 }
 0x19e   : > { %3402 = dma.done.wait (%p4252_p12), [#allocation9], 3120   ;;  %p4253_p8 = pmov %p4250_p10 }
 0x1a0   : > { %3404 = vsyncadd (%p4253_p8), [#allocation9], 4294964176  ;;  %p4254_p5 = pmov %p4253_p8 }
 0x1a2   : > { %3406 = dma.done.wait (%p4254_p5), [#allocation12], 1040   ;;  %p4255_p7 = pmov %p4254_p5 }
 0x1a3   : > { %p4256_p6 = pmov %p4254_p5 }
 0x1a4   : > { %3408 = vsyncadd (%p4255_p7), [#allocation12], 4294966256 }
 0x1a5   : > { %3410 = dma.done.wait (%p4256_p6), [#allocation15], 32   ;;  %p4257_p9 = pmov %p4254_p5 }
 0x1a6   : > { %p4258_p4 = pmov %p4254_p5 }
 0x1a7   : > { %3412 = vsyncadd (%p4257_p9), [#allocation15], 4294967264 }
 0x1a8   : > { %3414 = dma.done.wait (%p4258_p4), [#allocation18], 2080   ;;  %p4259_p13 = pmov %p4258_p4 }
 0x1a9   : > { %p4260_p1 = pmov %p4258_p4 }
 0x1aa   : > { %3416 = vsyncadd (%p4259_p13), [#allocation18], 4294965216 }
 0x1ab   : > { %3418 = dma.done.wait (%p4260_p1), [#allocation21], 1552   ;;  %p4261_p3 = pmov %p4260_p1 }
 0x1ac   : > { %p4262_p2 = pmov %p4260_p1 }
 0x1ad   : > { %3420 = vsyncadd (%p4261_p3), [#allocation21], 4294965744 }
 0x1ae   : > { %3422 = dma.done.wait (%p4262_p2), [#allocation24], 32   ;;  %p4263_p0 = pmov %p4260_p1 }
 0x1af   : > { %v694_v0 = vld [vmem:[%s590_s22] sm:$0xf]  ;;  %v2827_v2 = vld [vmem:[#allocation8 + $0x4] ss:$12 sps:$4 sm:$0xff]   ;;  %v2829_v3 = vld [vmem:[#allocation8] ss:$12 sps:$4 sm:$0xff]   ;;  %v710_v34 = vlaneseq }
 0x1b0   : > { %3424 = vsyncadd (%p4263_p0), [#allocation24], 4294967264  ;;  %v3991_v1 = vunpack.c.l.bf16 %v694_v0  ;;  %v3466_v4 = vmov 0.0   ;;  %v2830_v5 = vld [vmem:[#allocation8 + $0x8] ss:$12 sps:$4 sm:$0xff]   ;;  %913 = vmatprep.subr.bf16.mxu0 %v2827_v2  ;;  %v3467_v26 = vmov 0  }
 0x1b1   : > { %2515 = vmatprep.subr.bf16.mxu1 %v3466_v4  ;;  %v2831_v6 = vld [vmem:[#allocation8 + $0x1c] ss:$12 sps:$4 sm:$0xff]   ;;  %v2833_v7 = vld [vmem:[#allocation8 + $0x18] ss:$12 sps:$4 sm:$0xff]   ;;  %v2834_v8 = vld [vmem:[#allocation8 + $0x20] ss:$12 sps:$4 sm:$0xff]   ;;  %914 = vmatpush1.bf16.msra.mxu0 %v2829_v3 }
 0x1b2   : > { %696 = vadd.xlane.f32.xlu0 %v3991_v1  ;;  %v2835_v9 = vld [vmem:[#allocation8 + $0x34] ss:$12 sps:$4 sm:$0xff]   ;;  %2516 = vmatpush3.bf16.msra.mxu1 %v2830_v5  ;;  %v2837_v14 = vld [vmem:[#allocation8 + $0x30] ss:$12 sps:$4 sm:$0xff]   ;;  %v2838_v15 = vld [vmem:[#allocation8 + $0x38] ss:$12 sps:$4 sm:$0xff]  }
 0x1b3   : > { %915 = vmatprep.subr.bf16.mxu0 %v2831_v6  ;;  %2517 = vmatprep.subr.bf16.mxu1 %v3466_v4  ;;  %v2839_v16 = vld [vmem:[#allocation8 + $0x4c] ss:$12 sps:$4 sm:$0xff]   ;;  %v2841_v17 = vld [vmem:[#allocation8 + $0x48] ss:$12 sps:$4 sm:$0xff]   ;;  %v2842_v18 = vld [vmem:[#allocation8 + $0x50] ss:$12 sps:$4 sm:$0xff]  }
 0x1b4   : > { %v2843_v19 = vld [vmem:[#allocation8 + $0x64] ss:$12 sps:$4 sm:$0xff]   ;;  %v2845_v20 = vld [vmem:[#allocation8 + $0x60] ss:$12 sps:$4 sm:$0xff]   ;;  %v2846_v21 = vld [vmem:[#allocation8 + $0x68] ss:$12 sps:$4 sm:$0xff]   ;;  %945 = vmatprep.mubr.bf16.mxu0 %v3467_v26 }
 0x1b5   : > { %916 = vmatpush1.bf16.msra.mxu0 %v2833_v7  ;;  %v2847_v22 = vld [vmem:[#allocation8 + $0x7c] ss:$12 sps:$4 sm:$0xff]   ;;  %v2849_v23 = vld [vmem:[#allocation8 + $0x78] ss:$12 sps:$4 sm:$0xff]   ;;  %v2850_v24 = vld [vmem:[#allocation8 + $0x80] ss:$12 sps:$4 sm:$0xff]  }
 0x1b6   : > { %2518 = vmatpush3.bf16.msra.mxu1 %v2834_v8  ;;  %917 = vmatprep.subr.bf16.mxu0 %v2835_v9  ;;  %v2851_v25 = vld [vmem:[#allocation8 + $0x94] ss:$12 sps:$4 sm:$0xff]   ;;  %vm3468_vm0 = vmmov 0   ;;  %v2853_v27 = vld [vmem:[#allocation8 + $0x90] ss:$12 sps:$4 sm:$0xff]   ;;  %v4009_v36 = vshrl.u32 %v710_v34, 7 }
 0x1b7   : > { %2519 = vmatprep.subr.bf16.mxu1 %v3466_v4  ;;  %2531 = vmatprep.mubr.msk.bf16.mxu1 %vm3468_vm0, %v3466_v4  ;;  %v2854_v28 = vld [vmem:[#allocation8 + $0x98] ss:$12 sps:$4 sm:$0xff]   ;;  %v2857_v30 = vld [vmem:[#allocation8 + $0xa8] ss:$12 sps:$4 sm:$0xff]   ;;  %v2858_v31 = vld [vmem:[#allocation8 + $0xb0] ss:$12 sps:$4 sm:$0xff]  }
 0x1b8   : > { %v2855_v29 = vld [vmem:[#allocation8 + $0xac] ss:$12 sps:$4 sm:$0xff]   ;;  %v708_v37 = vld [vmem:[#allocation5] sm:$0x1]  ;;  %v715_v38 = vld [vmem:[#allocation7] sm:$0x1] }
 0x1b9   : > { %918 = vmatpush1.bf16.msra.mxu0 %v2837_v14  ;;  %v709_v39 = vunpack.c.l.bf16 %v708_v37  ;;  %v4012_v40 = vsub.s32 0, %v4009_v36  ;;  %v716_v41 = vunpack.c.l.bf16 %v715_v38  ;;  %v755_v49 = vld [vmem:[#allocation10] sm:$0x7]  ;;  %v768_v51 = vsub.s32 4, %v4009_v36  ;;  %s2467_s27 = sshll.u32 %s4249_s26, 6  ;;  %s692_s18 = scalar_lea.vmem [#allocation26], %s2377_s29 }
 0x1ba   : > { %2520 = vmatpush3.bf16.msra.mxu1 %v2838_v15  ;;  %919 = vmatprep.subr.bf16.mxu0 %v2839_v16  ;;  %v756_v50 = vunpack.c.l.bf16 %v755_v49  ;;  %v764_v5 = vsub.s32 2, %v4009_v36  ;;  %vm1109_vm1 = vcmask 261120   ;;  %vm1291_vm3 = vcmask 64512   ;;  %s2154_s24 = sshll.u32 %s692_s18, 4  ;;  %s4264_s16 = sld [smem:[#allocation44_spill]]  ;;  %s4148_s24 = int_to_ptr.vmem [resolvable:$true] %s2154_s24 }
 0x1bb   : > { %2521 = vmatprep.subr.bf16.mxu1 %v3466_v4  ;;  %v713_v42 = vrot.slane %v709_v39, %v4012_v40  ;;  %v720_v45 = vrot.slane %v716_v41, %v4012_v40  ;;  %vm2093_vm4 = vcmask 523264   ;;  %s2141_s19 = scalar_lea.sflag [#allocation4], %s3953_s20  ;;  %s3349_s1 = scalar_lea.vmem %s4148_s24, 64 }
 0x1bc   : > { %v769_v52 = vrot.slane %v756_v50, %v768_v51  ;;  %v761_v53 = vrot.slane %v756_v50, %v4012_v40  ;;  %v765_v6 = vrot.slane %v756_v50, %v764_v5  ;;  %p3350_p10 = scmp.ne.s32.totalorder %s4148_s24, %s3349_s1  ;;  %p4265_p11 = scmp.ne.s32.totalorder %s4242_s30, 0 }
 0x1bd   : > { %920 = vmatpush1.bf16.msra.mxu0 %v2841_v17  ;;  %s3469_s29 = smov [#allocation26]  }
 0x1be   : > { %2522 = vmatpush3.bf16.msra.mxu1 %v2842_v18  ;;  %921 = vmatprep.subr.bf16.mxu0 %v2843_v19  ;;  %v784_v54 = vrot.slane %v769_v52, %v4012_v40  ;;  %v776_v55 = vrot.slane %v761_v53, %v4012_v40  ;;  %v780_v7 = vrot.slane %v765_v6, %v4012_v40  ;;  %p3351_p12 = pnand %p3350_p10, %p4265_p11  ;;  %s3353_s22 = sshll.u32 %s3469_s29, 4  ;;  %s3354_s22 = int_to_ptr.vmem [resolvable:$false] %s3353_s22 }
 0x1bf   : > { %2523 = vmatprep.subr.bf16.mxu1 %v3466_v4  ;;  %s3355_s26 = scalar_lea.vmem %s3354_s22, 128  ;;  %p3356_p5 = scmp.lt.s32.totalorder %s4148_s24, %s3354_s22 }
 0x1c0   : > { %s4146_s23 = scalar_lea.hbm %s4264_s16, %s2467_s27  ;;  %p3352_p8 = pneg %p3351_p12 }
 0x1c1   : > { %922 = vmatpush1.bf16.msra.mxu0 %v2845_v20  ;;  %p3357_p7 = scmp.lt.s32.totalorder %s3355_s26, %s3349_s1 }
 0x1c2   : > { %2524 = vmatpush3.bf16.msra.mxu1 %v2846_v21  ;;  %923 = vmatprep.subr.bf16.mxu0 %v2847_v22 }
 0x1c3   : > { %2525 = vmatprep.subr.bf16.mxu1 %v3466_v4  ;;  %p3358_p6 = por %p3357_p7, %p3356_p5 }
 0x1c5   : > { %924 = vmatpush1.bf16.msra.mxu0 %v2849_v23  ;;  %p3359_p9 = pnand %p3358_p6, %p3352_p8 }
 0x1c6   : > { %2526 = vmatpush3.bf16.msra.mxu1 %v2850_v24  ;;  %925 = vmatprep.subr.bf16.mxu0 %v2851_v25 }
 0x1c7   : > { %2527 = vmatprep.subr.bf16.mxu1 %v3466_v4 }
 0x1c9   : > { %926 = vmatpush1.bf16.msra.mxu0 %v2853_v27 }
 0x1ca   : > { %2528 = vmatpush3.bf16.msra.mxu1 %v2854_v28  ;;  %927 = vmatprep.subr.bf16.mxu0 %v2855_v29 }
 0x1cb   : > { %2529 = vmatprep.subr.bf16.mxu1 %v3466_v4 }
 0x1cd   : > { %928 = vmatpush1.bf16.msra.mxu0 %v2857_v30 }
 0x1ce   : > { %2530 = vmatpush3.bf16.msra.mxu1 %v2858_v31  ;;  %2535 = vmatprep.subr.bf16.mxu0 %v3466_v4  ;;  %v1285_v31 = vand.u32 127, %v710_v34 }
 0x1cf   : > { %2559 = vmatprep.subr.bf16.mxu1 %v3466_v4 }
 0x1d0   : > { %vm1286_vm2 = vcmp.le.s32.totalorder %v1285_v31, %v4009_v36 }
 0x23f   : > { %v697_v10 = vpop.xlane.xlu0 %696 }
 0x240   : > { %v699_v11 = vmul.f32 0.0078125, %v697_v10 }
 0x242   : > { %v700_v12 = vsub.f32 %v3991_v1, %v699_v11 }
 0x244   : > { %v701_v13 = vmul.f32 %v700_v12, %v700_v12 }
 0x246   : > { %702 = vadd.xlane.f32.xlu0 %v701_v13 }
 0x2d3   : > { %v703_v32 = vpop.xlane.xlu0 %702 }
 0x2d4   : > { %v704_v33 = vmul.f32 0.0078125, %v703_v32 }
 0x2d6   : > { %v705_v35 = vadd.f32 1e-05, %v704_v33 }
 0x2d8   : > { %2903 = vrsqrt.f32 %v705_v35 }
 0x2e2   : > { %v2904_v43 = vpop.eup %2903 }
 0x2e3   : > { %v707_v44 = vmul.f32 %v2904_v43, %v700_v12 }
 0x2e5   : > { %v714_v46 = vmul.f32 %v713_v42, %v707_v44 }
 0x2e7   : > { %v721_v47 = vadd.f32 %v720_v45, %v714_v46 }
 0x2e9   : > { %v722_v48 = vpack.c.bf16 %v721_v47, %v721_v47 }
 0x2eb   : > { %946 = vmatmul.mubr.bf16.vlgmr.msra.gmra.mrb[0].mxu0 %v722_v48  ;;  %2532 = vmatmul.mubr.bf16.vlgmr.msra.gmra.mrb[0].mxu1 %v722_v48 }
 0x2ec   : > { %2539 = vmatprep.mubr.msk.bf16.mxu0 %vm3468_vm0, %v3466_v4  ;;  %2563 = vmatprep.mubr.msk.bf16.mxu1 %vm3468_vm0, %v3466_v4 }
 0x3be   : > { %v947_v56 = vpop.f32.mrb[0].mxu0  ;;  %v988_v57 = vpop.f32.mrb[0].mxu1 }
 0x3bf   : > { %v4024_v58 = vadd.f32 %v988_v57, %v784_v54  ;;  %v949_v59 = vpop.f32.mrb[1].mxu0  ;;  %v2533_v60 = vpop.f32.mrb[1].mxu1  ;;  %v948_v61 = vadd.f32 %v947_v56, %v776_v55 }
 0x3c0   : > { %v951_v62 = vpop.f32.mrb[2].mxu0  ;;  %v991_v63 = vpop.f32.mrb[2].mxu1  ;;  %v950_v8 = vadd.f32 %v949_v59, %v780_v7 }
 0x3c1   : > { %v952_v0 = vpop.f32.mrb[3].mxu0  ;;  %v2534_v2 = vpop.f32.mrb[3].mxu1  ;;  %v994_v3 = vpack.c.bf16 %v948_v61, %v948_v61  ;;  %v996_v59 = vpack.c.bf16 %v4024_v58, %v4024_v58 }
 0x3c2   : > { %v995_v9 = vpack.c.bf16 %v950_v8, %v950_v8 }
 0x3c3   : > { %997 = vxpose.xlu1.c.b16.start.end [1/1] (short) %v994_v3, 128 }
 0x3e0   : > { %1077 = vxpose.xlu1.c.b16.start.end [1/1] (short) %v995_v9, 128 }
 0x429   : > { %v1005_v10 = vpop.trf.xlu1 }
 0x42a   : > { %1013 = vxpose.xlu0.c.b16.start [1/2] (short) (narrow) %v1005_v10, 16 }
 0x42d   : > { %v1006_v11 = vpop.trf.xlu1 }
 0x42e   : > { %1014 = vxpose.xlu0.c.b16.end [2/2] (short) (narrow) %v1006_v11, 16 }
 0x431   : > { %v1007_v12 = vpop.trf.xlu1 }
 0x432   : > { %1029 = vxpose.xlu1.c.b16.start [1/2] (short) (narrow) %v1007_v12, 16 }
 0x435   : > { %v1008_v13 = vpop.trf.xlu1 }
 0x436   : > { %1030 = vxpose.xlu1.c.b16.end [2/2] (short) (narrow) %v1008_v13, 16 }
 0x439   : > { %v1009_v14 = vpop.trf.xlu1 }
 0x43a   : > { %1045 = vxpose.xlu0.c.b16.start [1/2] (short) (narrow) %v1009_v14, 16 }
 0x43d   : > { %v1010_v15 = vpop.trf.xlu1 }
 0x43e   : > { %1046 = vxpose.xlu0.c.b16.end [2/2] (short) (narrow) %v1010_v15, 16 }
 0x441   : > { %v1011_v16 = vpop.trf.xlu1 }
 0x442   : > { %1061 = vxpose.xlu0.c.b16.start [1/2] (short) (narrow) %v1011_v16, 16 }
 0x445   : > { %v1012_v17 = vpop.trf.xlu1 }
 0x446   : > { %1062 = vxpose.xlu0.c.b16.end [2/2] (short) (narrow) %v1012_v17, 16 }
 0x449   : > { %v1085_v18 = vpop.trf.xlu1 }
 0x44a   : > { %2536 = vmatpush3.bf16.msra.mxu0 %v1085_v18 }
 0x44b   : > { %2537 = vmatprep.subr.bf16.mxu0 %v3466_v4 }
 0x44d   : > { %v1086_v19 = vpop.trf.xlu1 }
 0x44e   : > { %2538 = vmatpush3.bf16.msra.mxu0 %v1086_v19 }
 0x44f   : > { %2543 = vmatprep.subr.bf16.mxu0 %v3466_v4 }
 0x451   : > { %v1087_v20 = vpop.trf.xlu1 }
 0x455   : > { %v1088_v21 = vpop.trf.xlu1 }
 0x459   : > { %v1089_v22 = vpop.trf.xlu1 }
 0x45d   : > { %v1090_v23 = vpop.trf.xlu1 }
 0x461   : > { %v1091_v24 = vpop.trf.xlu1 }
 0x462   : > { %2560 = vmatpush3.bf16.msra.mxu1 %v1091_v24 }
 0x463   : > { %2561 = vmatprep.subr.bf16.mxu1 %v3466_v4 }
 0x465   : > { %v1092_v25 = vpop.trf.xlu1 }
 0x466   : > { %2562 = vmatpush3.bf16.msra.mxu1 %v1092_v25 }
 0x467   : > { %2575 = vmatprep.subr.bf16.mxu1 %v3466_v4 }
 0x490   : > { %v1021_v27 = vpop.trf.xlu0 }
 0x491   : > { %2540 = vmatmul.mubr.msk.bf16.vlgmr.msra.gmra.mrb[4].mxu0 %vm1109_vm1, %v1021_v27 }
 0x492   : > { %2544 = vmatpush3.bf16.msra.mxu0 %v1087_v20  ;;  %2547 = vmatprep.mubr.msk.bf16.mxu0 %vm3468_vm0, %v3466_v4 }
 0x493   : > { %2545 = vmatprep.subr.bf16.mxu0 %v3466_v4 }
 0x496   : > { %2546 = vmatpush3.bf16.msra.mxu0 %v1088_v21 }
 0x497   : > { %2551 = vmatprep.subr.bf16.mxu0 %v3466_v4 }
 0x498   : > { %v1037_v28 = vpop.trf.xlu1 }
 0x499   : > { %2548 = vmatmul.mubr.msk.bf16.vlgmr.msra.gmra.mrb[8].mxu0 %vm1109_vm1, %v1037_v28 }
 0x49a   : > { %2552 = vmatpush3.bf16.msra.mxu0 %v1089_v22  ;;  %2555 = vmatprep.mubr.msk.bf16.mxu0 %vm3468_vm0, %v3466_v4 }
 0x49b   : > { %2553 = vmatprep.subr.bf16.mxu0 %v3466_v4 }
 0x49e   : > { %2554 = vmatpush3.bf16.msra.mxu0 %v1090_v23 }
 0x49f   : > { %2567 = vmatprep.subr.bf16.mxu0 %v3466_v4 }
 0x4a0   : > { %v1053_v29 = vpop.trf.xlu0 }
 0x4a1   : > { %2556 = vmatmul.mubr.msk.bf16.vlgmr.msra.gmra.mrb[12].mxu0 %vm1109_vm1, %v1053_v29 }
 0x4a2   : > { %2571 = vmatprep.mubr.msk.bf16.mxu0 %vm3468_vm0, %v3466_v4 }
 0x4a8   : > { %v1069_v30 = vpop.trf.xlu0 }
 0x4a9   : > { %2564 = vmatmul.mubr.msk.bf16.vlgmr.msra.gmra.mrb[4].mxu1 %vm1109_vm1, %v1069_v30 }
 0x4aa   : > { %2579 = vmatprep.mubr.msk.bf16.mxu1 %vm3468_vm0, %v3466_v4 }
 0x564   : > { %v1147_v32 = vpop.f32.mrb[4].mxu0 }
 0x565   : > { %v1287_v33 = vsel %vm1286_vm2, %v1147_v32, -1e+30  ;;  %v2541_v35 = vpop.f32.mrb[5].mxu0 }
 0x566   : > { %v1150_v37 = vpop.f32.mrb[6].mxu0  ;;  %v1292_v38 = vsel %vm1291_vm3, %v1287_v33, -inf }
 0x567   : > { %1293 = vmax.xlane.f32.xlu1 %v1292_v38  ;;  %v2542_v39 = vpop.f32.mrb[7].mxu0 }
 0x56c   : > { %v1190_v41 = vpop.f32.mrb[8].mxu0 }
 0x56d   : > { %v1288_v42 = vsel %vm1286_vm2, %v1190_v41, -1e+30  ;;  %v2549_v43 = vpop.f32.mrb[9].mxu0 }
 0x56e   : > { %v1193_v44 = vpop.f32.mrb[10].mxu0  ;;  %v1295_v34 = vsel %vm1291_vm3, %v1288_v42, -inf  ;;  %v2860_v43 = vld [vmem:[#allocation11 + $0x8] sm:$0xff]  }
 0x56f   : > { %1296 = vmax.xlane.f32.xlu0 %v1295_v34  ;;  %v2550_v45 = vpop.f32.mrb[11].mxu0  ;;  %v2861_v44 = vld [vmem:[#allocation11 + $0x10] sm:$0xff]   ;;  %v2862_v34 = vld [vmem:[#allocation11 + $0x18] sm:$0xff]  }
 0x574   : > { %v1233_v46 = vpop.f32.mrb[12].mxu0 }
 0x575   : > { %v1289_v47 = vsel %vm1286_vm2, %v1233_v46, -1e+30  ;;  %v2557_v48 = vpop.f32.mrb[13].mxu0 }
 0x576   : > { %v1298_v49 = vsel %vm1291_vm3, %v1289_v47, -inf  ;;  %v1236_v50 = vpop.f32.mrb[14].mxu0 }
 0x577   : > { %1299 = vmax.xlane.f32.xlu1 %v1298_v49  ;;  %v2558_v51 = vpop.f32.mrb[15].mxu0 }
 0x57c   : > { %v1276_v52 = vpop.f32.mrb[4].mxu1 }
 0x57d   : > { %v1290_v53 = vsel %vm1286_vm2, %v1276_v52, -1e+30  ;;  %v2565_v54 = vpop.f32.mrb[5].mxu1  ;;  %v2863_v52 = vld [vmem:[#allocation11 + $0x20] sm:$0xff]  }
 0x57e   : > { %v1301_v55 = vsel %vm1291_vm3, %v1290_v53, -inf  ;;  %v1279_v56 = vpop.f32.mrb[6].mxu1 }
 0x57f   : > { %1302 = vmax.xlane.f32.xlu1 %v1301_v55  ;;  %v2566_v57 = vpop.f32.mrb[7].mxu1  ;;  %v2864_v56 = vld [vmem:[#allocation11 + $0x28] sm:$0xff]  }
 0x59c   : > { %1093 = vxpose.xlu0.c.b16.start.end [1/1] (short) %v996_v59, 128 }
 0x5f4   : > { %v1294_v60 = vpop.xlane.xlu1 %1293 }
 0x5f5   : > { %v1304_v61 = vsub.f32 %v1287_v33, %v1294_v60 }
 0x5f7   : > { %v1308_v62 = vmul.f32 1.442695, %v1304_v61 }
 0x5f9   : > { %2905 = vpow2.f32 %v1308_v62 }
 0x5fc   : > { %v1297_v63 = vpop.xlane.xlu0 %1296 }
 0x5fd   : > { %v1305_v0 = vsub.f32 %v1288_v42, %v1297_v63  ;;  %v2859_v42 = vld [vmem:[#allocation11] sm:$0xff]   ;;  %v2865_v63 = vld [vmem:[#allocation11 + $0x30] sm:$0xff]  }
 0x5ff   : > { %v1310_v2 = vmul.f32 1.442695, %v1305_v0 }
 0x601   : > { %2907 = vpow2.f32 %v1310_v2 }
 0x602   : > { %v1101_v3 = vpop.trf.xlu0 }
 0x603   : > { %v2906_v6 = vpop.eup %2905  ;;  %v1336_v7 = vsel %vm1291_vm3, %v1101_v3, 0 }
 0x604   : > { %2568 = vmatpush3.bf16.xpose.msra.mxu0 %v1336_v7  ;;  %v1300_v8 = vpop.xlane.xlu1 %1299  ;;  %v1316_v9 = vsel %vm1291_vm3, %v2906_v6, 0.0  ;;  %v1328_v21 = vpack.c.bf16 %v2906_v6, %v2906_v6  ;;  %v2866_v6 = vld [vmem:[#allocation11 + $0x38] sm:$0xff]  }
 0x605   : > { %v1306_v10 = vsub.f32 %v1289_v47, %v1300_v8  ;;  %1317 = vadd.xlane.f32.xlu1 %v1316_v9  ;;  %2569 = vmatprep.subr.bf16.mxu0 %v3466_v4 }
 0x606   : > { %v1102_v58 = vpop.trf.xlu0 }
 0x607   : > { %v1312_v11 = vmul.f32 1.442695, %v1306_v10  ;;  %v1339_v14 = vsel %vm1291_vm3, %v1102_v58, 0 }
 0x609   : > { %2909 = vpow2.f32 %v1312_v11 }
 0x60a   : > { %v1103_v12 = vpop.trf.xlu0 }
 0x60b   : > { %v2908_v13 = vpop.eup %2907  ;;  %v1385_v15 = vsel %vm1291_vm3, %v1103_v12, 0 }
 0x60c   : > { %2570 = vmatpush3.bf16.xpose.msra.mxu0 %v1339_v14  ;;  %2576 = vmatpush3.bf16.xpose.msra.mxu1 %v1385_v15  ;;  %v1303_v16 = vpop.xlane.xlu1 %1302  ;;  %v1319_v17 = vsel %vm1291_vm3, %v2908_v13, 0.0  ;;  %v1329_v29 = vpack.c.bf16 %v2908_v13, %v2908_v13 }
 0x60d   : > { %v1307_v18 = vsub.f32 %v1290_v53, %v1303_v16  ;;  %1320 = vadd.xlane.f32.xlu1 %v1319_v17  ;;  %2577 = vmatprep.subr.bf16.mxu1 %v3466_v4 }
 0x60e   : > { %v1104_v19 = vpop.trf.xlu0  ;;  %2583 = vmatprep.subr.bf16.mxu0 %v3466_v4 }
 0x60f   : > { %v1314_v20 = vmul.f32 1.442695, %v1307_v18  ;;  %v1388_v24 = vsel %vm1291_vm3, %v1104_v19, 0 }
 0x611   : > { %2911 = vpow2.f32 %v1314_v20 }
 0x612   : > { %v1105_v22 = vpop.trf.xlu0 }
 0x613   : > { %v2910_v23 = vpop.eup %2909  ;;  %v1434_v25 = vsel %vm1291_vm3, %v1105_v22, 0  ;;  %2572 = vmatmul.mubr.msk.bf16.vlgmr.msra.gmra.mrb[16].mxu0 %vm1291_vm3, %v1328_v21 }
 0x614   : > { %2578 = vmatpush3.bf16.xpose.msra.mxu1 %v1388_v24  ;;  %2584 = vmatpush3.bf16.xpose.msra.mxu0 %v1434_v25  ;;  %v1322_v27 = vsel %vm1291_vm3, %v2910_v23, 0.0  ;;  %v1330_v39 = vpack.c.bf16 %v2910_v23, %v2910_v23 }
 0x615   : > { %1323 = vadd.xlane.f32.xlu1 %v1322_v27  ;;  %2585 = vmatprep.subr.bf16.mxu0 %v3466_v4 }
 0x616   : > { %v1106_v28 = vpop.trf.xlu0  ;;  %2591 = vmatprep.subr.bf16.mxu1 %v3466_v4  ;;  %2587 = vmatprep.mubr.msk.bf16.mxu0 %vm3468_vm0, %v3466_v4 }
 0x617   : > { %v1437_v32 = vsel %vm1291_vm3, %v1106_v28, 0 }
 0x61a   : > { %v1107_v30 = vpop.trf.xlu0 }
 0x61b   : > { %v2912_v31 = vpop.eup %2911  ;;  %v1483_v33 = vsel %vm1291_vm3, %v1107_v30, 0  ;;  %2580 = vmatmul.mubr.msk.bf16.vlgmr.msra.gmra.mrb[8].mxu1 %vm1291_vm3, %v1329_v29  ;;  %v1779_v30 = vld [vmem:[#allocation13] sm:$0x1] }
 0x61c   : > { %2586 = vmatpush3.bf16.xpose.msra.mxu0 %v1437_v32  ;;  %2592 = vmatpush3.bf16.xpose.msra.mxu1 %v1483_v33  ;;  %v1325_v35 = vsel %vm1291_vm3, %v2912_v31, 0.0  ;;  %v1331_v41 = vpack.c.bf16 %v2912_v31, %v2912_v31 }
 0x61d   : > { %1326 = vadd.xlane.f32.xlu1 %v1325_v35  ;;  %2593 = vmatprep.subr.bf16.mxu1 %v3466_v4 }
 0x61e   : > { %v1108_v37 = vpop.trf.xlu0  ;;  %2595 = vmatprep.mubr.msk.bf16.mxu1 %vm3468_vm0, %v3466_v4  ;;  %2599 = vmatprep.subr.bf16.mxu0 %v3466_v4 }
 0x61f   : > { %v1486_v38 = vsel %vm1291_vm3, %v1108_v37, 0  ;;  %v1780_v37 = vunpack.c.l.bf16 %v1779_v30  ;;  %v1829_v30 = vld [vmem:[#allocation19] sm:$0x3] }
 0x623   : > { %2588 = vmatmul.mubr.msk.bf16.vlgmr.msra.gmra.mrb[20].mxu0 %vm1291_vm3, %v1330_v39 }
 0x624   : > { %2594 = vmatpush3.bf16.xpose.msra.mxu1 %v1486_v38  ;;  %2603 = vmatprep.mubr.msk.bf16.mxu0 %vm3468_vm0, %v3466_v4  ;;  %v1784_v38 = vrot.slane %v1780_v37, %v4012_v40 }
 0x625   : > { %2607 = vmatprep.subr.bf16.mxu1 %v3466_v4  ;;  %2600 = vmatpush3.bf16.msra.mxu0 %v2859_v42 }
 0x626   : > { %2601 = vmatprep.subr.bf16.mxu0 %v3466_v4 }
 0x629   : > { %2602 = vmatpush3.bf16.msra.mxu0 %v2860_v43 }
 0x62a   : > { %2615 = vmatprep.subr.bf16.mxu0 %v3466_v4 }
 0x62b   : > { %2596 = vmatmul.mubr.msk.bf16.vlgmr.msra.gmra.mrb[12].mxu1 %vm1291_vm3, %v1331_v41 }
 0x62c   : > { %2611 = vmatprep.mubr.msk.bf16.mxu1 %vm3468_vm0, %v3466_v4  ;;  %2608 = vmatpush3.bf16.msra.mxu1 %v2861_v44 }
 0x62d   : > { %2609 = vmatprep.subr.bf16.mxu1 %v3466_v4 }
 0x630   : > { %2610 = vmatpush3.bf16.msra.mxu1 %v2862_v34 }
 0x631   : > { %2623 = vmatprep.subr.bf16.mxu1 %v3466_v4 }
 0x692   : > { %v1318_v45 = vpop.xlane.xlu1 %1317 }
 0x693   : > { %2913 = vrcp.f32 %v1318_v45 }
 0x69a   : > { %v1321_v46 = vpop.xlane.xlu1 %1320 }
 0x69b   : > { %2915 = vrcp.f32 %v1321_v46  ;;  %v2867_v46 = vld [vmem:[#allocation17] ss:$8 sps:$4 sm:$0xff]  }
 0x69d   : > { %v2914_v47 = vpop.eup %2913 }
 0x6a2   : > { %v1324_v53 = vpop.xlane.xlu1 %1323 }
 0x6a3   : > { %2917 = vrcp.f32 %v1324_v53 }
 0x6a5   : > { %v2916_v57 = vpop.eup %2915 }
 0x6aa   : > { %v1327_v0 = vpop.xlane.xlu1 %1326 }
 0x6ab   : > { %2919 = vrcp.f32 %v1327_v0  ;;  %v2890_v0 = vld [vmem:[#allocation17 + $0x74] ss:$8 sps:$4 sm:$0xff]  }
 0x6ad   : > { %v2918_v7 = vpop.eup %2917 }
 0x6b5   : > { %v2920_v13 = vpop.eup %2919 }
 0x6e6   : > { %v1375_v48 = vpop.f32.mrb[16].mxu0 }
 0x6e7   : > { %v1529_v49 = vmul.f32 %v2914_v47, %v1375_v48  ;;  %v2573_v50 = vpop.f32.mrb[17].mxu0  ;;  %v2869_v47 = vld [vmem:[#allocation17 + $0x4] ss:$8 sps:$4 sm:$0xff]   ;;  %v2872_v48 = vld [vmem:[#allocation17 + $0x14] ss:$8 sps:$4 sm:$0xff]  }
 0x6e8   : > { %v1378_v51 = vpop.f32.mrb[18].mxu0  ;;  %v2875_v50 = vld [vmem:[#allocation17 + $0x24] ss:$8 sps:$4 sm:$0xff]  }
 0x6e9   : > { %v1536_v54 = vpack.c.bf16 %v1529_v49, %v1529_v49  ;;  %v2574_v55 = vpop.f32.mrb[19].mxu0  ;;  %v2870_v49 = vld [vmem:[#allocation17 + $0x10] ss:$8 sps:$4 sm:$0xff]   ;;  %v2873_v51 = vld [vmem:[#allocation17 + $0x20] ss:$8 sps:$4 sm:$0xff]  }
 0x6ea   : > { %v2878_v55 = vld [vmem:[#allocation17 + $0x34] ss:$8 sps:$4 sm:$0xff]  }
 0x6eb   : > { %2604 = vmatmul.mubr.msk.bf16.vlgmr.msra.gmra.mrb[24].mxu0 %vm1109_vm1, %v1536_v54 }
 0x6ec   : > { %2616 = vmatpush3.bf16.msra.mxu0 %v2863_v52  ;;  %2619 = vmatprep.mubr.msk.bf16.mxu0 %vm3468_vm0, %v3466_v4 }
 0x6ed   : > { %2617 = vmatprep.subr.bf16.mxu0 %v3466_v4 }
 0x6ee   : > { %v1424_v59 = vpop.f32.mrb[8].mxu1 }
 0x6ef   : > { %v1531_v60 = vmul.f32 %v2916_v57, %v1424_v59  ;;  %v2581_v61 = vpop.f32.mrb[9].mxu1  ;;  %v2881_v57 = vld [vmem:[#allocation17 + $0x44] ss:$8 sps:$4 sm:$0xff]   ;;  %v2879_v59 = vld [vmem:[#allocation17 + $0x40] ss:$8 sps:$4 sm:$0xff]  }
 0x6f0   : > { %v1427_v62 = vpop.f32.mrb[10].mxu1  ;;  %2618 = vmatpush3.bf16.msra.mxu0 %v2864_v56  ;;  %v2876_v56 = vld [vmem:[#allocation17 + $0x30] ss:$8 sps:$4 sm:$0xff]  }
 0x6f1   : > { %v1537_v2 = vpack.c.bf16 %v1531_v60, %v1531_v60  ;;  %v2582_v3 = vpop.f32.mrb[11].mxu1  ;;  %1930 = vmatprep.subr.bf16.mxu0 %v2869_v47  ;;  %v2884_v60 = vld [vmem:[#allocation17 + $0x54] ss:$8 sps:$4 sm:$0xff]   ;;  %v2882_v61 = vld [vmem:[#allocation17 + $0x50] ss:$8 sps:$4 sm:$0xff]  }
 0x6f2   : > { %v2887_v62 = vld [vmem:[#allocation17 + $0x64] ss:$8 sps:$4 sm:$0xff]  }
 0x6f3   : > { %2612 = vmatmul.mubr.msk.bf16.vlgmr.msra.gmra.mrb[16].mxu1 %vm1109_vm1, %v1537_v2  ;;  %v2888_v2 = vld [vmem:[#allocation17 + $0x70] ss:$8 sps:$4 sm:$0xff]   ;;  %v2891_v3 = vld [vmem:[#allocation20] sm:$0xff]  }
 0x6f4   : > { %2624 = vmatpush3.bf16.msra.mxu1 %v2865_v63  ;;  %2627 = vmatprep.mubr.msk.bf16.mxu1 %vm3468_vm0, %v3466_v4  ;;  %v2885_v63 = vld [vmem:[#allocation17 + $0x60] ss:$8 sps:$4 sm:$0xff]  }
 0x6f5   : > { %2625 = vmatprep.subr.bf16.mxu1 %v3466_v4 }
 0x6f6   : > { %v1473_v8 = vpop.f32.mrb[20].mxu0 }
 0x6f7   : > { %v1533_v9 = vmul.f32 %v2918_v7, %v1473_v8  ;;  %v2589_v10 = vpop.f32.mrb[21].mxu0  ;;  %v2893_v7 = vld [vmem:[#allocation20 + $0x10] sm:$0xff]   ;;  %v2894_v8 = vld [vmem:[#allocation20 + $0x18] sm:$0xff]  }
 0x6f8   : > { %v1476_v58 = vpop.f32.mrb[22].mxu0  ;;  %2626 = vmatpush3.bf16.msra.mxu1 %v2866_v6  ;;  %v2892_v6 = vld [vmem:[#allocation20 + $0x8] sm:$0xff]  }
 0x6f9   : > { %v1538_v11 = vpack.c.bf16 %v1533_v9, %v1533_v9  ;;  %v2590_v12 = vpop.f32.mrb[23].mxu0  ;;  %2097 = vmatprep.subr.bf16.mxu1 %v3467_v26  ;;  %v2895_v9 = vld [vmem:[#allocation20 + $0x20] sm:$0xff]  }
 0x6fa   : > { %v1798_v12 = vld [vmem:[#allocation14] sm:$0x1] }
 0x6fb   : > { %2620 = vmatmul.mubr.msk.bf16.vlgmr.msra.gmra.mrb[28].mxu0 %vm1109_vm1, %v1538_v11 }
 0x6fc   : > { %1962 = vmatprep.mubr.bf16.mxu0 %v3467_v26  ;;  %1931 = vmatpush1.bf16.msra.mxu0 %v2867_v46 }
 0x6fd   : > { %1932 = vmatprep.subr.bf16.mxu0 %v2872_v48 }
 0x6fe   : > { %v1522_v14 = vpop.f32.mrb[12].mxu1 }
 0x6ff   : > { %v1535_v15 = vmul.f32 %v2920_v13, %v1522_v14  ;;  %v2597_v16 = vpop.f32.mrb[13].mxu1  ;;  %v1805_v13 = vld [vmem:[#allocation16] sm:$0x1]  ;;  %v1799_v14 = vunpack.c.l.bf16 %v1798_v12 }
 0x700   : > { %v1525_v17 = vpop.f32.mrb[14].mxu1  ;;  %1933 = vmatpush1.bf16.msra.mxu0 %v2870_v49 }
 0x701   : > { %v1539_v4 = vpack.c.bf16 %v1535_v15, %v1535_v15  ;;  %v2598_v18 = vpop.f32.mrb[15].mxu1  ;;  %1934 = vmatprep.subr.bf16.mxu0 %v2875_v50  ;;  %v1806_v15 = vunpack.c.l.bf16 %v1805_v13  ;;  %v1803_v16 = vrot.slane %v1799_v14, %v4012_v40 }
 0x703   : > { %2628 = vmatmul.mubr.msk.bf16.vlgmr.msra.gmra.mrb[20].mxu1 %vm1109_vm1, %v1539_v4  ;;  %v1810_v18 = vrot.slane %v1806_v15, %v4012_v40 }
 0x704   : > { %1935 = vmatpush1.bf16.msra.mxu0 %v2873_v51  ;;  %2098 = vmatpush1.bf16.msra.mxu1 %v2891_v3 }
 0x705   : > { %1936 = vmatprep.subr.bf16.mxu0 %v2878_v55  ;;  %2099 = vmatprep.subr.bf16.mxu1 %v3467_v26 }
 0x708   : > { %1937 = vmatpush1.bf16.msra.mxu0 %v2876_v56  ;;  %2100 = vmatpush1.bf16.msra.mxu1 %v2892_v6 }
 0x709   : > { %1938 = vmatprep.subr.bf16.mxu0 %v2881_v57  ;;  %2101 = vmatprep.subr.bf16.mxu1 %v3467_v26 }
 0x70c   : > { %1939 = vmatpush1.bf16.msra.mxu0 %v2879_v59  ;;  %2102 = vmatpush1.bf16.msra.mxu1 %v2893_v7 }
 0x70d   : > { %1940 = vmatprep.subr.bf16.mxu0 %v2884_v60  ;;  %2103 = vmatprep.subr.bf16.mxu1 %v3467_v26 }
 0x710   : > { %1941 = vmatpush1.bf16.msra.mxu0 %v2882_v61  ;;  %2104 = vmatpush1.bf16.msra.mxu1 %v2894_v8 }
 0x711   : > { %1942 = vmatprep.subr.bf16.mxu0 %v2887_v62  ;;  %2105 = vmatprep.subr.bf16.mxu1 %v3467_v26  ;;  %v2015_v62 = vld [vmem:[#allocation22] sm:$0x1] }
 0x714   : > { %1943 = vmatpush1.bf16.msra.mxu0 %v2885_v63  ;;  %2106 = vmatpush1.bf16.msra.mxu1 %v2895_v9  ;;  %v2016_v63 = vunpack.c.l.bf16 %v2015_v62 }
 0x715   : > { %1944 = vmatprep.subr.bf16.mxu0 %v2890_v0  ;;  %2107 = vmatprep.subr.bf16.mxu1 %v3467_v26 }
 0x716   : > { %v2020_v0 = vrot.slane %v2016_v63, %v4012_v40 }
 0x718   : > { %1945 = vmatpush1.bf16.msra.mxu0 %v2888_v2 }
 0x7be   : > { %v1605_v19 = vpop.f32.mrb[24].mxu0 }
 0x7bf   : > { %v2605_v20 = vpop.f32.mrb[25].mxu0 }
 0x7c0   : > { %v1608_v21 = vpop.f32.mrb[26].mxu0 }
 0x7c1   : > { %v2606_v22 = vpop.f32.mrb[27].mxu0 }
 0x7c2   : > { %v2896_v22 = vld [vmem:[#allocation20 + $0x28] sm:$0xff]  }
 0x7c3   : > { %2108 = vmatpush1.bf16.msra.mxu1 %v2896_v22 }
 0x7c4   : > { %2109 = vmatprep.subr.bf16.mxu1 %v3467_v26 }
 0x7c6   : > { %v1660_v23 = vpop.f32.mrb[16].mxu1 }
 0x7c7   : > { %v1776_v24 = vadd.f32 %v1660_v23, %v1605_v19  ;;  %v2613_v25 = vpop.f32.mrb[17].mxu1  ;;  %v2897_v23 = vld [vmem:[#allocation20 + $0x30] sm:$0xff]  }
 0x7c8   : > { %v1663_v27 = vpop.f32.mrb[18].mxu1  ;;  %2110 = vmatpush1.bf16.msra.mxu1 %v2897_v23  ;;  %v2899_v25 = vld [vmem:[#allocation20 + $0x40] sm:$0xff]  }
 0x7c9   : > { %v2614_v28 = vpop.f32.mrb[19].mxu1  ;;  %2111 = vmatprep.subr.bf16.mxu1 %v3467_v26  ;;  %v2900_v27 = vld [vmem:[#allocation20 + $0x48] sm:$0xff]  }
 0x7ca   : > { %v2901_v28 = vld [vmem:[#allocation20 + $0x50] sm:$0xff]  }
 0x7ce   : > { %v1715_v29 = vpop.f32.mrb[28].mxu0 }
 0x7cf   : > { %v1777_v31 = vadd.f32 %v1776_v24, %v1715_v29  ;;  %v2621_v32 = vpop.f32.mrb[29].mxu0  ;;  %v2898_v24 = vld [vmem:[#allocation20 + $0x38] sm:$0xff]  }
 0x7d0   : > { %v1718_v33 = vpop.f32.mrb[30].mxu0  ;;  %2112 = vmatpush1.bf16.msra.mxu1 %v2898_v24  ;;  %v2902_v29 = vld [vmem:[#allocation20 + $0x58] sm:$0xff]  }
 0x7d1   : > { %v2622_v35 = vpop.f32.mrb[31].mxu0  ;;  %2113 = vmatprep.subr.bf16.mxu1 %v3467_v26 }
 0x7d4   : > { %2114 = vmatpush1.bf16.msra.mxu1 %v2899_v25 }
 0x7d5   : > { %2115 = vmatprep.subr.bf16.mxu1 %v3467_v26 }
 0x7d6   : > { %v1770_v39 = vpop.f32.mrb[20].mxu1 }
 0x7d7   : > { %v1778_v41 = vadd.f32 %v1777_v31, %v1770_v39  ;;  %v2629_v42 = vpop.f32.mrb[21].mxu1  ;;  %v1830_v31 = vunpack.c.l.bf16 %v1829_v30 }
 0x7d8   : > { %v1773_v43 = vpop.f32.mrb[22].mxu1  ;;  %2116 = vmatpush1.bf16.msra.mxu1 %v2900_v27 }
 0x7d9   : > { %v1785_v44 = vadd.f32 %v1784_v38, %v1778_v41  ;;  %v2630_v34 = vpop.f32.mrb[23].mxu1  ;;  %2117 = vmatprep.subr.bf16.mxu1 %v3467_v26  ;;  %v1835_v32 = vrot.slane %v1830_v31, %v4012_v40  ;;  %v1839_v33 = vrot.slane %v1830_v31, %v764_v5 }
 0x7db   : > { %v4116_v45 = vadd.f32 %v1785_v44, %v3991_v1  ;;  %v1845_v35 = vrot.slane %v1835_v32, %v4012_v40  ;;  %v1849_v37 = vrot.slane %v1839_v33, %v4012_v40 }
 0x7dc   : > { %2118 = vmatpush1.bf16.msra.mxu1 %v2901_v28 }
 0x7dd   : > { %1787 = vadd.xlane.f32.xlu1 %v4116_v45  ;;  %2119 = vmatprep.subr.bf16.mxu1 %v3467_v26 }
 0x7e0   : > { %2120 = vmatpush1.bf16.msra.mxu1 %v2902_v29 }
 0x86a   : > { %v1788_v52 = vpop.xlane.xlu1 %1787 }
 0x86b   : > { %v1789_v53 = vmul.f32 0.0078125, %v1788_v52 }
 0x86d   : > { %v1790_v54 = vsub.f32 %v4116_v45, %v1789_v53 }
 0x86f   : > { %v1791_v1 = vmul.f32 %v1790_v54, %v1790_v54 }
 0x871   : > { %1792 = vadd.xlane.f32.xlu1 %v1791_v1 }
 0x8fe   : > { %v1793_v10 = vpop.xlane.xlu1 %1792 }
 0x8ff   : > { %v1794_v58 = vmul.f32 0.0078125, %v1793_v10 }
 0x901   : > { %v1795_v11 = vadd.f32 1e-05, %v1794_v58 }
 0x903   : > { %2921 = vrsqrt.f32 %v1795_v11 }
 0x90d   : > { %v2922_v17 = vpop.eup %2921 }
 0x90e   : > { %v1797_v4 = vmul.f32 %v2922_v17, %v1790_v54 }
 0x910   : > { %v1804_v19 = vmul.f32 %v1803_v16, %v1797_v4 }
 0x912   : > { %v1811_v20 = vadd.f32 %v1810_v18, %v1804_v19 }
 0x914   : > { %v1812_v21 = vpack.c.bf16 %v1811_v20, %v1811_v20 }
 0x916   : > { %1963 = vmatmul.mubr.bf16.vlgmr.msra.gmra.mrb[32].mxu0 %v1812_v21 }
 0x9e9   : > { %v1964_v38 = vpop.f32.mrb[32].mxu0 }
 0x9ea   : > { %v1965_v39 = vadd.f32 %v1964_v38, %v1845_v35  ;;  %v1966_v41 = vpop.f32.mrb[33].mxu0 }
 0x9eb   : > { %v1967_v42 = vadd.f32 %v1966_v41, %v1849_v37  ;;  %v1968_v43 = vpop.f32.mrb[34].mxu0 }
 0x9ec   : > { %v1975_v44 = vmul.f32 0.044715, %v1965_v39  ;;  %v1969_v34 = vpop.f32.mrb[35].mxu0  ;;  %v1973_v48 = vmul.f32 0.7978846, %v1965_v39  ;;  %v1971_v54 = vmul.f32 0.5, %v1965_v39 }
 0x9ed   : > { %v1976_v26 = vmul.f32 0.044715, %v1967_v42  ;;  %v1974_v50 = vmul.f32 0.7978846, %v1967_v42  ;;  %v1972_v55 = vmul.f32 0.5, %v1967_v42 }
 0x9ee   : > { %v1977_v46 = vmul.f32 %v1975_v44, %v1965_v39 }
 0x9ef   : > { %v1978_v47 = vmul.f32 %v1976_v26, %v1967_v42 }
 0x9f0   : > { %v1979_v49 = vadd.f32 1.0, %v1977_v46 }
 0x9f1   : > { %v1980_v51 = vadd.f32 1.0, %v1978_v47 }
 0x9f2   : > { %v1981_v36 = vmul.f32 %v1979_v49, %v1973_v48 }
 0x9f3   : > { %v1982_v5 = vmul.f32 %v1980_v51, %v1974_v50 }
 0x9f4   : > { %2923 = vtanh.f32 %v1981_v36 }
 0x9f5   : > { %2925 = vtanh.f32 %v1982_v5 }
 0x9fe   : > { %v2924_v52 = vpop.eup %2923 }
 0x9ff   : > { %v2926_v53 = vpop.eup %2925  ;;  %v1985_v1 = vadd.f32 1.0, %v2924_v52 }
 0xa00   : > { %v1986_v56 = vadd.f32 1.0, %v2926_v53 }
 0xa01   : > { %v1987_v57 = vmul.f32 %v1985_v1, %v1971_v54 }
 0xa02   : > { %v1988_v59 = vmul.f32 %v1986_v56, %v1972_v55 }
 0xa03   : > { %v1989_v61 = vpack.c.bf16 %v1987_v57, %v1987_v57 }
 0xa04   : > { %v1990_v60 = vpack.c.bf16 %v1988_v59, %v1988_v59 }
 0xa06   : > { %2465 = vmatprep.mubr.msk.bf16.mxu1 %vm2093_vm4, %v1990_v60 }
 0xa07   : > { %2130 = vmatmul.mubr.bf16.vlgmr.msra.gmra.mrb[24].mxu1 %v1989_v61 }
 0xada   : > { %v2131_v2 = vpop.f32.mrb[24].mxu1 }
 0xadb   : > { %v2132_v3 = vadd.f32 %v2131_v2, %v2020_v0  ;;  %v2133_v6 = vpop.f32.mrb[25].mxu1 }
 0xadc   : > { %v2134_v7 = vpop.f32.mrb[26].mxu1 }
 0xadd   : > { %v2137_v8 = vadd.f32 %v2132_v3, %v4116_v45  ;;  %v2135_v9 = vpop.f32.mrb[27].mxu1 }
 0xadf   : > { %v2138_v10 = vpack.c.bf16 %v2137_v8, %v2137_v8 }
 0xae1   : > { %2139 = vst [vmem:[%s692_s18] sm:$0xf] %v2138_v10 }
 0xae2   : > { %3362 = shalt.err (!%p3359_p9)
}
 0xae3   : > { %s3363_s20 = scalar_lea.hbm %s4146_s23, 64  ;;  %s3367_s3 = scalar_lea.hbm %s4264_s16, 128 }
 0xae4   : > { %p3364_p4 = scmp.ne.s32.totalorder %s4146_s23, %s3363_s20  ;;  %p3368_p3 = scmp.lt.u32.totalorder %s4146_s23, %s4264_s16 }
 0xae5   : > { %p3369_p2 = scmp.lt.u32.totalorder %s3367_s3, %s3363_s20  ;;  %p3371_p10 = scmp.lt.u32.totalorder %s3363_s20, %s4146_s23 }
 0xae6   : > { %p3365_p13 = pnand %p3364_p4, %p4265_p11 }
 0xae7   : > { %p3370_p0 = por %p3369_p2, %p3368_p3 }
 0xae8   : > { %p3366_p1 = pneg %p3365_p13 }
 0xae9   : > { %p3372_p12 = por %p3371_p10, %p3370_p0 }
 0xaeb   : > { %p3373_p8 = pnand %p3372_p12, %p3366_p1 }
 0xaed   : > { %3376 = shalt.err (!%p3373_p8)
}
 0xaee   : > { %2689 = dma.vmem_to_hbm [thread:$0]  (%p4265_p11), %s4148_s24, 64, %s4146_s23, %s2141_s19  }
 0xaef PF: > { %s4266_s1 = sld [smem:[#allocation36_spill]]  ;;  %p4267_p5 = scmp.ne.s32.totalorder %s4243_s25, 0 }
 0xaf0   : > { %p4268_p7 = scmp.ge.s32.totalorder %s3443_s21, 2 }
 0xaf2   : > { %p2739_p6 = pnand %p4268_p7, %p4267_p5 }
 0xaf5   : > { %s2166_s22 = sand.u32 1, %s4266_s1  }
 0xaf6   : > { %s2167_s26 = scalar_lea.sflag [#allocation4], %s2166_s22 }
 0xaf7   : > { %3426 = dma.done.wait (!%p2739_p6), %s2167_s26, 64  }
 0xaf8   : > { %3428 = vsyncadd (!%p2739_p6), %s2167_s26, 4294967232  ;;  %s4269_s18 = sld [smem:[#allocation37_spill]]  ;;  %s4270_s19 = sld [smem:[#allocation38_spill]] }
 0xaf9   : > { %p35_p9 = scmp.ge.s32.totalorder %s3877_s28, 4   ;;  %s4271_s20 = smov %s3888_s0 }
 0xafa   : > { %s4272_s21 = smov %s3877_s28 }
 0xafb   :  { %37 = sbr.rel (!%p35_p9) target bundleno = 17 (0x11), region = 181 }
 0xb02   :  { %2172 = vsyncpa [#allocation3], 1 }
 0xb03   :  { %2174 = vsyncpa [#allocation3 + $0x1], 1 }
 0xb04   :  { %2175 = vsyncpa [#allocation6], 1 }
 0xb05   :  { %2176 = vsyncpa [#allocation9], 1 }
 0xb06   :  { %2177 = vsyncpa [#allocation12], 1 }
 0xb07   :  { %2178 = vsyncpa [#allocation15], 1 }
 0xb08   :  { %2179 = vsyncpa [#allocation18], 1 }
 0xb09   :  { %2180 = vsyncpa [#allocation21], 1 }
 0xb0a   :  { %2181 = vsyncpa [#allocation24], 1 }
 0xb0b   :  { %2182 = vsyncpa [#allocation4], 1 }
 0xb0c   :  { %2184 = vsyncpa [#allocation4 + $0x1], 1 }

</bundles_post_ra>
